<compile_context>
chip_gen: v6e
topology: v6e:2x2x1
jax: 0.10.0
libtpu: 0.0.40
codegen_flags: <defaults>
</compile_context>

<pallas_src>
import jax
import jax.numpy as jnp
from jax.experimental import pallas as pl
from jax.experimental.pallas import tpu as pltpu

LANE = 128
SUBLANE = 8


def _round_up(n, m):
    return ((n + m - 1) // m) * m


# ---------------------------------------------------------------------------
# Fused whole-network kernel (per-batch-element grid step)
# ---------------------------------------------------------------------------
def _make_fused_kernel(meta, *, T, T_p, H, compute_dtype):
    """meta: per-block static info [{'K','dilation','has_ds','cin_p','cout_p'}]."""
    L = len(meta)
    n_in = 1 + sum(6 if m["has_ds"] else 4 for m in meta) + 2  # x + blocks + (wl, bl)

    def dot(a, b):
        # MXU matmul; operands cast to compute_dtype, f32 accumulation.
        return jnp.dot(a.astype(compute_dtype), b, preferred_element_type=jnp.float32)

    def kernel(*refs):
        x_ref = refs[0]
        pos = 1
        blk_refs = []
        for m in meta:
            n = 6 if m["has_ds"] else 4
            blk_refs.append(refs[pos:pos + n])
            pos += n
        wl_ref, bl_ref = refs[pos], refs[pos + 1]
        o_ref = refs[n_in]
        halo_ref = refs[n_in + 1]

        # Zero the causal halo rows once; they are never written afterwards,
        # so every conv sees zero left-padding "for free".
        if H > 0:
            halo_ref[0:H, :] = jnp.zeros((H, halo_ref.shape[1]), halo_ref.dtype)

        def causal_conv(a, w_ref, b_ref, K, d):
            """Dilated causal conv over the full (T_p, C) tile.

            K accumulating dots; shifted taps are static windows of the
            zero-halo scratch (no im2col column buffer, no per-tap concat).
            """
            C = a.shape[-1]
            a_c = a.astype(compute_dtype)
            if K > 1:
                halo_ref[H:H + T_p, :C] = a_c          # aligned store (H % 8 == 0)
            acc = b_ref[...]                            # (1, Cout) f32, broadcasts
            for k in range(K):
                s = (K - 1 - k) * d                     # causal shift of this tap
                tap = a_c if s == 0 else halo_ref[H - s:H - s + T_p, :C]
                acc = acc + dot(tap, w_ref[k])
            return acc                                  # (T_p, Cout) f32

        h = x_ref[...].astype(jnp.float32)              # (T_p, cin_p)

        # ----- all blocks except the last: full-sequence TemporalBlock -----
        for li in range(L - 1):
            m, r = meta[li], blk_refs[li]
            w1, b1, w2, b2 = r[:4]
            h1 = jnp.maximum(causal_conv(h, w1, b1, m["K"], m["dilation"]), 0.0)
            out2 = causal_conv(h1, w2, b2, m["K"], m["dilation"])
            if m["has_ds"]:
                res = dot(h, r[4][...]) + r[5][...]
            else:
                res = h
            h = jnp.maximum(out2 + res, 0.0)
            # Rows in the padded time tail [T, T_p) hold garbage from here on;
            # strict causality keeps them from ever influencing rows < T.

        # ----- last block fused with the Linear head; only t = T-1 matters -----
        m, r = meta[-1], blk_refs[-1]
        w1, b1, w2, b2 = r[:4]
        K, d = m["K"], m["dilation"]
        t_last = T - 1
        # Input rows actually consumed by the pruned last block.
        xrow = {q: h[t_last - q * d:t_last - q * d + 1, :]
                for q in range(2 * (K - 1) + 1) if t_last - q * d >= 0}
        # conv1 only at the K positions conv2@(T-1) reads.
        h1_rows = []
        for j in range(K):                               # position t_last - j*d
            if t_last - j * d < 0:
                h1_rows.append(None)                     # zero (causal padding)
                continue
            acc = b1[...]
            for mm in range(K):                          # tap offset mm*d
                q = j + mm
                if q in xrow:
                    acc = acc + dot(xrow[q], w1[K - 1 - mm])
            h1_rows.append(jnp.maximum(acc, 0.0))
        out2 = b2[...]
        for j in range(K):
            if h1_rows[j] is not None:
                out2 = out2 + dot(h1_rows[j], w2[K - 1 - j])
        if m["has_ds"]:
            res = dot(xrow[0], r[4][...]) + r[5][...]
        else:
            res = xrow[0]
        y_last = jnp.maximum(out2 + res, 0.0)            # (1, cout_p)
        pred = dot(y_last, wl_ref[...]) + bl_ref[...]     # (1, O_p)
        o_ref[...] = pred.astype(o_ref.dtype)

    return kernel


# ---------------------------------------------------------------------------
# Parameter init (synthetic, deterministic) and padded/packed prep
# ---------------------------------------------------------------------------
def init_tcn_params(key, input_size, output_size, num_channels, kernel_size):
    params = {"blocks": []}
    for i, out_ch in enumerate(num_channels):
        in_ch = input_size if i == 0 else num_channels[i - 1]
        key, k1, k2, k3, k4, k5, k6 = jax.random.split(key, 7)
        blk = {
            "dilation": 2 ** i,
            "w1": 0.01 * jax.random.normal(k1, (kernel_size, in_ch, out_ch), jnp.float32),
            "b1": 0.01 * jax.random.normal(k2, (1, out_ch), jnp.float32),
            "w2": 0.01 * jax.random.normal(k3, (kernel_size, out_ch, out_ch), jnp.float32),
            "b2": 0.01 * jax.random.normal(k4, (1, out_ch), jnp.float32),
        }
        if in_ch != out_ch:
            blk["w_ds"] = 0.01 * jax.random.normal(k5, (1, in_ch, out_ch), jnp.float32)
            blk["b_ds"] = 0.01 * jax.random.normal(k6, (1, out_ch), jnp.float32)
        else:
            blk["w_ds"] = None
            blk["b_ds"] = None
        params["blocks"].append(blk)
    key, kl1, kl2 = jax.random.split(key, 3)
    c_last = num_channels[-1]
    params["wl"] = 0.1 * jax.random.normal(kl1, (c_last, output_size), jnp.float32)
    params["bl"] = 0.1 * jax.random.normal(kl2, (1, output_size), jnp.float32)
    return params


def prepare_params(params, compute_dtype=jnp.float32):
    """Zero-pad channels to lane multiples; weights in compute_dtype, biases f32."""
    prepared = {"blocks": [], "compute_dtype": compute_dtype}
    for blk in params["blocks"]:
        K, cin, cout = blk["w1"].shape
        cin_p, cout_p = _round_up(cin, LANE), _round_up(cout, LANE)
        w1 = jnp.zeros((K, cin_p, cout_p), jnp.float32).at[:, :cin, :cout].set(blk["w1"])
        w2 = jnp.zeros((K, cout_p, cout_p), jnp.float32).at[:, :cout, :cout].set(blk["w2"])
        p = {
            "K": K, "dilation": blk["dilation"], "cin_p": cin_p, "cout_p": cout_p,
            "w1": w1.astype(compute_dtype),
            "b1": jnp.zeros((1, cout_p), jnp.float32).at[:, :cout].set(blk["b1"]),
            "w2": w2.astype(compute_dtype),
            "b2": jnp.zeros((1, cout_p), jnp.float32).at[:, :cout].set(blk["b2"]),
        }
        if blk["w_ds"] is not None:
            wds = jnp.zeros((cin_p, cout_p), jnp.float32).at[:cin, :cout].set(blk["w_ds"][0])
            p["w_ds"] = wds.astype(compute_dtype)
            p["b_ds"] = jnp.zeros((1, cout_p), jnp.float32).at[:, :cout].set(blk["b_ds"])
        else:
            p["w_ds"], p["b_ds"] = None, None
        prepared["blocks"].append(p)
    c_last, out_sz = params["wl"].shape
    c_p, o_p = _round_up(c_last, LANE), _round_up(out_sz, LANE)
    prepared["wl"] = (jnp.zeros((c_p, o_p), jnp.float32)
                      .at[:c_last, :out_sz].set(params["wl"])).astype(compute_dtype)
    prepared["bl"] = jnp.zeros((1, o_p), jnp.float32).at[:, :out_sz].set(params["bl"])
    prepared["output_size"] = out_sz
    return prepared


def tcn_forward(prepared, x):
    """x: (B, T, input_size) f32 -> (B, output_size) f32."""
    B, T, cin = x.shape
    blocks = prepared["blocks"]
    cin_p = blocks[0]["cin_p"]
    T_p = _round_up(T, SUBLANE)
    xp = jnp.zeros((B, T_p, cin_p), jnp.float32).at[:, :T, :cin].set(x)

    meta = [{"K": b["K"], "dilation": b["dilation"],
             "has_ds": b["w_ds"] is not None,
             "cin_p": b["cin_p"], "cout_p": b["cout_p"]} for b in blocks]
    max_shift = max([(m["K"] - 1) * m["dilation"] for m in meta[:-1]], default=0)
    H = _round_up(max_shift, SUBLANE) if max_shift > 0 else 0
    C_max = max(max(m["cin_p"], m["cout_p"]) for m in meta)
    compute_dtype = prepared["compute_dtype"]

    kernel = _make_fused_kernel(meta, T=T, T_p=T_p, H=H, compute_dtype=compute_dtype)

    def resident(arr):
        # Full-array block, constant index map: DMA'd once, stays in VMEM.
        nd = arr.ndim

        def imap(b):
            return (0,) * nd
        return pl.BlockSpec(arr.shape, imap)

    args = [xp]
    in_specs = [pl.BlockSpec((None, T_p, cin_p), lambda b: (b, 0, 0))]
    for blk in blocks:
        for name in ("w1", "b1", "w2", "b2"):
            args.append(blk[name])
            in_specs.append(resident(blk[name]))
        if blk["w_ds"] is not None:
            for name in ("w_ds", "b_ds"):
                args.append(blk[name])
                in_specs.append(resident(blk[name]))
    args.append(prepared["wl"])
    in_specs.append(resident(prepared["wl"]))
    args.append(prepared["bl"])
    in_specs.append(resident(prepared["bl"]))

    o_p = prepared["bl"].shape[-1]
    out = pl.pallas_call(
        kernel,
        grid=(B,),
        in_specs=in_specs,
        out_specs=pl.BlockSpec((None, 1, o_p), lambda b: (b, 0, 0)),
        out_shape=jax.ShapeDtypeStruct((B, 1, o_p), jnp.float32),
        scratch_shapes=[pltpu.VMEM((H + T_p, C_max), compute_dtype)],
        compiler_params=pltpu.CompilerParams(dimension_semantics=("parallel",)),
    )(*args)
    return out[:, 0, :prepared["output_size"]]


# ---------------------------------------------------------------------------
# Pure-JAX reference (same math, no Pallas) for sanity check
# ---------------------------------------------------------------------------
def _ref_conv(x, w, b, d):
    B, T, Cin = x.shape
    K, _, Cout = w.shape
    acc = jnp.zeros((B, T, Cout), jnp.float32)
    for k in range(K):
        shift = (K - 1 - k) * d
        xs = jnp.pad(x, ((0, 0), (shift, 0), (0, 0)))[:, :T, :]
        acc = acc + jnp.einsum("btc,cd->btd", xs, w[k])
    return acc + b[None, :, :]


def ref_forward(params, x):
    h = x
    for blk in params["blocks"]:
        d = blk["dilation"]
        out = jnp.maximum(_ref_conv(h, blk["w1"], blk["b1"], d), 0.0)
        res = h if blk["w_ds"] is None else _ref_conv(h, blk["w_ds"], blk["b_ds"], 1)
        h = jnp.maximum(_ref_conv(out, blk["w2"], blk["b2"], d) + res, 0.0)
    return h[:, -1, :] @ params["wl"] + params["bl"]


# ---------------------------------------------------------------------------
if __name__ == "__main__":
    B, T = 2, 16
    input_size, output_size = 4, 5
    num_channels = [8, 8, 16]     # exercises both downsample and identity residual
    kernel_size = 3
    # dropout = 0.2  -> identity at inference

    key = jax.random.PRNGKey(0)
    kx, kp = jax.random.split(key)
    x = jax.random.normal(kx, (B, T, input_size), jnp.float32)
    params = init_tcn_params(kp, input_size, output_size, num_channels, kernel_size)

    ref = jax.block_until_ready(ref_forward(params, x))

    # f32 MXU path: parity with the reference.
    pred32 = jax.block_until_ready(tcn_forward(prepare_params(params, jnp.float32), x))
    assert pred32.shape == (B, output_size)
    assert jnp.allclose(pred32, ref, atol=1e-4, rtol=1e-4), (pred32, ref)

    # bf16 MXU operands (full-rate MXU), f32 accumulation: looser tolerance.
    pred16 = jax.block_until_ready(tcn_forward(prepare_params(params, jnp.bfloat16), x))
    assert pred16.shape == (B, output_size)
    assert jnp.allclose(pred16, ref, atol=2e-2, rtol=2e-2), (pred16, ref)

    print("KERNEL_OK")
</pallas_src>

<mosaic_0001>
module attributes {stable_mosaic.version = 11 : i64} {
  func.func @kernel(%arg0: i32, %arg1: memref<1x16x128xf32, #tpu.memory_space<vmem>>, %arg2: memref<3x128x128xf32, #tpu.memory_space<vmem>>, %arg3: memref<1x128xf32, #tpu.memory_space<vmem>>, %arg4: memref<3x128x128xf32, #tpu.memory_space<vmem>>, %arg5: memref<1x128xf32, #tpu.memory_space<vmem>>, %arg6: memref<128x128xf32, #tpu.memory_space<vmem>>, %arg7: memref<1x128xf32, #tpu.memory_space<vmem>>, %arg8: memref<3x128x128xf32, #tpu.memory_space<vmem>>, %arg9: memref<1x128xf32, #tpu.memory_space<vmem>>, %arg10: memref<3x128x128xf32, #tpu.memory_space<vmem>>, %arg11: memref<1x128xf32, #tpu.memory_space<vmem>>, %arg12: memref<3x128x128xf32, #tpu.memory_space<vmem>>, %arg13: memref<1x128xf32, #tpu.memory_space<vmem>>, %arg14: memref<3x128x128xf32, #tpu.memory_space<vmem>>, %arg15: memref<1x128xf32, #tpu.memory_space<vmem>>, %arg16: memref<128x128xf32, #tpu.memory_space<vmem>>, %arg17: memref<1x128xf32, #tpu.memory_space<vmem>>, %arg18: memref<128x128xf32, #tpu.memory_space<vmem>>, %arg19: memref<1x128xf32, #tpu.memory_space<vmem>>, %arg20: memref<1x1x128xf32, #tpu.memory_space<vmem>>, %arg21: memref<24x128xf32, #tpu.memory_space<vmem>>) attributes {dimension_semantics = [#tpu.dimension_semantics<parallel>], iteration_bounds = array<i64: 2>, scalar_prefetch = 0 : i64, scratch_operands = 1 : i64, tpu.core_type = #tpu.core_type<tc>, window_params = [{transform_indices = @transform_0, window_bounds = array<i64: 1, 16, 128>}, {pipeline_mode = #tpu.pipeline_mode<synchronous>, transform_indices = @transform_1, window_bounds = array<i64: 3, 128, 128>}, {pipeline_mode = #tpu.pipeline_mode<synchronous>, transform_indices = @transform_2, window_bounds = array<i64: 1, 128>}, {pipeline_mode = #tpu.pipeline_mode<synchronous>, transform_indices = @transform_3, window_bounds = array<i64: 3, 128, 128>}, {pipeline_mode = #tpu.pipeline_mode<synchronous>, transform_indices = @transform_4, window_bounds = array<i64: 1, 128>}, {pipeline_mode = #tpu.pipeline_mode<synchronous>, transform_indices = @transform_5, window_bounds = array<i64: 128, 128>}, {pipeline_mode = #tpu.pipeline_mode<synchronous>, transform_indices = @transform_6, window_bounds = array<i64: 1, 128>}, {pipeline_mode = #tpu.pipeline_mode<synchronous>, transform_indices = @transform_7, window_bounds = array<i64: 3, 128, 128>}, {pipeline_mode = #tpu.pipeline_mode<synchronous>, transform_indices = @transform_8, window_bounds = array<i64: 1, 128>}, {pipeline_mode = #tpu.pipeline_mode<synchronous>, transform_indices = @transform_9, window_bounds = array<i64: 3, 128, 128>}, {pipeline_mode = #tpu.pipeline_mode<synchronous>, transform_indices = @transform_10, window_bounds = array<i64: 1, 128>}, {pipeline_mode = #tpu.pipeline_mode<synchronous>, transform_indices = @transform_11, window_bounds = array<i64: 3, 128, 128>}, {pipeline_mode = #tpu.pipeline_mode<synchronous>, transform_indices = @transform_12, window_bounds = array<i64: 1, 128>}, {pipeline_mode = #tpu.pipeline_mode<synchronous>, transform_indices = @transform_13, window_bounds = array<i64: 3, 128, 128>}, {pipeline_mode = #tpu.pipeline_mode<synchronous>, transform_indices = @transform_14, window_bounds = array<i64: 1, 128>}, {pipeline_mode = #tpu.pipeline_mode<synchronous>, transform_indices = @transform_15, window_bounds = array<i64: 128, 128>}, {pipeline_mode = #tpu.pipeline_mode<synchronous>, transform_indices = @transform_16, window_bounds = array<i64: 1, 128>}, {pipeline_mode = #tpu.pipeline_mode<synchronous>, transform_indices = @transform_17, window_bounds = array<i64: 128, 128>}, {pipeline_mode = #tpu.pipeline_mode<synchronous>, transform_indices = @transform_18, window_bounds = array<i64: 1, 128>}, {transform_indices = @transform_19, window_bounds = array<i64: 1, 1, 128>}]} {
    %cst = arith.constant 0.000000e+00 : f32
    %0 = vector.broadcast %cst : f32 to vector<8x128xf32>
    %c0 = arith.constant 0 : index
    %c0_0 = arith.constant 0 : index
    %1 = vector.load %arg21[%c0, %c0_0] : memref<24x128xf32, #tpu.memory_space<vmem>>, vector<8x128xf32>
    tpu.vector_store %arg21[%c0, %c0_0], %0 {strides = array<i32>} : memref<24x128xf32, #tpu.memory_space<vmem>>, vector<8x128xf32>,
    %c0_1 = arith.constant 0 : index
    %c0_2 = arith.constant 0 : index
    %c0_3 = arith.constant 0 : index
    %2 = vector.load %arg1[%c0_1, %c0_2, %c0_3] : memref<1x16x128xf32, #tpu.memory_space<vmem>>, vector<1x16x128xf32>
    %3 = vector.shape_cast %2 : vector<1x16x128xf32> to vector<16x128xf32>
    %c8 = arith.constant 8 : index
    %c0_4 = arith.constant 0 : index
    %4 = vector.load %arg21[%c8, %c0_4] : memref<24x128xf32, #tpu.memory_space<vmem>>, vector<16x128xf32>
    tpu.vector_store %arg21[%c8, %c0_4], %3 {strides = array<i32>} : memref<24x128xf32, #tpu.memory_space<vmem>>, vector<16x128xf32>,
    %c0_5 = arith.constant 0 : index
    %c0_6 = arith.constant 0 : index
    %5 = vector.load %arg3[%c0_5, %c0_6] : memref<1x128xf32, #tpu.memory_space<vmem>>, vector<1x128xf32>
    %c6 = arith.constant 6 : index
    %c0_7 = arith.constant 0 : index
    %6 = vector.load %arg21[%c6, %c0_7] : memref<24x128xf32, #tpu.memory_space<vmem>>, vector<16x128xf32>
    %c0_8 = arith.constant 0 : index
    %c0_9 = arith.constant 0 : index
    %c0_10 = arith.constant 0 : index
    %7 = vector.load %arg2[%c0_8, %c0_9, %c0_10] : memref<3x128x128xf32, #tpu.memory_space<vmem>>, vector<1x128x128xf32>
    %8 = vector.shape_cast %7 : vector<1x128x128xf32> to vector<128x128xf32>
    %cst_11 = arith.constant dense<0.000000e+00> : vector<16x128xf32>
    %9 = tpu.matmul %6, %8, %cst_11 {dimension_numbers = #tpu.dot_dimension_numbers<[1], [0], [0], [1], [0, 0, 1, 1], [], []>} : vector<16x128xf32>, vector<128x128xf32>, vector<16x128xf32> -> vector<16x128xf32>
    %10 = vector.broadcast %5 : vector<1x128xf32> to vector<16x128xf32>
    %11 = arith.addf %10, %9 : vector<16x128xf32>
    %c7 = arith.constant 7 : index
    %c0_12 = arith.constant 0 : index
    %12 = vector.load %arg21[%c7, %c0_12] : memref<24x128xf32, #tpu.memory_space<vmem>>, vector<16x128xf32>
    %c1 = arith.constant 1 : index
    %c0_13 = arith.constant 0 : index
    %c0_14 = arith.constant 0 : index
    %13 = vector.load %arg2[%c1, %c0_13, %c0_14] : memref<3x128x128xf32, #tpu.memory_space<vmem>>, vector<1x128x128xf32>
    %14 = vector.shape_cast %13 : vector<1x128x128xf32> to vector<128x128xf32>
    %cst_15 = arith.constant dense<0.000000e+00> : vector<16x128xf32>
    %15 = tpu.matmul %12, %14, %cst_15 {dimension_numbers = #tpu.dot_dimension_numbers<[1], [0], [0], [1], [0, 0, 1, 1], [], []>} : vector<16x128xf32>, vector<128x128xf32>, vector<16x128xf32> -> vector<16x128xf32>
    %16 = arith.addf %11, %15 : vector<16x128xf32>
    %c2 = arith.constant 2 : index
    %c0_16 = arith.constant 0 : index
    %c0_17 = arith.constant 0 : index
    %17 = vector.load %arg2[%c2, %c0_16, %c0_17] : memref<3x128x128xf32, #tpu.memory_space<vmem>>, vector<1x128x128xf32>
    %18 = vector.shape_cast %17 : vector<1x128x128xf32> to vector<128x128xf32>
    %cst_18 = arith.constant dense<0.000000e+00> : vector<16x128xf32>
    %19 = tpu.matmul %3, %18, %cst_18 {dimension_numbers = #tpu.dot_dimension_numbers<[1], [0], [0], [1], [0, 0, 1, 1], [], []>} : vector<16x128xf32>, vector<128x128xf32>, vector<16x128xf32> -> vector<16x128xf32>
    %20 = arith.addf %16, %19 : vector<16x128xf32>
    %cst_19 = arith.constant 0.000000e+00 : f32
    %21 = vector.broadcast %cst_19 : f32 to vector<16x128xf32>
    %22 = arith.maximumf %20, %21 : vector<16x128xf32>
    %c8_20 = arith.constant 8 : index
    %c0_21 = arith.constant 0 : index
    %23 = vector.load %arg21[%c8_20, %c0_21] : memref<24x128xf32, #tpu.memory_space<vmem>>, vector<16x128xf32>
    tpu.vector_store %arg21[%c8_20, %c0_21], %22 {strides = array<i32>} : memref<24x128xf32, #tpu.memory_space<vmem>>, vector<16x128xf32>,
    %c0_22 = arith.constant 0 : index
    %c0_23 = arith.constant 0 : index
    %24 = vector.load %arg5[%c0_22, %c0_23] : memref<1x128xf32, #tpu.memory_space<vmem>>, vector<1x128xf32>
    %c6_24 = arith.constant 6 : index
    %c0_25 = arith.constant 0 : index
    %25 = vector.load %arg21[%c6_24, %c0_25] : memref<24x128xf32, #tpu.memory_space<vmem>>, vector<16x128xf32>
    %c0_26 = arith.constant 0 : index
    %c0_27 = arith.constant 0 : index
    %c0_28 = arith.constant 0 : index
    %26 = vector.load %arg4[%c0_26, %c0_27, %c0_28] : memref<3x128x128xf32, #tpu.memory_space<vmem>>, vector<1x128x128xf32>
    %27 = vector.shape_cast %26 : vector<1x128x128xf32> to vector<128x128xf32>
    %cst_29 = arith.constant dense<0.000000e+00> : vector<16x128xf32>
    %28 = tpu.matmul %25, %27, %cst_29 {dimension_numbers = #tpu.dot_dimension_numbers<[1], [0], [0], [1], [0, 0, 1, 1], [], []>} : vector<16x128xf32>, vector<128x128xf32>, vector<16x128xf32> -> vector<16x128xf32>
    %29 = vector.broadcast %24 : vector<1x128xf32> to vector<16x128xf32>
    %30 = arith.addf %29, %28 : vector<16x128xf32>
    %c7_30 = arith.constant 7 : index
    %c0_31 = arith.constant 0 : index
    %31 = vector.load %arg21[%c7_30, %c0_31] : memref<24x128xf32, #tpu.memory_space<vmem>>, vector<16x128xf32>
    %c1_32 = arith.constant 1 : index
    %c0_33 = arith.constant 0 : index
    %c0_34 = arith.constant 0 : index
    %32 = vector.load %arg4[%c1_32, %c0_33, %c0_34] : memref<3x128x128xf32, #tpu.memory_space<vmem>>, vector<1x128x128xf32>
    %33 = vector.shape_cast %32 : vector<1x128x128xf32> to vector<128x128xf32>
    %cst_35 = arith.constant dense<0.000000e+00> : vector<16x128xf32>
    %34 = tpu.matmul %31, %33, %cst_35 {dimension_numbers = #tpu.dot_dimension_numbers<[1], [0], [0], [1], [0, 0, 1, 1], [], []>} : vector<16x128xf32>, vector<128x128xf32>, vector<16x128xf32> -> vector<16x128xf32>
    %35 = arith.addf %30, %34 : vector<16x128xf32>
    %c2_36 = arith.constant 2 : index
    %c0_37 = arith.constant 0 : index
    %c0_38 = arith.constant 0 : index
    %36 = vector.load %arg4[%c2_36, %c0_37, %c0_38] : memref<3x128x128xf32, #tpu.memory_space<vmem>>, vector<1x128x128xf32>
    %37 = vector.shape_cast %36 : vector<1x128x128xf32> to vector<128x128xf32>
    %cst_39 = arith.constant dense<0.000000e+00> : vector<16x128xf32>
    %38 = tpu.matmul %22, %37, %cst_39 {dimension_numbers = #tpu.dot_dimension_numbers<[1], [0], [0], [1], [0, 0, 1, 1], [], []>} : vector<16x128xf32>, vector<128x128xf32>, vector<16x128xf32> -> vector<16x128xf32>
    %39 = arith.addf %35, %38 : vector<16x128xf32>
    %c0_40 = arith.constant 0 : index
    %c0_41 = arith.constant 0 : index
    %40 = vector.load %arg6[%c0_40, %c0_41] : memref<128x128xf32, #tpu.memory_space<vmem>>, vector<128x128xf32>
    %cst_42 = arith.constant dense<0.000000e+00> : vector<16x128xf32>
    %41 = tpu.matmul %3, %40, %cst_42 {dimension_numbers = #tpu.dot_dimension_numbers<[1], [0], [0], [1], [0, 0, 1, 1], [], []>} : vector<16x128xf32>, vector<128x128xf32>, vector<16x128xf32> -> vector<16x128xf32>
    %c0_43 = arith.constant 0 : index
    %c0_44 = arith.constant 0 : index
    %42 = vector.load %arg7[%c0_43, %c0_44] : memref<1x128xf32, #tpu.memory_space<vmem>>, vector<1x128xf32>
    %43 = vector.broadcast %42 : vector<1x128xf32> to vector<16x128xf32>
    %44 = arith.addf %41, %43 : vector<16x128xf32>
    %45 = arith.addf %39, %44 : vector<16x128xf32>
    %cst_45 = arith.constant 0.000000e+00 : f32
    %46 = vector.broadcast %cst_45 : f32 to vector<16x128xf32>
    %47 = arith.maximumf %45, %46 : vector<16x128xf32>
    %c8_46 = arith.constant 8 : index
    %c0_47 = arith.constant 0 : index
    %48 = vector.load %arg21[%c8_46, %c0_47] : memref<24x128xf32, #tpu.memory_space<vmem>>, vector<16x128xf32>
    tpu.vector_store %arg21[%c8_46, %c0_47], %47 {strides = array<i32>} : memref<24x128xf32, #tpu.memory_space<vmem>>, vector<16x128xf32>,
    %c0_48 = arith.constant 0 : index
    %c0_49 = arith.constant 0 : index
    %49 = vector.load %arg9[%c0_48, %c0_49] : memref<1x128xf32, #tpu.memory_space<vmem>>, vector<1x128xf32>
    %c4 = arith.constant 4 : index
    %c0_50 = arith.constant 0 : index
    %50 = vector.load %arg21[%c4, %c0_50] : memref<24x128xf32, #tpu.memory_space<vmem>>, vector<16x128xf32>
    %c0_51 = arith.constant 0 : index
    %c0_52 = arith.constant 0 : index
    %c0_53 = arith.constant 0 : index
    %51 = vector.load %arg8[%c0_51, %c0_52, %c0_53] : memref<3x128x128xf32, #tpu.memory_space<vmem>>, vector<1x128x128xf32>
    %52 = vector.shape_cast %51 : vector<1x128x128xf32> to vector<128x128xf32>
    %cst_54 = arith.constant dense<0.000000e+00> : vector<16x128xf32>
    %53 = tpu.matmul %50, %52, %cst_54 {dimension_numbers = #tpu.dot_dimension_numbers<[1], [0], [0], [1], [0, 0, 1, 1], [], []>} : vector<16x128xf32>, vector<128x128xf32>, vector<16x128xf32> -> vector<16x128xf32>
    %54 = vector.broadcast %49 : vector<1x128xf32> to vector<16x128xf32>
    %55 = arith.addf %54, %53 : vector<16x128xf32>
    %c6_55 = arith.constant 6 : index
    %c0_56 = arith.constant 0 : index
    %56 = vector.load %arg21[%c6_55, %c0_56] : memref<24x128xf32, #tpu.memory_space<vmem>>, vector<16x128xf32>
    %c1_57 = arith.constant 1 : index
    %c0_58 = arith.constant 0 : index
    %c0_59 = arith.constant 0 : index
    %57 = vector.load %arg8[%c1_57, %c0_58, %c0_59] : memref<3x128x128xf32, #tpu.memory_space<vmem>>, vector<1x128x128xf32>
    %58 = vector.shape_cast %57 : vector<1x128x128xf32> to vector<128x128xf32>
    %cst_60 = arith.constant dense<0.000000e+00> : vector<16x128xf32>
    %59 = tpu.matmul %56, %58, %cst_60 {dimension_numbers = #tpu.dot_dimension_numbers<[1], [0], [0], [1], [0, 0, 1, 1], [], []>} : vector<16x128xf32>, vector<128x128xf32>, vector<16x128xf32> -> vector<16x128xf32>
    %60 = arith.addf %55, %59 : vector<16x128xf32>
    %c2_61 = arith.constant 2 : index
    %c0_62 = arith.constant 0 : index
    %c0_63 = arith.constant 0 : index
    %61 = vector.load %arg8[%c2_61, %c0_62, %c0_63] : memref<3x128x128xf32, #tpu.memory_space<vmem>>, vector<1x128x128xf32>
    %62 = vector.shape_cast %61 : vector<1x128x128xf32> to vector<128x128xf32>
    %cst_64 = arith.constant dense<0.000000e+00> : vector<16x128xf32>
    %63 = tpu.matmul %47, %62, %cst_64 {dimension_numbers = #tpu.dot_dimension_numbers<[1], [0], [0], [1], [0, 0, 1, 1], [], []>} : vector<16x128xf32>, vector<128x128xf32>, vector<16x128xf32> -> vector<16x128xf32>
    %64 = arith.addf %60, %63 : vector<16x128xf32>
    %cst_65 = arith.constant 0.000000e+00 : f32
    %65 = vector.broadcast %cst_65 : f32 to vector<16x128xf32>
    %66 = arith.maximumf %64, %65 : vector<16x128xf32>
    %c8_66 = arith.constant 8 : index
    %c0_67 = arith.constant 0 : index
    %67 = vector.load %arg21[%c8_66, %c0_67] : memref<24x128xf32, #tpu.memory_space<vmem>>, vector<16x128xf32>
    tpu.vector_store %arg21[%c8_66, %c0_67], %66 {strides = array<i32>} : memref<24x128xf32, #tpu.memory_space<vmem>>, vector<16x128xf32>,
    %c0_68 = arith.constant 0 : index
    %c0_69 = arith.constant 0 : index
    %68 = vector.load %arg11[%c0_68, %c0_69] : memref<1x128xf32, #tpu.memory_space<vmem>>, vector<1x128xf32>
    %c4_70 = arith.constant 4 : index
    %c0_71 = arith.constant 0 : index
    %69 = vector.load %arg21[%c4_70, %c0_71] : memref<24x128xf32, #tpu.memory_space<vmem>>, vector<16x128xf32>
    %c0_72 = arith.constant 0 : index
    %c0_73 = arith.constant 0 : index
    %c0_74 = arith.constant 0 : index
    %70 = vector.load %arg10[%c0_72, %c0_73, %c0_74] : memref<3x128x128xf32, #tpu.memory_space<vmem>>, vector<1x128x128xf32>
    %71 = vector.shape_cast %70 : vector<1x128x128xf32> to vector<128x128xf32>
    %cst_75 = arith.constant dense<0.000000e+00> : vector<16x128xf32>
    %72 = tpu.matmul %69, %71, %cst_75 {dimension_numbers = #tpu.dot_dimension_numbers<[1], [0], [0], [1], [0, 0, 1, 1], [], []>} : vector<16x128xf32>, vector<128x128xf32>, vector<16x128xf32> -> vector<16x128xf32>
    %73 = vector.broadcast %68 : vector<1x128xf32> to vector<16x128xf32>
    %74 = arith.addf %73, %72 : vector<16x128xf32>
    %c6_76 = arith.constant 6 : index
    %c0_77 = arith.constant 0 : index
    %75 = vector.load %arg21[%c6_76, %c0_77] : memref<24x128xf32, #tpu.memory_space<vmem>>, vector<16x128xf32>
    %c1_78 = arith.constant 1 : index
    %c0_79 = arith.constant 0 : index
    %c0_80 = arith.constant 0 : index
    %76 = vector.load %arg10[%c1_78, %c0_79, %c0_80] : memref<3x128x128xf32, #tpu.memory_space<vmem>>, vector<1x128x128xf32>
    %77 = vector.shape_cast %76 : vector<1x128x128xf32> to vector<128x128xf32>
    %cst_81 = arith.constant dense<0.000000e+00> : vector<16x128xf32>
    %78 = tpu.matmul %75, %77, %cst_81 {dimension_numbers = #tpu.dot_dimension_numbers<[1], [0], [0], [1], [0, 0, 1, 1], [], []>} : vector<16x128xf32>, vector<128x128xf32>, vector<16x128xf32> -> vector<16x128xf32>
    %79 = arith.addf %74, %78 : vector<16x128xf32>
    %c2_82 = arith.constant 2 : index
    %c0_83 = arith.constant 0 : index
    %c0_84 = arith.constant 0 : index
    %80 = vector.load %arg10[%c2_82, %c0_83, %c0_84] : memref<3x128x128xf32, #tpu.memory_space<vmem>>, vector<1x128x128xf32>
    %81 = vector.shape_cast %80 : vector<1x128x128xf32> to vector<128x128xf32>
    %cst_85 = arith.constant dense<0.000000e+00> : vector<16x128xf32>
    %82 = tpu.matmul %66, %81, %cst_85 {dimension_numbers = #tpu.dot_dimension_numbers<[1], [0], [0], [1], [0, 0, 1, 1], [], []>} : vector<16x128xf32>, vector<128x128xf32>, vector<16x128xf32> -> vector<16x128xf32>
    %83 = arith.addf %79, %82 : vector<16x128xf32>
    %84 = arith.addf %83, %47 : vector<16x128xf32>
    %cst_86 = arith.constant 0.000000e+00 : f32
    %85 = vector.broadcast %cst_86 : f32 to vector<16x128xf32>
    %86 = arith.maximumf %84, %85 : vector<16x128xf32>
    %87 = vector.extract_strided_slice %86 {offsets = [15, 0], sizes = [1, 128], strides = [1, 1]} : vector<16x128xf32> to vector<1x128xf32>
    %88 = vector.extract_strided_slice %86 {offsets = [11, 0], sizes = [1, 128], strides = [1, 1]} : vector<16x128xf32> to vector<1x128xf32>
    %89 = vector.extract_strided_slice %86 {offsets = [7, 0], sizes = [1, 128], strides = [1, 1]} : vector<16x128xf32> to vector<1x128xf32>
    %90 = vector.extract_strided_slice %86 {offsets = [3, 0], sizes = [1, 128], strides = [1, 1]} : vector<16x128xf32> to vector<1x128xf32>
    %c0_87 = arith.constant 0 : index
    %c0_88 = arith.constant 0 : index
    %91 = vector.load %arg13[%c0_87, %c0_88] : memref<1x128xf32, #tpu.memory_space<vmem>>, vector<1x128xf32>
    %c2_89 = arith.constant 2 : index
    %c0_90 = arith.constant 0 : index
    %c0_91 = arith.constant 0 : index
    %92 = vector.load %arg12[%c2_89, %c0_90, %c0_91] : memref<3x128x128xf32, #tpu.memory_space<vmem>>, vector<1x128x128xf32>
    %93 = vector.shape_cast %92 : vector<1x128x128xf32> to vector<128x128xf32>
    %cst_92 = arith.constant dense<0.000000e+00> : vector<1x128xf32>
    %94 = tpu.matmul %87, %93, %cst_92 {dimension_numbers = #tpu.dot_dimension_numbers<[1], [0], [0], [1], [0, 0, 1, 1], [], []>} : vector<1x128xf32>, vector<128x128xf32>, vector<1x128xf32> -> vector<1x128xf32>
    %95 = arith.addf %91, %94 : vector<1x128xf32>
    %c1_93 = arith.constant 1 : index
    %c0_94 = arith.constant 0 : index
    %c0_95 = arith.constant 0 : index
    %96 = vector.load %arg12[%c1_93, %c0_94, %c0_95] : memref<3x128x128xf32, #tpu.memory_space<vmem>>, vector<1x128x128xf32>
    %97 = vector.shape_cast %96 : vector<1x128x128xf32> to vector<128x128xf32>
    %cst_96 = arith.constant dense<0.000000e+00> : vector<1x128xf32>
    %98 = tpu.matmul %88, %97, %cst_96 {dimension_numbers = #tpu.dot_dimension_numbers<[1], [0], [0], [1], [0, 0, 1, 1], [], []>} : vector<1x128xf32>, vector<128x128xf32>, vector<1x128xf32> -> vector<1x128xf32>
    %99 = arith.addf %95, %98 : vector<1x128xf32>
    %c0_97 = arith.constant 0 : index
    %c0_98 = arith.constant 0 : index
    %c0_99 = arith.constant 0 : index
    %100 = vector.load %arg12[%c0_97, %c0_98, %c0_99] : memref<3x128x128xf32, #tpu.memory_space<vmem>>, vector<1x128x128xf32>
    %101 = vector.shape_cast %100 : vector<1x128x128xf32> to vector<128x128xf32>
    %cst_100 = arith.constant dense<0.000000e+00> : vector<1x128xf32>
    %102 = tpu.matmul %89, %101, %cst_100 {dimension_numbers = #tpu.dot_dimension_numbers<[1], [0], [0], [1], [0, 0, 1, 1], [], []>} : vector<1x128xf32>, vector<128x128xf32>, vector<1x128xf32> -> vector<1x128xf32>
    %103 = arith.addf %99, %102 : vector<1x128xf32>
    %cst_101 = arith.constant 0.000000e+00 : f32
    %104 = vector.broadcast %cst_101 : f32 to vector<1x128xf32>
    %105 = arith.maximumf %103, %104 : vector<1x128xf32>
    %c0_102 = arith.constant 0 : index
    %c0_103 = arith.constant 0 : index
    %106 = vector.load %arg13[%c0_102, %c0_103] : memref<1x128xf32, #tpu.memory_space<vmem>>, vector<1x128xf32>
    %c2_104 = arith.constant 2 : index
    %c0_105 = arith.constant 0 : index
    %c0_106 = arith.constant 0 : index
    %107 = vector.load %arg12[%c2_104, %c0_105, %c0_106] : memref<3x128x128xf32, #tpu.memory_space<vmem>>, vector<1x128x128xf32>
    %108 = vector.shape_cast %107 : vector<1x128x128xf32> to vector<128x128xf32>
    %cst_107 = arith.constant dense<0.000000e+00> : vector<1x128xf32>
    %109 = tpu.matmul %88, %108, %cst_107 {dimension_numbers = #tpu.dot_dimension_numbers<[1], [0], [0], [1], [0, 0, 1, 1], [], []>} : vector<1x128xf32>, vector<128x128xf32>, vector<1x128xf32> -> vector<1x128xf32>
    %110 = arith.addf %106, %109 : vector<1x128xf32>
    %c1_108 = arith.constant 1 : index
    %c0_109 = arith.constant 0 : index
    %c0_110 = arith.constant 0 : index
    %111 = vector.load %arg12[%c1_108, %c0_109, %c0_110] : memref<3x128x128xf32, #tpu.memory_space<vmem>>, vector<1x128x128xf32>
    %112 = vector.shape_cast %111 : vector<1x128x128xf32> to vector<128x128xf32>
    %cst_111 = arith.constant dense<0.000000e+00> : vector<1x128xf32>
    %113 = tpu.matmul %89, %112, %cst_111 {dimension_numbers = #tpu.dot_dimension_numbers<[1], [0], [0], [1], [0, 0, 1, 1], [], []>} : vector<1x128xf32>, vector<128x128xf32>, vector<1x128xf32> -> vector<1x128xf32>
    %114 = arith.addf %110, %113 : vector<1x128xf32>
    %c0_112 = arith.constant 0 : index
    %c0_113 = arith.constant 0 : index
    %c0_114 = arith.constant 0 : index
    %115 = vector.load %arg12[%c0_112, %c0_113, %c0_114] : memref<3x128x128xf32, #tpu.memory_space<vmem>>, vector<1x128x128xf32>
    %116 = vector.shape_cast %115 : vector<1x128x128xf32> to vector<128x128xf32>
    %cst_115 = arith.constant dense<0.000000e+00> : vector<1x128xf32>
    %117 = tpu.matmul %90, %116, %cst_115 {dimension_numbers = #tpu.dot_dimension_numbers<[1], [0], [0], [1], [0, 0, 1, 1], [], []>} : vector<1x128xf32>, vector<128x128xf32>, vector<1x128xf32> -> vector<1x128xf32>
    %118 = arith.addf %114, %117 : vector<1x128xf32>
    %cst_116 = arith.constant 0.000000e+00 : f32
    %119 = vector.broadcast %cst_116 : f32 to vector<1x128xf32>
    %120 = arith.maximumf %118, %119 : vector<1x128xf32>
    %c0_117 = arith.constant 0 : index
    %c0_118 = arith.constant 0 : index
    %121 = vector.load %arg13[%c0_117, %c0_118] : memref<1x128xf32, #tpu.memory_space<vmem>>, vector<1x128xf32>
    %c2_119 = arith.constant 2 : index
    %c0_120 = arith.constant 0 : index
    %c0_121 = arith.constant 0 : index
    %122 = vector.load %arg12[%c2_119, %c0_120, %c0_121] : memref<3x128x128xf32, #tpu.memory_space<vmem>>, vector<1x128x128xf32>
    %123 = vector.shape_cast %122 : vector<1x128x128xf32> to vector<128x128xf32>
    %cst_122 = arith.constant dense<0.000000e+00> : vector<1x128xf32>
    %124 = tpu.matmul %89, %123, %cst_122 {dimension_numbers = #tpu.dot_dimension_numbers<[1], [0], [0], [1], [0, 0, 1, 1], [], []>} : vector<1x128xf32>, vector<128x128xf32>, vector<1x128xf32> -> vector<1x128xf32>
    %125 = arith.addf %121, %124 : vector<1x128xf32>
    %c1_123 = arith.constant 1 : index
    %c0_124 = arith.constant 0 : index
    %c0_125 = arith.constant 0 : index
    %126 = vector.load %arg12[%c1_123, %c0_124, %c0_125] : memref<3x128x128xf32, #tpu.memory_space<vmem>>, vector<1x128x128xf32>
    %127 = vector.shape_cast %126 : vector<1x128x128xf32> to vector<128x128xf32>
    %cst_126 = arith.constant dense<0.000000e+00> : vector<1x128xf32>
    %128 = tpu.matmul %90, %127, %cst_126 {dimension_numbers = #tpu.dot_dimension_numbers<[1], [0], [0], [1], [0, 0, 1, 1], [], []>} : vector<1x128xf32>, vector<128x128xf32>, vector<1x128xf32> -> vector<1x128xf32>
    %129 = arith.addf %125, %128 : vector<1x128xf32>
    %cst_127 = arith.constant 0.000000e+00 : f32
    %130 = vector.broadcast %cst_127 : f32 to vector<1x128xf32>
    %131 = arith.maximumf %129, %130 : vector<1x128xf32>
    %c0_128 = arith.constant 0 : index
    %c0_129 = arith.constant 0 : index
    %132 = vector.load %arg15[%c0_128, %c0_129] : memref<1x128xf32, #tpu.memory_space<vmem>>, vector<1x128xf32>
    %c2_130 = arith.constant 2 : index
    %c0_131 = arith.constant 0 : index
    %c0_132 = arith.constant 0 : index
    %133 = vector.load %arg14[%c2_130, %c0_131, %c0_132] : memref<3x128x128xf32, #tpu.memory_space<vmem>>, vector<1x128x128xf32>
    %134 = vector.shape_cast %133 : vector<1x128x128xf32> to vector<128x128xf32>
    %cst_133 = arith.constant dense<0.000000e+00> : vector<1x128xf32>
    %135 = tpu.matmul %105, %134, %cst_133 {dimension_numbers = #tpu.dot_dimension_numbers<[1], [0], [0], [1], [0, 0, 1, 1], [], []>} : vector<1x128xf32>, vector<128x128xf32>, vector<1x128xf32> -> vector<1x128xf32>
    %136 = arith.addf %132, %135 : vector<1x128xf32>
    %c1_134 = arith.constant 1 : index
    %c0_135 = arith.constant 0 : index
    %c0_136 = arith.constant 0 : index
    %137 = vector.load %arg14[%c1_134, %c0_135, %c0_136] : memref<3x128x128xf32, #tpu.memory_space<vmem>>, vector<1x128x128xf32>
    %138 = vector.shape_cast %137 : vector<1x128x128xf32> to vector<128x128xf32>
    %cst_137 = arith.constant dense<0.000000e+00> : vector<1x128xf32>
    %139 = tpu.matmul %120, %138, %cst_137 {dimension_numbers = #tpu.dot_dimension_numbers<[1], [0], [0], [1], [0, 0, 1, 1], [], []>} : vector<1x128xf32>, vector<128x128xf32>, vector<1x128xf32> -> vector<1x128xf32>
    %140 = arith.addf %136, %139 : vector<1x128xf32>
    %c0_138 = arith.constant 0 : index
    %c0_139 = arith.constant 0 : index
    %c0_140 = arith.constant 0 : index
    %141 = vector.load %arg14[%c0_138, %c0_139, %c0_140] : memref<3x128x128xf32, #tpu.memory_space<vmem>>, vector<1x128x128xf32>
    %142 = vector.shape_cast %141 : vector<1x128x128xf32> to vector<128x128xf32>
    %cst_141 = arith.constant dense<0.000000e+00> : vector<1x128xf32>
    %143 = tpu.matmul %131, %142, %cst_141 {dimension_numbers = #tpu.dot_dimension_numbers<[1], [0], [0], [1], [0, 0, 1, 1], [], []>} : vector<1x128xf32>, vector<128x128xf32>, vector<1x128xf32> -> vector<1x128xf32>
    %144 = arith.addf %140, %143 : vector<1x128xf32>
    %c0_142 = arith.constant 0 : index
    %c0_143 = arith.constant 0 : index
    %145 = vector.load %arg16[%c0_142, %c0_143] : memref<128x128xf32, #tpu.memory_space<vmem>>, vector<128x128xf32>
    %cst_144 = arith.constant dense<0.000000e+00> : vector<1x128xf32>
    %146 = tpu.matmul %87, %145, %cst_144 {dimension_numbers = #tpu.dot_dimension_numbers<[1], [0], [0], [1], [0, 0, 1, 1], [], []>} : vector<1x128xf32>, vector<128x128xf32>, vector<1x128xf32> -> vector<1x128xf32>
    %c0_145 = arith.constant 0 : index
    %c0_146 = arith.constant 0 : index
    %147 = vector.load %arg17[%c0_145, %c0_146] : memref<1x128xf32, #tpu.memory_space<vmem>>, vector<1x128xf32>
    %148 = arith.addf %146, %147 : vector<1x128xf32>
    %149 = arith.addf %144, %148 : vector<1x128xf32>
    %cst_147 = arith.constant 0.000000e+00 : f32
    %150 = vector.broadcast %cst_147 : f32 to vector<1x128xf32>
    %151 = arith.maximumf %149, %150 : vector<1x128xf32>
    %c0_148 = arith.constant 0 : index
    %c0_149 = arith.constant 0 : index
    %152 = vector.load %arg18[%c0_148, %c0_149] : memref<128x128xf32, #tpu.memory_space<vmem>>, vector<128x128xf32>
    %cst_150 = arith.constant dense<0.000000e+00> : vector<1x128xf32>
    %153 = tpu.matmul %151, %152, %cst_150 {dimension_numbers = #tpu.dot_dimension_numbers<[1], [0], [0], [1], [0, 0, 1, 1], [], []>} : vector<1x128xf32>, vector<128x128xf32>, vector<1x128xf32> -> vector<1x128xf32>
    %c0_151 = arith.constant 0 : index
    %c0_152 = arith.constant 0 : index
    %154 = vector.load %arg19[%c0_151, %c0_152] : memref<1x128xf32, #tpu.memory_space<vmem>>, vector<1x128xf32>
    %155 = arith.addf %153, %154 : vector<1x128xf32>
    %c0_153 = arith.constant 0 : index
    %c0_154 = arith.constant 0 : index
    %c0_155 = arith.constant 0 : index
    %156 = vector.load %arg20[%c0_153, %c0_154, %c0_155] : memref<1x1x128xf32, #tpu.memory_space<vmem>>, vector<1x1x128xf32>
    %157 = vector.shape_cast %156 : vector<1x1x128xf32> to vector<1x128xf32>
    %158 = vector.shape_cast %155 : vector<1x128xf32> to vector<1x1x128xf32>
    tpu.vector_store %arg20[%c0_153, %c0_154, %c0_155], %158 {strides = array<i32>} : memref<1x1x128xf32, #tpu.memory_space<vmem>>, vector<1x1x128xf32>,
    return
  }
  func.func @transform_0(%arg0: i32) -> (i32, i32, i32) {
    %c0_i32 = arith.constant 0 : i32
    %c0_i32_0 = arith.constant 0 : i32
    %c0_i32_1 = arith.constant 0 : i32
    return %arg0, %c0_i32, %c0_i32_0 : i32, i32, i32
  }
  func.func @transform_1(%arg0: i32) -> (i32, i32, i32) {
    %c0_i32 = arith.constant 0 : i32
    %c0_i32_0 = arith.constant 0 : i32
    %c0_i32_1 = arith.constant 0 : i32
    %c0_i32_2 = arith.constant 0 : i32
    return %c0_i32, %c0_i32_0, %c0_i32_1 : i32, i32, i32
  }
  func.func @transform_2(%arg0: i32) -> (i32, i32) {
    %c0_i32 = arith.constant 0 : i32
    %c0_i32_0 = arith.constant 0 : i32
    %c0_i32_1 = arith.constant 0 : i32
    return %c0_i32, %c0_i32_0 : i32, i32
  }
  func.func @transform_3(%arg0: i32) -> (i32, i32, i32) {
    %c0_i32 = arith.constant 0 : i32
    %c0_i32_0 = arith.constant 0 : i32
    %c0_i32_1 = arith.constant 0 : i32
    %c0_i32_2 = arith.constant 0 : i32
    return %c0_i32, %c0_i32_0, %c0_i32_1 : i32, i32, i32
  }
  func.func @transform_4(%arg0: i32) -> (i32, i32) {
    %c0_i32 = arith.constant 0 : i32
    %c0_i32_0 = arith.constant 0 : i32
    %c0_i32_1 = arith.constant 0 : i32
    return %c0_i32, %c0_i32_0 : i32, i32
  }
  func.func @transform_5(%arg0: i32) -> (i32, i32) {
    %c0_i32 = arith.constant 0 : i32
    %c0_i32_0 = arith.constant 0 : i32
    %c0_i32_1 = arith.constant 0 : i32
    return %c0_i32, %c0_i32_0 : i32, i32
  }
  func.func @transform_6(%arg0: i32) -> (i32, i32) {
    %c0_i32 = arith.constant 0 : i32
    %c0_i32_0 = arith.constant 0 : i32
    %c0_i32_1 = arith.constant 0 : i32
    return %c0_i32, %c0_i32_0 : i32, i32
  }
  func.func @transform_7(%arg0: i32) -> (i32, i32, i32) {
    %c0_i32 = arith.constant 0 : i32
    %c0_i32_0 = arith.constant 0 : i32
    %c0_i32_1 = arith.constant 0 : i32
    %c0_i32_2 = arith.constant 0 : i32
    return %c0_i32, %c0_i32_0, %c0_i32_1 : i32, i32, i32
  }
  func.func @transform_8(%arg0: i32) -> (i32, i32) {
    %c0_i32 = arith.constant 0 : i32
    %c0_i32_0 = arith.constant 0 : i32
    %c0_i32_1 = arith.constant 0 : i32
    return %c0_i32, %c0_i32_0 : i32, i32
  }
  func.func @transform_9(%arg0: i32) -> (i32, i32, i32) {
    %c0_i32 = arith.constant 0 : i32
    %c0_i32_0 = arith.constant 0 : i32
    %c0_i32_1 = arith.constant 0 : i32
    %c0_i32_2 = arith.constant 0 : i32
    return %c0_i32, %c0_i32_0, %c0_i32_1 : i32, i32, i32
  }
  func.func @transform_10(%arg0: i32) -> (i32, i32) {
    %c0_i32 = arith.constant 0 : i32
    %c0_i32_0 = arith.constant 0 : i32
    %c0_i32_1 = arith.constant 0 : i32
    return %c0_i32, %c0_i32_0 : i32, i32
  }
  func.func @transform_11(%arg0: i32) -> (i32, i32, i32) {
    %c0_i32 = arith.constant 0 : i32
    %c0_i32_0 = arith.constant 0 : i32
    %c0_i32_1 = arith.constant 0 : i32
    %c0_i32_2 = arith.constant 0 : i32
    return %c0_i32, %c0_i32_0, %c0_i32_1 : i32, i32, i32
  }
  func.func @transform_12(%arg0: i32) -> (i32, i32) {
    %c0_i32 = arith.constant 0 : i32
    %c0_i32_0 = arith.constant 0 : i32
    %c0_i32_1 = arith.constant 0 : i32
    return %c0_i32, %c0_i32_0 : i32, i32
  }
  func.func @transform_13(%arg0: i32) -> (i32, i32, i32) {
    %c0_i32 = arith.constant 0 : i32
    %c0_i32_0 = arith.constant 0 : i32
    %c0_i32_1 = arith.constant 0 : i32
    %c0_i32_2 = arith.constant 0 : i32
    return %c0_i32, %c0_i32_0, %c0_i32_1 : i32, i32, i32
  }
  func.func @transform_14(%arg0: i32) -> (i32, i32) {
    %c0_i32 = arith.constant 0 : i32
    %c0_i32_0 = arith.constant 0 : i32
    %c0_i32_1 = arith.constant 0 : i32
    return %c0_i32, %c0_i32_0 : i32, i32
  }
  func.func @transform_15(%arg0: i32) -> (i32, i32) {
    %c0_i32 = arith.constant 0 : i32
    %c0_i32_0 = arith.constant 0 : i32
    %c0_i32_1 = arith.constant 0 : i32
    return %c0_i32, %c0_i32_0 : i32, i32
  }
  func.func @transform_16(%arg0: i32) -> (i32, i32) {
    %c0_i32 = arith.constant 0 : i32
    %c0_i32_0 = arith.constant 0 : i32
    %c0_i32_1 = arith.constant 0 : i32
    return %c0_i32, %c0_i32_0 : i32, i32
  }
  func.func @transform_17(%arg0: i32) -> (i32, i32) {
    %c0_i32 = arith.constant 0 : i32
    %c0_i32_0 = arith.constant 0 : i32
    %c0_i32_1 = arith.constant 0 : i32
    return %c0_i32, %c0_i32_0 : i32, i32
  }
  func.func @transform_18(%arg0: i32) -> (i32, i32) {
    %c0_i32 = arith.constant 0 : i32
    %c0_i32_0 = arith.constant 0 : i32
    %c0_i32_1 = arith.constant 0 : i32
    return %c0_i32, %c0_i32_0 : i32, i32
  }
  func.func @transform_19(%arg0: i32) -> (i32, i32, i32) {
    %c0_i32 = arith.constant 0 : i32
    %c0_i32_0 = arith.constant 0 : i32
    %c0_i32_1 = arith.constant 0 : i32
    return %arg0, %c0_i32, %c0_i32_0 : i32, i32, i32
  }
}

</mosaic_0001>

<bundles_post_ra>
// kernel: tpu_custom_call.1
= control target key start
LH: loop header
LB: loop body
LE: loop exit
PB: predicated region body
PF: predicated region fallthrough
CT: control target
= control target key end

     0   :  { %s6123_s0 = inlined_call_operand.hbm [shape: f32[2,16,128], index: 0, kind: input, shape index: {}]   ;;  %s6124_s1 = inlined_call_operand.hbm [shape: f32[3,128,128], index: 1, kind: input, shape index: {}]   ;;  %s6125_s2 = inlined_call_operand.vmem [shape: f32[1,128], index: 2, kind: input, shape index: {}]   ;;  %s6126_s3 = inlined_call_operand.hbm [shape: f32[3,128,128], index: 3, kind: input, shape index: {}]   ;;  %s6127_s4 = inlined_call_operand.vmem [shape: f32[1,128], index: 4, kind: input, shape index: {}]   ;;  %s6128_s5 = inlined_call_operand.hbm [shape: f32[128,128], index: 5, kind: input, shape index: {}]   ;;  %s6129_s6 = inlined_call_operand.vmem [shape: f32[1,128], index: 6, kind: input, shape index: {}]   ;;  %s6130_s7 = inlined_call_operand.hbm [shape: f32[3,128,128], index: 7, kind: input, shape index: {}]   ;;  %s6131_s8 = inlined_call_operand.vmem [shape: f32[1,128], index: 8, kind: input, shape index: {}]   ;;  %s6132_s9 = inlined_call_operand.hbm [shape: f32[3,128,128], index: 9, kind: input, shape index: {}]   ;;  %s6133_s10 = inlined_call_operand.vmem [shape: f32[1,128], index: 10, kind: input, shape index: {}]   ;;  %s6134_s11 = inlined_call_operand.hbm [shape: f32[3,128,128], index: 11, kind: input, shape index: {}]   ;;  %s6135_s12 = inlined_call_operand.vmem [shape: f32[1,128], index: 12, kind: input, shape index: {}]   ;;  %s6136_s13 = inlined_call_operand.hbm [shape: f32[3,128,128], index: 13, kind: input, shape index: {}]   ;;  %s6137_s14 = inlined_call_operand.vmem [shape: f32[1,128], index: 14, kind: input, shape index: {}]   ;;  %s6138_s15 = inlined_call_operand.hbm [shape: f32[128,128], index: 15, kind: input, shape index: {}]   ;;  %s6139_s16 = inlined_call_operand.vmem [shape: f32[1,128], index: 16, kind: input, shape index: {}]   ;;  %s6140_s17 = inlined_call_operand.hbm [shape: f32[128,128], index: 17, kind: input, shape index: {}]   ;;  %s6141_s18 = inlined_call_operand.vmem [shape: f32[1,128], index: 18, kind: input, shape index: {}]   ;;  %s6142_s19 = inlined_call_operand.hbm [shape: f32[2,1,128], index: 19, kind: output, shape index: {}]  }
   0x1   :  { %6151 = sst [smem:[#allocation28_spill]] %s6123_s0 }
   0x2   :  { %6152 = sst [smem:[#allocation29_spill]] %s6124_s1 }
   0x3   :  { %6153 = sst [smem:[#allocation30_spill]] %s6125_s2 }
   0x4   :  { %6154 = sst [smem:[#allocation31_spill]] %s6126_s3 }
   0x5   :  { %6155 = sst [smem:[#allocation32_spill]] %s6128_s5 }
   0x6   :  { %6156 = sst [smem:[#allocation33_spill]] %s6130_s7 }
   0x7   :  { %6157 = sst [smem:[#allocation34_spill]] %s6132_s9 }
   0x8   :  { %6158 = sst [smem:[#allocation35_spill]] %s6134_s11 }
   0x9   :  { %6159 = sst [smem:[#allocation36_spill]] %s6136_s13 }
   0xa   :  { %6160 = sst [smem:[#allocation37_spill]] %s6138_s15 }
   0xb   :  { %6161 = sst [smem:[#allocation38_spill]] %s6139_s16 }
   0xc   :  { %6162 = sst [smem:[#allocation39_spill]] %s6140_s17 }
   0xd   :  { %6163 = sst [smem:[#allocation40_spill]] %s6141_s18 }
   0xe   :  { %6164 = sst [smem:[#allocation41_spill]] %s6142_s19 }
   0xf   :  { %24 = vsyncpa [#allocation4], 0 }
  0x10   :  { %26 = vsyncpa [#allocation4 + $0x1], 0 }
  0x11   :  { %27 = vsyncpa [#allocation7], 0 }
  0x12   :  { %28 = vsyncpa [#allocation10], 0 }
  0x13   :  { %29 = vsyncpa [#allocation13], 0 }
  0x14   :  { %30 = vsyncpa [#allocation16], 0 }
  0x15   :  { %31 = vsyncpa [#allocation19], 0 }
  0x16   :  { %32 = vsyncpa [#allocation5], 0 }
  0x17   :  { %34 = vsyncpa [#allocation5 + $0x1], 0  ;;  %s5284_s0 = smov 0   ;;  %s5286_s30 = smov 0  }
  0x18   :  { %s5288_s20 = smov 0   ;;  %s5290_s21 = smov 0  }
  0x19 LB: > { %s5169_s1 = smov [#allocation6]   ;;  %s5305_s2 = sadd.s32 4294967295, %s5167_s21   ;;  %s5167_s21 = sphi %s5290_s21, %s6206_s21   ;;  %s5163_s20 = sphi %s5288_s20, %s6205_s20   ;;  %s5159_s30 = sphi %s5286_s30, %s6204_s30   ;;  %s5155_s0 = sphi %s5284_s0, %s6203_s0  }
  0x1a   : > { %s487_s22 = sshll.u32 %s5169_s1, 4  ;;  %p3279_p0 = scmp.ge.s32.totalorder %s5167_s21, 1  ;;  %s488_s22 = int_to_ptr.vmem [resolvable:$true] %s487_s22 }
  0x1b   : > { %p6147_p1 = scmp.eq.s32.totalorder %s5305_s2, 0  ;;  %p475_p2 = scmp.lt.s32.totalorder %s5167_s21, 3 }
  0x1c   : > { %s5170_s24 = smov [#allocation9]   ;;  %s5171_s26 = smov [#allocation12]  }
  0x1d   : > { %p5310_p3 = pnand %p3279_p0, %p475_p2  ;;  %s519_s25 = sshll.u32 %s5170_s24, 4  ;;  %s5323_s25 = int_to_ptr.vmem [resolvable:$true] %s519_s25 }
  0x1e   : > { %s551_s27 = sshll.u32 %s5171_s26, 4  ;;  %s4832_s29 = scalar_lea.vmem %s488_s22, 6144  ;;  %s5325_s27 = int_to_ptr.vmem [resolvable:$true] %s551_s27 }
  0x1f   : > { %s6165_s23 = scalar_select %p5310_p3, 1, 0 }
  0x20   : > { %p4718_p5 = pneg %p5310_p3  ;;  %p4833_p8 = scmp.ne.s32.totalorder %s488_s22, %s4832_s29 }
  0x21   : > { %p4840_p11 = scmp.lt.s32.totalorder %s488_s22, %s488_s22  ;;  %p4841_p12 = scmp.lt.s32.totalorder %s4832_s29, %s4832_s29 }
  0x22   : > { %p5319_p6 = pnand %p4718_p5, %p6147_p1 }
  0x23   : > { %p4842_p13 = por %p4841_p12, %p4840_p11 }
  0x24   : > { %p5329_p7 = pneg %p5319_p6 }
  0x26   : > { %p4835_p9 = pnand %p4833_p8, %p5329_p7 }
  0x28   : > { %p4836_p10 = pneg %p4835_p9 }
  0x2a   : > { %p4843_p0 = pnand %p4842_p13, %p4836_p10 }
  0x2c   : > { %4846 = shalt.err (!%p4843_p0)
}
  0x2d   : > { %s6145_s1 = smov 128   ;;  %s6146_s24 = smov 8  }
  0x2e   : > { %s6168_s18 = sld [smem:[#allocation29_spill]]  ;;  %s4858_s16 = scalar_lea.vmem %s5323_s25, 2048 }
  0x2f   : > { %p4859_p2 = scmp.ne.s32.totalorder %s5323_s25, %s4858_s16  ;;  %p4866_p9 = scmp.lt.s32.totalorder %s5323_s25, %s5323_s25 }
  0x30   : > { %p4867_p10 = scmp.lt.s32.totalorder %s4858_s16, %s4858_s16 }
  0x31   : > { %p4861_p5 = pnand %p4859_p2, %p5329_p7 }
  0x32   : > { %p4868_p11 = por %p4867_p10, %p4866_p9 }
  0x33   : > { %p4862_p8 = pneg %p4861_p5 }
  0x34   : > { %4721 = dma.hbm_to_vmem [thread:$0]  (!%p5319_p6), %s6168_s18, 6144, %s488_s22, [#allocation7], %s6145_s1, %s6145_s1, %s6146_s24  }
  0x35   : > { %p4869_p12 = pnand %p4868_p11, %p4862_p8 }
  0x37   : > { %4872 = shalt.err (!%p4869_p12)
}
  0x38   : > { %s6169_s5 = sld [smem:[#allocation32_spill]]  ;;  %s4884_s18 = scalar_lea.vmem %s5325_s27, 6144 }
  0x39   : > { %p4885_p13 = scmp.ne.s32.totalorder %s5325_s27, %s4884_s18  ;;  %p4892_p5 = scmp.lt.s32.totalorder %s5325_s27, %s5325_s27 }
  0x3a   : > { %p4893_p8 = scmp.lt.s32.totalorder %s4884_s18, %s4884_s18 }
  0x3b   : > { %p4887_p0 = pnand %p4885_p13, %p5329_p7 }
  0x3c   : > { %p4894_p9 = por %p4893_p8, %p4892_p5 }
  0x3d   : > { %p4888_p2 = pneg %p4887_p0 }
  0x3e   : > { %4727 = dma.hbm_to_vmem [thread:$0]  (!%p5319_p6), %s6169_s5, 2048, %s5323_s25, [#allocation10], %s6145_s1, %s6145_s1, %s6146_s24  }
  0x3f   : > { %p4895_p10 = pnand %p4894_p9, %p4888_p2 }
  0x41   : > { %4898 = shalt.err (!%p4895_p10)
}
  0x42   : > { %s6170_s9 = sld [smem:[#allocation34_spill]]  ;;  %s5174_s25 = smov [#allocation15]  }
  0x43   : > { %s583_s26 = sshll.u32 %s5174_s25, 4  ;;  %s5175_s29 = smov [#allocation8]   ;;  %s584_s26 = int_to_ptr.vmem [resolvable:$true] %s583_s26 }
  0x44   : > { %s503_s19 = sshll.u32 %s5175_s29, 4  ;;  %s4910_s18 = scalar_lea.vmem %s584_s26, 6144  ;;  %s504_s19 = int_to_ptr.vmem [resolvable:$true] %s503_s19 }
  0x45   : > { %p4911_p11 = scmp.ne.s32.totalorder %s584_s26, %s4910_s18  ;;  %p4918_p0 = scmp.lt.s32.totalorder %s584_s26, %s584_s26 }
  0x46   : > { %p4919_p2 = scmp.lt.s32.totalorder %s4910_s18, %s4910_s18 }
  0x47   : > { %p4913_p12 = pnand %p4911_p11, %p5329_p7 }
  0x48   : > { %4733 = dma.hbm_to_vmem [thread:$0]  (!%p5319_p6), %s6170_s9, 6144, %s5325_s27, [#allocation13], %s6145_s1, %s6145_s1, %s6146_s24  }
  0x49   : > { %p4914_p13 = pneg %p4913_p12  ;;  %p4920_p5 = por %p4919_p2, %p4918_p0 }
  0x4b   : > { %p4921_p8 = pnand %p4920_p5, %p4914_p13 }
  0x4d   : > { %4924 = shalt.err (!%p4921_p8)
}
  0x4e   : > { %s6171_s13 = sld [smem:[#allocation36_spill]]  ;;  %s4936_s22 = scalar_lea.vmem %s504_s19, 6144 }
  0x4f   : > { %p4937_p9 = scmp.ne.s32.totalorder %s504_s19, %s4936_s22  ;;  %p4944_p12 = scmp.lt.s32.totalorder %s504_s19, %s504_s19 }
  0x50   : > { %p4945_p0 = scmp.lt.s32.totalorder %s4936_s22, %s4936_s22 }
  0x51   : > { %p4939_p10 = pnand %p4937_p9, %p5329_p7 }
  0x52   : > { %p4946_p13 = por %p4945_p0, %p4944_p12 }
  0x53   : > { %p4940_p11 = pneg %p4939_p10 }
  0x54   : > { %4739 = dma.hbm_to_vmem [thread:$0]  (!%p5319_p6), %s6171_s13, 6144, %s584_s26, [#allocation16], %s6145_s1, %s6145_s1, %s6146_s24  }
  0x55   : > { %p4947_p2 = pnand %p4946_p13, %p4940_p11 }
  0x57   : > { %4950 = shalt.err (!%p4947_p2)
}
  0x58   : > { %s6172_s18 = sld [smem:[#allocation31_spill]]  ;;  %s5176_s26 = smov [#allocation11]  }
  0x59   : > { %s535_s27 = sshll.u32 %s5176_s26, 4  ;;  %s5177_s16 = smov [#allocation14]   ;;  %s536_s27 = int_to_ptr.vmem [resolvable:$true] %s535_s27 }
  0x5a   : > { %s567_s5 = sshll.u32 %s5177_s16, 4  ;;  %s4962_s9 = scalar_lea.vmem %s536_s27, 6144  ;;  %s568_s5 = int_to_ptr.vmem [resolvable:$true] %s567_s5 }
  0x5b   : > { %p4963_p5 = scmp.ne.s32.totalorder %s536_s27, %s4962_s9  ;;  %p4970_p10 = scmp.lt.s32.totalorder %s536_s27, %s536_s27 }
  0x5c   : > { %p4971_p11 = scmp.lt.s32.totalorder %s4962_s9, %s4962_s9 }
  0x5d   : > { %p4965_p8 = pnand %p4963_p5, %p5329_p7 }
  0x5e   : > { %4724 = dma.hbm_to_vmem [thread:$0]  (!%p5319_p6), %s6172_s18, 6144, %s504_s19, [#allocation7], %s6145_s1, %s6145_s1, %s6146_s24  }
  0x5f   : > { %p4966_p9 = pneg %p4965_p8  ;;  %p4972_p12 = por %p4971_p11, %p4970_p10 }
  0x61   : > { %p4973_p0 = pnand %p4972_p12, %p4966_p9 }
  0x63   : > { %4976 = shalt.err (!%p4973_p0)
}
  0x64   : > { %s6173_s7 = sld [smem:[#allocation33_spill]]  ;;  %s4988_s25 = scalar_lea.vmem %s568_s5, 6144 }
  0x65   : > { %p4989_p13 = scmp.ne.s32.totalorder %s568_s5, %s4988_s25  ;;  %p4996_p8 = scmp.lt.s32.totalorder %s568_s5, %s568_s5 }
  0x66   : > { %p4997_p10 = scmp.lt.s32.totalorder %s4988_s25, %s4988_s25 }
  0x67   : > { %p4991_p2 = pnand %p4989_p13, %p5329_p7 }
  0x68   : > { %p4998_p9 = por %p4997_p10, %p4996_p8 }
  0x69   : > { %p4992_p5 = pneg %p4991_p2 }
  0x6a   : > { %4730 = dma.hbm_to_vmem [thread:$0]  (!%p5319_p6), %s6173_s7, 6144, %s536_s27, [#allocation10], %s6145_s1, %s6145_s1, %s6146_s24  }
  0x6b   : > { %p4999_p11 = pnand %p4998_p9, %p4992_p5 }
  0x6d   : > { %5002 = shalt.err (!%p4999_p11)
}
  0x6e   : > { %s6174_s11 = sld [smem:[#allocation35_spill]]  ;;  %s5178_s18 = smov [#allocation17]  }
  0x6f   : > { %s599_s26 = sshll.u32 %s5178_s18, 4  ;;  %s5179_s27 = smov [#allocation18]   ;;  %s600_s26 = int_to_ptr.vmem [resolvable:$true] %s599_s26 }
  0x70   : > { %s615_s16 = sshll.u32 %s5179_s27, 4  ;;  %s5014_s19 = scalar_lea.vmem %s600_s26, 2048  ;;  %s616_s16 = int_to_ptr.vmem [resolvable:$true] %s615_s16 }
  0x71   : > { %p5015_p12 = scmp.ne.s32.totalorder %s600_s26, %s5014_s19  ;;  %p5022_p2 = scmp.lt.s32.totalorder %s600_s26, %s600_s26 }
  0x72   : > { %p5023_p5 = scmp.lt.s32.totalorder %s5014_s19, %s5014_s19 }
  0x73   : > { %p5017_p0 = pnand %p5015_p12, %p5329_p7 }
  0x74   : > { %4736 = dma.hbm_to_vmem [thread:$0]  (!%p5319_p6), %s6174_s11, 6144, %s568_s5, [#allocation13], %s6145_s1, %s6145_s1, %s6146_s24  }
  0x75   : > { %p5018_p13 = pneg %p5017_p0  ;;  %p5024_p8 = por %p5023_p5, %p5022_p2 }
  0x77   : > { %p5025_p10 = pnand %p5024_p8, %p5018_p13 }
  0x79   : > { %5028 = shalt.err (!%p5025_p10)
}
  0x7a   : > { %s6175_s15 = sld [smem:[#allocation37_spill]]  ;;  %s5040_s25 = scalar_lea.vmem %s616_s16, 2048 }
  0x7b   : > { %p5041_p9 = scmp.ne.s32.totalorder %s616_s16, %s5040_s25  ;;  %p5048_p0 = scmp.lt.s32.totalorder %s616_s16, %s616_s16 }
  0x7c   : > { %p5049_p2 = scmp.lt.s32.totalorder %s5040_s25, %s5040_s25 }
  0x7d   : > { %p5043_p11 = pnand %p5041_p9, %p5329_p7 }
  0x7e   : > { %p5050_p13 = por %p5049_p2, %p5048_p0 }
  0x7f   : > { %p5044_p12 = pneg %p5043_p11 }
  0x80   : > { %4742 = dma.hbm_to_vmem [thread:$0]  (!%p5319_p6), %s6175_s15, 2048, %s600_s26, [#allocation16], %s6145_s1, %s6145_s1, %s6146_s24  }
  0x81   : > { %p5051_p5 = pnand %p5050_p13, %p5044_p12 }
  0x83   : > { %5054 = shalt.err (!%p5051_p5)
}
  0x84   : > { %s6176_s17 = sld [smem:[#allocation39_spill]]  ;;  %s3278_s3 = sadd.s32 4294967294, %s5167_s21  }
  0x85   : > { %s5435_s28 = sadd.s32 1, %s5167_s21   ;;  %s47_s18 = sadd.s32 1, %s5163_s20 }
  0x86   : > { %s44_s26 = ssub.s32 %s5167_s21, %s5435_s28  ;;  %p54_p7 = scmp.ne.s32.totalorder %s5163_s20, %s5159_s30 }
  0x87   : > { %p45_p8 = scmp.eq.s32.totalorder %s44_s26, 0  ;;  %p55_p10 = scmp.eq.s32.totalorder %s5167_s21, 0 }
  0x88   : > { %p60_p9 = scmp.ne.s32.totalorder %s5159_s30, %s5155_s0  ;;  %p462_p11 = scmp.eq.s32.totalorder %s5305_s2, 1 }
  0x89   : > { %s5447_s27 = scalar_select %p45_p8, %s5163_s20, %s47_s18  }
  0x8a   : > { %4745 = dma.hbm_to_vmem [thread:$0]  (!%p5319_p6), %s6176_s17, 2048, %s616_s16, [#allocation19], %s6145_s1, %s6145_s1, %s6146_s24  }
  0x8b   : > { %p56_p12 = por %p55_p10, %p54_p7  ;;  %p5451_p0 = por %p6147_p1, %p60_p9 }
  0x8c   : > { %p5455_p6 = por %p462_p11, %p54_p7  ;;  %p468_p2 = scmp.eq.s32.totalorder %s3278_s3, 1 }
  0x8d   : > { %s6177_s19 = scalar_select %p5451_p0, 1, 0 }
  0x8e   : > { %s6178_s16 = scalar_select %p5455_p6, 1, 0 }
  0x8f   : > { %p4763_p13 = scmp.lt.s32.totalorder %s5167_s21, 2  ;;  %s632_s5 = sand.u32 1, %s5163_s20  }
  0x90   : > { %p5461_p5 = por %p468_p2, %p60_p9  ;;  %s3290_s25 = sshll.u32 %s632_s5, 4 }
  0x91   : > { %s3312_s9 = sshll.u32 %s5167_s21, 8  ;;  %s6180_s26 = sld [smem:[#allocation28_spill]] }
  0x92   : > { %s6179_s22 = scalar_select %p5461_p5, 1, 0 }
  0x93   : > { %s636_s24 = scalar_lea.vmem [#allocation3], %s3290_s25  ;;  %p5471_p7 = pnand %p4763_p13, %p56_p12 }
  0x94   : > { %s643_s7 = sshll.u32 %s636_s24, 4  ;;  %s5477_s11 = scalar_lea.sflag [#allocation4], %s632_s5  ;;  %s5475_s7 = int_to_ptr.vmem [resolvable:$true] %s643_s7 }
  0x95   : > { %p5057_p10 = pneg %p5471_p7 }
  0x97   : > { %s5469_s1 = scalar_lea.hbm %s6180_s26, %s3312_s9  ;;  %s5060_s25 = scalar_lea.hbm %s6180_s26, 512 }
  0x98   : > { %s5055_s13 = scalar_lea.hbm %s5469_s1, 256  ;;  %p5061_p12 = scmp.lt.s32.totalorder %s5469_s1, %s6180_s26 }
  0x99   : > { %p5056_p8 = scmp.ne.s32.totalorder %s5469_s1, %s5055_s13  ;;  %p5062_p2 = scmp.lt.s32.totalorder %s5060_s25, %s5055_s13 }
  0x9b   : > { %p5058_p9 = pnand %p5057_p10, %p5056_p8  ;;  %p5063_p13 = por %p5062_p2, %p5061_p12 }
  0x9d   : > { %p5059_p11 = pneg %p5058_p9 }
  0x9f   : > { %p5064_p4 = pnand %p5063_p13, %p5059_p11 }
  0xa1   : > { %5067 = shalt.err (!%p5064_p4)
}
  0xa2   : > { %s5068_s5 = scalar_lea.vmem %s5475_s7, 256  ;;  %s5180_s15 = smov [#allocation3]  }
  0xa3   : > { %p5069_p1 = scmp.ne.s32.totalorder %s5475_s7, %s5068_s5  ;;  %s5073_s17 = sshll.u32 %s5180_s15, 4  ;;  %s5074_s17 = int_to_ptr.vmem [resolvable:$false] %s5073_s17 }
  0xa4   : > { %s5075_s9 = scalar_lea.vmem %s5074_s17, 512  ;;  %p5076_p9 = scmp.lt.s32.totalorder %s5475_s7, %s5074_s17 }
  0xa5   : > { %p5071_p5 = pnand %p5069_p1, %p5057_p10  ;;  %p5077_p6 = scmp.lt.s32.totalorder %s5075_s9, %s5068_s5 }
  0xa7   : > { %p5072_p8 = pneg %p5071_p5  ;;  %p5078_p0 = por %p5077_p6, %p5076_p9 }
  0xa9   : > { %p5079_p3 = pnand %p5078_p0, %p5072_p8 }
  0xab   : > { %5082 = shalt.err (!%p5079_p3)
}
  0xac   : > { %s6182_s13 = smov 8   ;;  %s6183_s29 = smov 128  }
  0xad   : > { %4749 = dma.hbm_to_vmem [thread:$0]  (!%p5471_p7), %s5469_s1, 256, %s5475_s7, %s5477_s11, %s6183_s29, %s6183_s29, %s6182_s13  }
  0xae   : > { %p6184_p1 = scmp.ne.s32.totalorder %s6165_s23, 0 }
  0xaf   : > { %s5504_s15 = sand.u32 (!%p6184_p1), 1, %s5159_s30   ;;  %p6185_p3 = scmp.ne.s32.totalorder (!%p6184_p1), %s6177_s19, 0 }
  0xb0   : > { %655 = sbr.rel (%p6184_p1) target bundleno = 1896 (0x768), region = 96  ;;  %s3294_s17 = sshll.u32 (!%p6184_p1), %s5504_s15, 4 }
  0xb1   : > { %s658_s25 = scalar_lea.sflag (!%p6184_p1), [#allocation4], %s5504_s15  ;;  %s5508_s24 = scalar_lea.vmem (!%p6184_p1), [#allocation3], %s3294_s17 }
  0xb5   : > { %5126 = dma.done.wait (%p6185_p3), %s658_s25, 256  }
  0xb6   : > { %5128 = vsyncadd (%p6185_p3), %s658_s25, 4294967040  ;;  %p6186_p4 = scmp.eq.s32.totalorder %s5305_s2, 0 }
  0xb8   : > { %5130 = dma.done.wait (%p6186_p4), [#allocation7], 12288   ;;  %p6187_p0 = pmov %p6186_p4 }
  0xba   : > { %5132 = vsyncadd (%p6187_p0), [#allocation7], 4294955008  ;;  %p6188_p6 = pmov %p6187_p0 }
  0xbb   : > { %p6189_p5 = pmov %p6187_p0 }
  0xbc   : > { %5134 = dma.done.wait (%p6188_p6), [#allocation10], 8192  }
  0xbd   : > { %5136 = vsyncadd (%p6189_p5), [#allocation10], 4294959104  ;;  %p6190_p7 = pmov %p6187_p0 }
  0xbe   : > { %p6191_p10 = pmov %p6187_p0 }
  0xbf   : > { %5138 = dma.done.wait (%p6190_p7), [#allocation13], 12288  }
  0xc0   : > { %5140 = vsyncadd (%p6191_p10), [#allocation13], 4294955008  ;;  %p6192_p11 = pmov %p6187_p0 }
  0xc1   : > { %p6193_p12 = pmov %p6187_p0 }
  0xc2   : > { %5142 = dma.done.wait (%p6192_p11), [#allocation16], 8192  }
  0xc3   : > { %5144 = vsyncadd (%p6193_p12), [#allocation16], 4294959104  ;;  %p6194_p2 = pmov %p6187_p0 }
  0xc4   : > { %p6195_p13 = pmov %p6187_p0 }
  0xc5   : > { %5146 = dma.done.wait (%p6194_p2), [#allocation19], 2048  }
  0xc6   : > { %5148 = vsyncadd (%p6195_p13), [#allocation19], 4294965248  ;;  %v5181_v0 = vmov 0.0   ;;  %v774_v1 = vld [vmem:[#allocation6 + $0x78] sm:$0xff]  ;;  %v773_v2 = vld [vmem:[#allocation6 + $0x70] sm:$0xff]  ;;  %s6196_s23 = sld [smem:[#allocation30_spill]] }
  0xc7   : > { %751 = vst [vmem:[#allocation2] sm:$0xff] %v5181_v0  ;;  %v876_v3 = vld [vmem:[#allocation6 + $0xf8] sm:$0xff]  ;;  %3768 = vmatprep.subr.mxu0 %v774_v1  ;;  %v875_v4 = vld [vmem:[#allocation6 + $0xf0] sm:$0xff]  ;;  %v772_v5 = vld [vmem:[#allocation6 + $0x68] sm:$0xff]  ;;  %vm5182_vm0 = vmmov 0   ;;  %s6197_s1 = sld [smem:[#allocation38_spill]] }
  0xc8   : > { %3803 = vmatprep.subr.mxu1 %v876_v3  ;;  %3769 = vmatpush3.msra.mxu0 %v774_v1  ;;  %v874_v6 = vld [vmem:[#allocation6 + $0xe8] sm:$0xff]  ;;  %v771_v7 = vld [vmem:[#allocation6 + $0x60] sm:$0xff]  ;;  %v770_v9 = vld [vmem:[#allocation6 + $0x58] sm:$0xff]  ;;  %s6198_s18 = sld [smem:[#allocation40_spill]]  ;;  %s3309_s5 = sshll.u32 %s5305_s2, 4 }
  0xc9   : > { %3804 = vmatpush3.msra.mxu1 %v876_v3  ;;  %3770 = vmatprep.subr.mxu0 %v773_v2  ;;  %v873_v8 = vld [vmem:[#allocation6 + $0xe0] sm:$0xff]  ;;  %v872_v10 = vld [vmem:[#allocation6 + $0xd8] sm:$0xff]  ;;  %v769_v11 = vld [vmem:[#allocation6 + $0x50] sm:$0xff]  ;;  %s750_s9 = scalar_lea.vmem [#allocation20], %s5504_s15  ;;  %s6199_s25 = sld [smem:[#allocation41_spill]] }
  0xca   : > { %3805 = vmatprep.subr.mxu1 %v875_v4  ;;  %3771 = vmatpush3.msra.mxu0 %v773_v2  ;;  %v871_v12 = vld [vmem:[#allocation6 + $0xd0] sm:$0xff]  ;;  %v768_v13 = vld [vmem:[#allocation6 + $0x48] sm:$0xff]  ;;  %v767_v17 = vld [vmem:[#allocation6 + $0x40] sm:$0xff]  ;;  %s3126_s13 = sshll.u32 %s750_s9, 4  ;;  %s3114_s7 = scalar_lea.sflag [#allocation5], %s5504_s15  ;;  %s3127_s13 = int_to_ptr.vmem [resolvable:$true] %s3126_s13 }
  0xcb   : > { %3806 = vmatpush3.msra.mxu1 %v875_v4  ;;  %3772 = vmatprep.subr.mxu0 %v772_v5  ;;  %v870_v14 = vld [vmem:[#allocation6 + $0xc8] sm:$0xff]  ;;  %v5535_v15 = vld [vmem:[%s5508_s24] sm:$0xff]  ;;  %v766_v19 = vld [vmem:[#allocation6 + $0x38] sm:$0xff]  ;;  %s5083_s11 = scalar_lea.vmem %s3127_s13, 16  ;;  %p6200_p9 = scmp.ne.s32.totalorder %s6178_s16, 0 }
  0xcc   : > { %3807 = vmatprep.subr.mxu1 %v874_v6  ;;  %3773 = vmatpush3.msra.mxu0 %v772_v5  ;;  %v5538_v16 = vld [vmem:[%s5508_s24 + $0x8] sm:$0xff]  ;;  %754 = vst [vmem:[#allocation2 + $0x8] sm:$0xff] %v5535_v15  ;;  %v869_v18 = vld [vmem:[#allocation6 + $0xc0] sm:$0xff]  ;;  %v765_v21 = vld [vmem:[#allocation6 + $0x30] sm:$0xff]  ;;  %p5084_p8 = scmp.ne.s32.totalorder %s3127_s13, %s5083_s11 }
  0xcd   : > { %3808 = vmatpush3.msra.mxu1 %v874_v6  ;;  %3774 = vmatprep.subr.mxu0 %v771_v7  ;;  %755 = vst [vmem:[#allocation2 + $0x10] sm:$0xff] %v5538_v16  ;;  %v868_v20 = vld [vmem:[#allocation6 + $0xb8] sm:$0xff]  ;;  %v867_v22 = vld [vmem:[#allocation6 + $0xb0] sm:$0xff]  ;;  %v764_v23 = vld [vmem:[#allocation6 + $0x28] sm:$0xff] }
  0xce   : > { %3809 = vmatprep.subr.mxu1 %v873_v8  ;;  %3775 = vmatpush3.msra.mxu0 %v771_v7  ;;  %v866_v24 = vld [vmem:[#allocation6 + $0xa8] sm:$0xff]  ;;  %v763_v25 = vld [vmem:[#allocation6 + $0x20] sm:$0xff]  ;;  %v762_v27 = vld [vmem:[#allocation6 + $0x18] sm:$0xff]  ;;  %p5085_p1 = pnand %p5084_p8, %p6200_p9 }
  0xcf   : > { %3810 = vmatpush3.msra.mxu1 %v873_v8  ;;  %3776 = vmatprep.subr.mxu0 %v770_v9  ;;  %v865_v26 = vld [vmem:[#allocation6 + $0xa0] sm:$0xff]  ;;  %v864_v28 = vld [vmem:[#allocation6 + $0x98] sm:$0xff]  ;;  %v761_v29 = vld [vmem:[#allocation6 + $0x10] sm:$0xff]  ;;  %s6086_s24 = scalar_lea.hbm %s6199_s25, %s3309_s5 }
  0xd0   : > { %3811 = vmatprep.subr.mxu1 %v872_v10  ;;  %3777 = vmatpush3.msra.mxu0 %v770_v9  ;;  %v863_v30 = vld [vmem:[#allocation6 + $0x90] sm:$0xff]  ;;  %v760_v31 = vld [vmem:[#allocation6 + $0x8] sm:$0xff]  ;;  %v759_v34 = vld [vmem:[#allocation6] sm:$0xff]  ;;  %p5086_p3 = pneg %p5085_p1 }
  0xd1   : > { %3812 = vmatpush3.msra.mxu1 %v872_v10  ;;  %3778 = vmatprep.subr.mxu0 %v769_v11  ;;  %v862_v32 = vld [vmem:[#allocation6 + $0x88] sm:$0xff]  ;;  %v861_v35 = vld [vmem:[#allocation6 + $0x80] sm:$0xff]  ;;  %v970_v37 = vld [vmem:[#allocation6 + $0x178] sm:$0xff] }
  0xd2   : > { %3813 = vmatprep.subr.mxu1 %v871_v12  ;;  %3779 = vmatpush3.msra.mxu0 %v769_v11  ;;  %v969_v40 = vld [vmem:[#allocation6 + $0x170] sm:$0xff]  ;;  %v968_v41 = vld [vmem:[#allocation6 + $0x168] sm:$0xff]  ;;  %v967_v42 = vld [vmem:[#allocation6 + $0x160] sm:$0xff] }
  0xd3   : > { %3814 = vmatpush3.msra.mxu1 %v871_v12  ;;  %3780 = vmatprep.subr.mxu0 %v768_v13  ;;  %v757_v33 = vld [vmem:[#allocation2 + $0x6] sm:$0xff]  ;;  %v966_v43 = vld [vmem:[#allocation6 + $0x158] sm:$0xff]  ;;  %v963_v46 = vld [vmem:[#allocation6 + $0x140] sm:$0xff] }
  0xd4   : > { %3815 = vmatprep.subr.mxu1 %v870_v14  ;;  %3781 = vmatpush3.msra.mxu0 %v768_v13  ;;  %v758_v36 = vld [vmem:[#allocation2 + $0xe] sm:$0xff]  ;;  %v964_v45 = vld [vmem:[#allocation6 + $0x148] sm:$0xff]  ;;  %v959_v50 = vld [vmem:[#allocation6 + $0x120] sm:$0xff] }
  0xd5   : > { %3816 = vmatpush3.msra.mxu1 %v870_v14  ;;  %3782 = vmatprep.subr.mxu0 %v767_v17  ;;  %v858_v38 = vld [vmem:[#allocation2 + $0x7] sm:$0xff]  ;;  %v859_v39 = vld [vmem:[#allocation2 + $0xf] sm:$0xff]  ;;  %v955_v54 = vld [vmem:[#allocation6 + $0x100] sm:$0xff] }
  0xd6   : > { %3817 = vmatprep.subr.mxu1 %v869_v18  ;;  %3783 = vmatpush3.msra.mxu0 %v767_v17  ;;  %v965_v44 = vld [vmem:[#allocation6 + $0x150] sm:$0xff]  ;;  %v962_v47 = vld [vmem:[#allocation6 + $0x138] sm:$0xff]  ;;  %v960_v49 = vld [vmem:[#allocation6 + $0x128] sm:$0xff] }
  0xd7   : > { %3818 = vmatpush3.msra.mxu1 %v869_v18  ;;  %3784 = vmatprep.subr.mxu0 %v766_v19  ;;  %v961_v48 = vld [vmem:[#allocation6 + $0x130] sm:$0xff]  ;;  %v958_v51 = vld [vmem:[#allocation6 + $0x118] sm:$0xff]  ;;  %v956_v53 = vld [vmem:[#allocation6 + $0x108] sm:$0xff] }
  0xd8   : > { %3819 = vmatprep.subr.mxu1 %v868_v20  ;;  %3785 = vmatpush3.msra.mxu0 %v766_v19  ;;  %v957_v52 = vld [vmem:[#allocation6 + $0x110] sm:$0xff]  ;;  %v1070_v55 = vld [vmem:[#allocation8 + $0x78] sm:$0xff]  ;;  %v1068_v59 = vld [vmem:[#allocation8 + $0x68] sm:$0xff] }
  0xd9   : > { %3820 = vmatpush3.msra.mxu1 %v868_v20  ;;  %3786 = vmatprep.subr.mxu0 %v765_v21  ;;  %v1172_v56 = vld [vmem:[#allocation8 + $0xf8] sm:$0xff]  ;;  %v1069_v57 = vld [vmem:[#allocation8 + $0x70] sm:$0xff]  ;;  %v1170_v60 = vld [vmem:[#allocation8 + $0xe8] sm:$0xff] }
  0xda   : > { %3821 = vmatprep.subr.mxu1 %v867_v22  ;;  %3787 = vmatpush3.msra.mxu0 %v765_v21  ;;  %v1171_v58 = vld [vmem:[#allocation8 + $0xf0] sm:$0xff]  ;;  %v1067_v61 = vld [vmem:[#allocation8 + $0x60] sm:$0xff]  ;;  %v1066_v63 = vld [vmem:[#allocation8 + $0x58] sm:$0xff] }
  0xdb   : > { %3822 = vmatpush3.msra.mxu1 %v867_v22  ;;  %3788 = vmatprep.subr.mxu0 %v764_v23  ;;  %v1169_v62 = vld [vmem:[#allocation8 + $0xe0] sm:$0xff]  ;;  %v1168_v0 = vld [vmem:[#allocation8 + $0xd8] sm:$0xff]  ;;  %v1065_v1 = vld [vmem:[#allocation8 + $0x50] sm:$0xff] }
  0xdc   : > { %3823 = vmatprep.subr.mxu1 %v866_v24  ;;  %3789 = vmatpush3.msra.mxu0 %v764_v23  ;;  %v1167_v2 = vld [vmem:[#allocation8 + $0xd0] sm:$0xff]  ;;  %v1064_v3 = vld [vmem:[#allocation8 + $0x48] sm:$0xff]  ;;  %v1063_v5 = vld [vmem:[#allocation8 + $0x40] sm:$0xff] }
  0xdd   : > { %3824 = vmatpush3.msra.mxu1 %v866_v24  ;;  %3790 = vmatprep.subr.mxu0 %v763_v25  ;;  %v1166_v4 = vld [vmem:[#allocation8 + $0xc8] sm:$0xff]  ;;  %v1165_v6 = vld [vmem:[#allocation8 + $0xc0] sm:$0xff]  ;;  %v1062_v7 = vld [vmem:[#allocation8 + $0x38] sm:$0xff] }
  0xde   : > { %3825 = vmatprep.subr.mxu1 %v865_v26  ;;  %3791 = vmatpush3.msra.mxu0 %v763_v25  ;;  %v1164_v8 = vld [vmem:[#allocation8 + $0xb8] sm:$0xff]  ;;  %v1061_v9 = vld [vmem:[#allocation8 + $0x30] sm:$0xff]  ;;  %v1060_v11 = vld [vmem:[#allocation8 + $0x28] sm:$0xff] }
  0xdf   : > { %3826 = vmatpush3.msra.mxu1 %v865_v26  ;;  %3792 = vmatprep.subr.mxu0 %v762_v27  ;;  %v1163_v10 = vld [vmem:[#allocation8 + $0xb0] sm:$0xff]  ;;  %v1162_v12 = vld [vmem:[#allocation8 + $0xa8] sm:$0xff]  ;;  %v1059_v13 = vld [vmem:[#allocation8 + $0x20] sm:$0xff] }
  0xe0   : > { %3827 = vmatprep.subr.mxu1 %v864_v28  ;;  %3793 = vmatpush3.msra.mxu0 %v762_v27  ;;  %v1161_v14 = vld [vmem:[#allocation8 + $0xa0] sm:$0xff]  ;;  %v1058_v17 = vld [vmem:[#allocation8 + $0x18] sm:$0xff]  ;;  %v1057_v19 = vld [vmem:[#allocation8 + $0x10] sm:$0xff] }
  0xe1   : > { %3828 = vmatpush3.msra.mxu1 %v864_v28  ;;  %3794 = vmatprep.subr.mxu0 %v761_v29  ;;  %v1160_v18 = vld [vmem:[#allocation8 + $0x98] sm:$0xff]  ;;  %v1159_v20 = vld [vmem:[#allocation8 + $0x90] sm:$0xff]  ;;  %v1056_v21 = vld [vmem:[#allocation8 + $0x8] sm:$0xff] }
  0xe2   : > { %3829 = vmatprep.subr.mxu1 %v863_v30  ;;  %3795 = vmatpush3.msra.mxu0 %v761_v29  ;;  %v1158_v22 = vld [vmem:[#allocation8 + $0x88] sm:$0xff]  ;;  %v1055_v23 = vld [vmem:[#allocation8] sm:$0xff]  ;;  %v1266_v25 = vld [vmem:[#allocation8 + $0x178] sm:$0xff] }
  0xe3   : > { %3830 = vmatpush3.msra.mxu1 %v863_v30  ;;  %3796 = vmatprep.subr.mxu0 %v760_v31  ;;  %v1157_v24 = vld [vmem:[#allocation8 + $0x80] sm:$0xff]  ;;  %v1359_v26 = vld [vmem:[#allocation9 + $0x78] sm:$0xff]  ;;  %v3304_v28 = vld [vmem:[%s6196_s23] ss:$0 sm:$0xff]  ;;  %s5183_s23 = smov [#allocation20]  }
  0xe4   : > { %3831 = vmatprep.subr.mxu1 %v862_v32  ;;  %3797 = vmatpush3.msra.mxu0 %v760_v31  ;;  %s5087_s2 = sshll.u32 %s5183_s23, 4  ;;  %s5088_s2 = int_to_ptr.vmem [resolvable:$false] %s5087_s2 }
  0xe5   : > { %3800 = vmatprep.mubr.f32.mxu0 %v757_v33  ;;  %3798 = vmatprep.subr.mxu0 %v759_v34  ;;  %p5090_p4 = scmp.lt.s32.totalorder %s3127_s13, %s5088_s2 }
  0xe6   : > { %3832 = vmatpush3.msra.mxu1 %v862_v32  ;;  %3799 = vmatpush3.msra.mxu0 %v759_v34 }
  0xe7   : > { %3833 = vmatprep.subr.mxu1 %v861_v35  ;;  %3801 = vmatmul.mubr.f32.vlgmr.msra.gmra.mxu0 %v758_v36 }
  0xe8   : > { %3838 = vmatprep.subr.mxu0 %v970_v37  ;;  %3834 = vmatpush3.msra.mxu1 %v861_v35 }
  0xe9   : > { %3835 = vmatprep.mubr.f32.mxu1 %v858_v38  ;;  %3839 = vmatpush3.msra.mxu0 %v970_v37 }
  0xea   : > { %3836 = vmatmul.mubr.f32.vlgmr.msra.gmra.mxu1 %v859_v39  ;;  %3840 = vmatprep.subr.mxu0 %v969_v40 }
  0xeb   : > { %3870 = vmatprep.mubr.f32.mxu0 %v5535_v15  ;;  %3841 = vmatpush3.msra.mxu0 %v969_v40 }
  0xec   : > { %3842 = vmatprep.subr.mxu0 %v968_v41  ;;  %3873 = vmatprep.subr.mxu1 %v1070_v55 }
  0xed   : > { %3843 = vmatpush3.msra.mxu0 %v968_v41  ;;  %3874 = vmatpush3.msra.mxu1 %v1070_v55  ;;  %v1354_v55 = vld [vmem:[#allocation9 + $0x50] sm:$0xff] }
  0xee   : > { %3844 = vmatprep.subr.mxu0 %v967_v42  ;;  %3875 = vmatprep.subr.mxu1 %v1069_v57 }
  0xef   : > { %3845 = vmatpush3.msra.mxu0 %v967_v42  ;;  %3876 = vmatpush3.msra.mxu1 %v1069_v57  ;;  %v1353_v57 = vld [vmem:[#allocation9 + $0x48] sm:$0xff] }
  0xf0   : > { %3846 = vmatprep.subr.mxu0 %v966_v43  ;;  %3877 = vmatprep.subr.mxu1 %v1068_v59 }
  0xf1   : > { %3847 = vmatpush3.msra.mxu0 %v966_v43  ;;  %3878 = vmatpush3.msra.mxu1 %v1068_v59  ;;  %v1352_v59 = vld [vmem:[#allocation9 + $0x40] sm:$0xff] }
  0xf2   : > { %3848 = vmatprep.subr.mxu0 %v965_v44  ;;  %3879 = vmatprep.subr.mxu1 %v1067_v61 }
  0xf3   : > { %3849 = vmatpush3.msra.mxu0 %v965_v44  ;;  %3880 = vmatpush3.msra.mxu1 %v1067_v61  ;;  %v1351_v61 = vld [vmem:[#allocation9 + $0x38] sm:$0xff] }
  0xf4   : > { %3850 = vmatprep.subr.mxu0 %v964_v45  ;;  %3881 = vmatprep.subr.mxu1 %v1066_v63 }
  0xf5   : > { %3851 = vmatpush3.msra.mxu0 %v964_v45  ;;  %3882 = vmatpush3.msra.mxu1 %v1066_v63  ;;  %v1350_v63 = vld [vmem:[#allocation9 + $0x30] sm:$0xff] }
  0xf6   : > { %3852 = vmatprep.subr.mxu0 %v963_v46  ;;  %3883 = vmatprep.subr.mxu1 %v1065_v1 }
  0xf7   : > { %3853 = vmatpush3.msra.mxu0 %v963_v46  ;;  %3884 = vmatpush3.msra.mxu1 %v1065_v1  ;;  %v1265_v46 = vld [vmem:[#allocation8 + $0x170] sm:$0xff]  ;;  %v1349_v1 = vld [vmem:[#allocation9 + $0x28] sm:$0xff] }
  0xf8   : > { %3854 = vmatprep.subr.mxu0 %v962_v47  ;;  %3885 = vmatprep.subr.mxu1 %v1064_v3 }
  0xf9   : > { %3855 = vmatpush3.msra.mxu0 %v962_v47  ;;  %3886 = vmatpush3.msra.mxu1 %v1064_v3  ;;  %v1358_v47 = vld [vmem:[#allocation9 + $0x70] sm:$0xff]  ;;  %v1348_v3 = vld [vmem:[#allocation9 + $0x20] sm:$0xff] }
  0xfa   : > { %3856 = vmatprep.subr.mxu0 %v961_v48  ;;  %3887 = vmatprep.subr.mxu1 %v1063_v5 }
  0xfb   : > { %3857 = vmatpush3.msra.mxu0 %v961_v48  ;;  %3888 = vmatpush3.msra.mxu1 %v1063_v5  ;;  %v1264_v48 = vld [vmem:[#allocation8 + $0x168] sm:$0xff]  ;;  %v1347_v5 = vld [vmem:[#allocation9 + $0x18] sm:$0xff] }
  0xfc   : > { %3858 = vmatprep.subr.mxu0 %v960_v49  ;;  %3889 = vmatprep.subr.mxu1 %v1062_v7 }
  0xfd   : > { %3859 = vmatpush3.msra.mxu0 %v960_v49  ;;  %3890 = vmatpush3.msra.mxu1 %v1062_v7  ;;  %v1357_v49 = vld [vmem:[#allocation9 + $0x68] sm:$0xff]  ;;  %v1346_v7 = vld [vmem:[#allocation9 + $0x10] sm:$0xff] }
  0xfe   : > { %3860 = vmatprep.subr.mxu0 %v959_v50  ;;  %3891 = vmatprep.subr.mxu1 %v1061_v9 }
  0xff   : > { %3861 = vmatpush3.msra.mxu0 %v959_v50  ;;  %3892 = vmatpush3.msra.mxu1 %v1061_v9  ;;  %v1263_v50 = vld [vmem:[#allocation8 + $0x160] sm:$0xff]  ;;  %v1345_v9 = vld [vmem:[#allocation9 + $0x8] sm:$0xff] }
 0x100   : > { %3862 = vmatprep.subr.mxu0 %v958_v51  ;;  %3893 = vmatprep.subr.mxu1 %v1060_v11 }
 0x101   : > { %3863 = vmatpush3.msra.mxu0 %v958_v51  ;;  %3894 = vmatpush3.msra.mxu1 %v1060_v11  ;;  %v1356_v51 = vld [vmem:[#allocation9 + $0x60] sm:$0xff] }
 0x102   : > { %3864 = vmatprep.subr.mxu0 %v957_v52  ;;  %3895 = vmatprep.subr.mxu1 %v1059_v13  ;;  %v1344_v11 = vld [vmem:[#allocation9] sm:$0xff] }
 0x103   : > { %3865 = vmatpush3.msra.mxu0 %v957_v52  ;;  %3896 = vmatpush3.msra.mxu1 %v1059_v13  ;;  %v1262_v52 = vld [vmem:[#allocation8 + $0x158] sm:$0xff] }
 0x104   : > { %3866 = vmatprep.subr.mxu0 %v956_v53  ;;  %3897 = vmatprep.subr.mxu1 %v1058_v17  ;;  %v1568_v13 = vld [vmem:[#allocation11 + $0xf8] sm:$0xff] }
 0x105   : > { %3867 = vmatpush3.msra.mxu0 %v956_v53  ;;  %3898 = vmatpush3.msra.mxu1 %v1058_v17  ;;  %v1355_v53 = vld [vmem:[#allocation9 + $0x58] sm:$0xff]  ;;  %v1567_v17 = vld [vmem:[#allocation11 + $0xf0] sm:$0xff] }
 0x106   : > { %3868 = vmatprep.subr.mxu0 %v955_v54  ;;  %3899 = vmatprep.subr.mxu1 %v1057_v19 }
 0x107   : > { %3869 = vmatpush3.msra.mxu0 %v955_v54  ;;  %3900 = vmatpush3.msra.mxu1 %v1057_v19  ;;  %v1261_v54 = vld [vmem:[#allocation8 + $0x150] sm:$0xff]  ;;  %v1566_v19 = vld [vmem:[#allocation11 + $0xe8] sm:$0xff] }
 0x108   : > { %3871 = vmatmul.mubr.f32.vlgmr.msra.gmra.mxu0 %v5538_v16  ;;  %3908 = vmatprep.subr.mxu0 %v1172_v56 }
 0x109   : > { %3909 = vmatpush3.msra.mxu0 %v1172_v56  ;;  %3901 = vmatprep.subr.mxu1 %v1056_v21  ;;  %v1260_v56 = vld [vmem:[#allocation8 + $0x148] sm:$0xff] }
 0x10a   : > { %3910 = vmatprep.subr.mxu0 %v1171_v58  ;;  %3902 = vmatpush3.msra.mxu1 %v1056_v21  ;;  %v1564_v21 = vld [vmem:[#allocation11 + $0xd8] sm:$0xff] }
 0x10b   : > { %3911 = vmatpush3.msra.mxu0 %v1171_v58  ;;  %3903 = vmatprep.subr.mxu1 %v1055_v23  ;;  %v1259_v58 = vld [vmem:[#allocation8 + $0x140] sm:$0xff] }
 0x10c   : > { %3912 = vmatprep.subr.mxu0 %v1170_v60  ;;  %3904 = vmatpush3.msra.mxu1 %v1055_v23  ;;  %v1563_v23 = vld [vmem:[#allocation11 + $0xd0] sm:$0xff] }
 0x10d   : > { %3913 = vmatpush3.msra.mxu0 %v1170_v60  ;;  %3943 = vmatprep.subr.mxu1 %v1266_v25  ;;  %v1258_v60 = vld [vmem:[#allocation8 + $0x138] sm:$0xff] }
 0x10e   : > { %3914 = vmatprep.subr.mxu0 %v1169_v62 }
 0x10f   : > { %3915 = vmatpush3.msra.mxu0 %v1169_v62  ;;  %v1257_v62 = vld [vmem:[#allocation8 + $0x130] sm:$0xff] }
 0x110   : > { %3916 = vmatprep.subr.mxu0 %v1168_v0 }
 0x111   : > { %3917 = vmatpush3.msra.mxu0 %v1168_v0  ;;  %v1256_v0 = vld [vmem:[#allocation8 + $0x128] sm:$0xff] }
 0x112   : > { %3918 = vmatprep.subr.mxu0 %v1167_v2 }
 0x113   : > { %3919 = vmatpush3.msra.mxu0 %v1167_v2  ;;  %v1255_v2 = vld [vmem:[#allocation8 + $0x120] sm:$0xff] }
 0x114   : > { %3920 = vmatprep.subr.mxu0 %v1166_v4 }
 0x115   : > { %3921 = vmatpush3.msra.mxu0 %v1166_v4  ;;  %v1254_v4 = vld [vmem:[#allocation8 + $0x118] sm:$0xff] }
 0x116   : > { %3922 = vmatprep.subr.mxu0 %v1165_v6 }
 0x117   : > { %3923 = vmatpush3.msra.mxu0 %v1165_v6  ;;  %v1253_v6 = vld [vmem:[#allocation8 + $0x110] sm:$0xff] }
 0x118   : > { %3924 = vmatprep.subr.mxu0 %v1164_v8 }
 0x119   : > { %3925 = vmatpush3.msra.mxu0 %v1164_v8  ;;  %v1252_v8 = vld [vmem:[#allocation8 + $0x108] sm:$0xff] }
 0x11a   : > { %3926 = vmatprep.subr.mxu0 %v1163_v10 }
 0x11b   : > { %3927 = vmatpush3.msra.mxu0 %v1163_v10  ;;  %v1251_v10 = vld [vmem:[#allocation8 + $0x100] sm:$0xff] }
 0x11c   : > { %3928 = vmatprep.subr.mxu0 %v1162_v12 }
 0x11d   : > { %3929 = vmatpush3.msra.mxu0 %v1162_v12  ;;  %v1466_v12 = vld [vmem:[#allocation11 + $0x78] sm:$0xff] }
 0x11e   : > { %3930 = vmatprep.subr.mxu0 %v1161_v14 }
 0x11f   : > { %3931 = vmatpush3.msra.mxu0 %v1161_v14  ;;  %v1465_v14 = vld [vmem:[#allocation11 + $0x70] sm:$0xff] }
 0x120   : > { %3932 = vmatprep.subr.mxu0 %v1160_v18 }
 0x121   : > { %3933 = vmatpush3.msra.mxu0 %v1160_v18  ;;  %v1464_v18 = vld [vmem:[#allocation11 + $0x68] sm:$0xff] }
 0x122   : > { %3934 = vmatprep.subr.mxu0 %v1159_v20 }
 0x123   : > { %3935 = vmatpush3.msra.mxu0 %v1159_v20  ;;  %v1565_v20 = vld [vmem:[#allocation11 + $0xe0] sm:$0xff] }
 0x124   : > { %3936 = vmatprep.subr.mxu0 %v1158_v22 }
 0x125   : > { %3937 = vmatpush3.msra.mxu0 %v1158_v22  ;;  %v1461_v22 = vld [vmem:[#allocation11 + $0x50] sm:$0xff] }
 0x126   : > { %3938 = vmatprep.subr.mxu0 %v1157_v24 }
 0x127   : > { %3939 = vmatpush3.msra.mxu0 %v1157_v24  ;;  %v1460_v24 = vld [vmem:[#allocation11 + $0x48] sm:$0xff] }
 0x128   : > { %3978 = vmatprep.subr.mxu0 %v1359_v26 }
 0x1a7   : > { %v3802_v27 = vpop.f32.mrf.mxu0 }
 0x1a8   : > { %v857_v31 = vadd.f32 %v3802_v27, %v3304_v28  ;;  %v1561_v27 = vld [vmem:[#allocation11 + $0xc0] sm:$0xff] }
 0x1a9   : > { %v841_v29 = vpop.f32.mrf.mxu0 }
 0x1aa   : > { %v3837_v30 = vpop.f32.mrf.mxu1  ;;  %v856_v32 = vadd.f32 %v3304_v28, %v841_v29  ;;  %v1458_v28 = vld [vmem:[#allocation11 + $0x38] sm:$0xff] }
 0x1ab   : > { %v953_v34 = vadd.f32 %v3837_v30, %v857_v31  ;;  %v1560_v29 = vld [vmem:[#allocation11 + $0xb8] sm:$0xff]  ;;  %v1457_v30 = vld [vmem:[#allocation11 + $0x30] sm:$0xff] }
 0x1ac   : > { %v943_v33 = vpop.f32.mrf.mxu1  ;;  %v1559_v31 = vld [vmem:[#allocation11 + $0xb0] sm:$0xff] }
 0x1ad   : > { %v952_v36 = vadd.f32 %v943_v33, %v856_v32  ;;  %v1456_v32 = vld [vmem:[#allocation11 + $0x28] sm:$0xff] }
 0x1ae   : > { %v1558_v33 = vld [vmem:[#allocation11 + $0xa8] sm:$0xff] }
 0x1c8   : > { %v3872_v35 = vpop.f32.mrf.mxu0 }
 0x1c9   : > { %v5547_v37 = vadd.f32 %v3872_v35, %v953_v34  ;;  %v1455_v34 = vld [vmem:[#allocation11 + $0x20] sm:$0xff] }
 0x1ca   : > { %v1037_v38 = vpop.f32.mrf.mxu0  ;;  %v1557_v35 = vld [vmem:[#allocation11 + $0xa0] sm:$0xff] }
 0x1cb   : > { %v1049_v39 = vmax.f32 %v5547_v37, 0.0  ;;  %v1046_v40 = vadd.f32 %v1037_v38, %v952_v36  ;;  %v1454_v36 = vld [vmem:[#allocation11 + $0x18] sm:$0xff]  ;;  %v1453_v38 = vld [vmem:[#allocation11 + $0x10] sm:$0xff] }
 0x1cc   : > { %v1556_v37 = vld [vmem:[#allocation11 + $0x98] sm:$0xff] }
 0x1cd   : > { %1051 = vst [vmem:[#allocation2 + $0x10] sm:$0xff] %v1049_v39  ;;  %v1048_v41 = vmax.f32 %v1046_v40, 0.0  ;;  %v1452_v40 = vld [vmem:[#allocation11 + $0x8] sm:$0xff] }
 0x1cf   : > { %1050 = vst [vmem:[#allocation2 + $0x8] sm:$0xff] %v1048_v41 }
 0x1d6   : > { %v1053_v42 = vld [vmem:[#allocation2 + $0x6] sm:$0xff]  ;;  %v1054_v44 = vld [vmem:[#allocation2 + $0xe] sm:$0xff] }
 0x1d7   : > { %v1154_v43 = vld [vmem:[#allocation2 + $0x7] sm:$0xff]  ;;  %3905 = vmatprep.mubr.f32.mxu1 %v1053_v42  ;;  %v1155_v45 = vld [vmem:[#allocation2 + $0xf] sm:$0xff]  ;;  %v1451_v42 = vld [vmem:[#allocation11] sm:$0xff] }
 0x1d8   : > { %3940 = vmatprep.mubr.f32.mxu0 %v1154_v43  ;;  %3906 = vmatmul.mubr.f32.vlgmr.msra.gmra.mxu1 %v1054_v44  ;;  %v1553_v43 = vld [vmem:[#allocation11 + $0x80] sm:$0xff]  ;;  %v1662_v44 = vld [vmem:[#allocation11 + $0x178] sm:$0xff] }
 0x1d9   : > { %3941 = vmatmul.mubr.f32.vlgmr.msra.gmra.mxu0 %v1155_v45  ;;  %3944 = vmatpush3.msra.mxu1 %v1266_v25  ;;  %v1562_v25 = vld [vmem:[#allocation11 + $0xc8] sm:$0xff] }
 0x1da   : > { %3979 = vmatpush3.msra.mxu0 %v1359_v26  ;;  %3945 = vmatprep.subr.mxu1 %v1265_v46  ;;  %v1459_v26 = vld [vmem:[#allocation11 + $0x40] sm:$0xff] }
 0x1db   : > { %3975 = vmatprep.mubr.f32.mxu1 %v1048_v41  ;;  %3980 = vmatprep.subr.mxu0 %v1358_v47  ;;  %v1554_v41 = vld [vmem:[#allocation11 + $0x88] sm:$0xff] }
 0x1dc   : > { %3946 = vmatpush3.msra.mxu1 %v1265_v46  ;;  %3981 = vmatpush3.msra.mxu0 %v1358_v47  ;;  %v3305_v46 = vld [vmem:[%s6127_s4] ss:$0 sm:$0xff] }
 0x1dd   : > { %3947 = vmatprep.subr.mxu1 %v1264_v48  ;;  %3982 = vmatprep.subr.mxu0 %v1357_v49 }
 0x1de   : > { %3948 = vmatpush3.msra.mxu1 %v1264_v48  ;;  %3983 = vmatpush3.msra.mxu0 %v1357_v49 }
 0x1df   : > { %3949 = vmatprep.subr.mxu1 %v1263_v50  ;;  %3984 = vmatprep.subr.mxu0 %v1356_v51 }
 0x1e0   : > { %3950 = vmatpush3.msra.mxu1 %v1263_v50  ;;  %3985 = vmatpush3.msra.mxu0 %v1356_v51 }
 0x1e1   : > { %3951 = vmatprep.subr.mxu1 %v1262_v52  ;;  %3986 = vmatprep.subr.mxu0 %v1355_v53 }
 0x1e2   : > { %3952 = vmatpush3.msra.mxu1 %v1262_v52  ;;  %3987 = vmatpush3.msra.mxu0 %v1355_v53  ;;  %v3306_v52 = vld [vmem:[%s6129_s6] ss:$0 sm:$0xff] }
 0x1e3   : > { %3953 = vmatprep.subr.mxu1 %v1261_v54  ;;  %3988 = vmatprep.subr.mxu0 %v1354_v55 }
 0x1e4   : > { %3954 = vmatpush3.msra.mxu1 %v1261_v54  ;;  %3989 = vmatpush3.msra.mxu0 %v1354_v55 }
 0x1e5   : > { %3955 = vmatprep.subr.mxu1 %v1260_v56  ;;  %3990 = vmatprep.subr.mxu0 %v1353_v57 }
 0x1e6   : > { %3956 = vmatpush3.msra.mxu1 %v1260_v56  ;;  %3991 = vmatpush3.msra.mxu0 %v1353_v57 }
 0x1e7   : > { %3957 = vmatprep.subr.mxu1 %v1259_v58  ;;  %3992 = vmatprep.subr.mxu0 %v1352_v59 }
 0x1e8   : > { %3958 = vmatpush3.msra.mxu1 %v1259_v58  ;;  %3993 = vmatpush3.msra.mxu0 %v1352_v59 }
 0x1e9   : > { %3959 = vmatprep.subr.mxu1 %v1258_v60  ;;  %3994 = vmatprep.subr.mxu0 %v1351_v61 }
 0x1ea   : > { %3960 = vmatpush3.msra.mxu1 %v1258_v60  ;;  %3995 = vmatpush3.msra.mxu0 %v1351_v61 }
 0x1eb   : > { %3961 = vmatprep.subr.mxu1 %v1257_v62  ;;  %3996 = vmatprep.subr.mxu0 %v1350_v63 }
 0x1ec   : > { %3962 = vmatpush3.msra.mxu1 %v1257_v62  ;;  %3997 = vmatpush3.msra.mxu0 %v1350_v63 }
 0x1ed   : > { %3963 = vmatprep.subr.mxu1 %v1256_v0  ;;  %3998 = vmatprep.subr.mxu0 %v1349_v1 }
 0x1ee   : > { %3964 = vmatpush3.msra.mxu1 %v1256_v0  ;;  %3999 = vmatpush3.msra.mxu0 %v1349_v1 }
 0x1ef   : > { %3965 = vmatprep.subr.mxu1 %v1255_v2  ;;  %4000 = vmatprep.subr.mxu0 %v1348_v3 }
 0x1f0   : > { %3966 = vmatpush3.msra.mxu1 %v1255_v2  ;;  %4001 = vmatpush3.msra.mxu0 %v1348_v3 }
 0x1f1   : > { %3967 = vmatprep.subr.mxu1 %v1254_v4  ;;  %4002 = vmatprep.subr.mxu0 %v1347_v5 }
 0x1f2   : > { %3968 = vmatpush3.msra.mxu1 %v1254_v4  ;;  %4003 = vmatpush3.msra.mxu0 %v1347_v5 }
 0x1f3   : > { %3969 = vmatprep.subr.mxu1 %v1253_v6  ;;  %4004 = vmatprep.subr.mxu0 %v1346_v7 }
 0x1f4   : > { %3970 = vmatpush3.msra.mxu1 %v1253_v6  ;;  %4005 = vmatpush3.msra.mxu0 %v1346_v7  ;;  %v1661_v7 = vld [vmem:[#allocation11 + $0x170] sm:$0xff] }
 0x1f5   : > { %3971 = vmatprep.subr.mxu1 %v1252_v8  ;;  %4006 = vmatprep.subr.mxu0 %v1345_v9 }
 0x1f6   : > { %3972 = vmatpush3.msra.mxu1 %v1252_v8  ;;  %4007 = vmatpush3.msra.mxu0 %v1345_v9  ;;  %v1660_v8 = vld [vmem:[#allocation11 + $0x168] sm:$0xff]  ;;  %v1659_v9 = vld [vmem:[#allocation11 + $0x160] sm:$0xff] }
 0x1f7   : > { %3973 = vmatprep.subr.mxu1 %v1251_v10  ;;  %4008 = vmatprep.subr.mxu0 %v1344_v11 }
 0x1f8   : > { %3974 = vmatpush3.msra.mxu1 %v1251_v10  ;;  %4009 = vmatpush3.msra.mxu0 %v1344_v11  ;;  %v1658_v10 = vld [vmem:[#allocation11 + $0x158] sm:$0xff]  ;;  %v1657_v11 = vld [vmem:[#allocation11 + $0x150] sm:$0xff] }
 0x1f9   : > { %4010 = vmatprep.mubr.f32.mxu0 %v5535_v15  ;;  %3976 = vmatmul.mubr.f32.vlgmr.msra.gmra.mxu1 %v1049_v39  ;;  %v1463_v15 = vld [vmem:[#allocation11 + $0x60] sm:$0xff]  ;;  %v1555_v39 = vld [vmem:[#allocation11 + $0x90] sm:$0xff] }
 0x1fa   : > { %4011 = vmatmul.mubr.f32.vlgmr.msra.gmra.mxu0 %v5538_v16  ;;  %4013 = vmatprep.subr.mxu1 %v1466_v12  ;;  %v1462_v16 = vld [vmem:[#allocation11 + $0x58] sm:$0xff] }
 0x1fb   : > { %4048 = vmatprep.subr.mxu0 %v1568_v13  ;;  %4014 = vmatpush3.msra.mxu1 %v1466_v12  ;;  %v1656_v12 = vld [vmem:[#allocation11 + $0x148] sm:$0xff] }
 0x1fc   : > { %4049 = vmatpush3.msra.mxu0 %v1568_v13  ;;  %4015 = vmatprep.subr.mxu1 %v1465_v14  ;;  %v1655_v13 = vld [vmem:[#allocation11 + $0x140] sm:$0xff] }
 0x1fd   : > { %4050 = vmatprep.subr.mxu0 %v1567_v17  ;;  %4016 = vmatpush3.msra.mxu1 %v1465_v14  ;;  %v1654_v14 = vld [vmem:[#allocation11 + $0x138] sm:$0xff] }
 0x1fe   : > { %4051 = vmatpush3.msra.mxu0 %v1567_v17  ;;  %4017 = vmatprep.subr.mxu1 %v1464_v18  ;;  %v1653_v17 = vld [vmem:[#allocation11 + $0x130] sm:$0xff] }
 0x1ff   : > { %4052 = vmatprep.subr.mxu0 %v1566_v19  ;;  %4018 = vmatpush3.msra.mxu1 %v1464_v18  ;;  %v1652_v18 = vld [vmem:[#allocation11 + $0x128] sm:$0xff] }
 0x200   : > { %4053 = vmatpush3.msra.mxu0 %v1566_v19  ;;  %4019 = vmatprep.subr.mxu1 %v1463_v15  ;;  %v1651_v19 = vld [vmem:[#allocation11 + $0x120] sm:$0xff] }
 0x201   : > { %4054 = vmatprep.subr.mxu0 %v1565_v20  ;;  %4020 = vmatpush3.msra.mxu1 %v1463_v15  ;;  %v1650_v15 = vld [vmem:[#allocation11 + $0x118] sm:$0xff] }
 0x202   : > { %4055 = vmatpush3.msra.mxu0 %v1565_v20  ;;  %4021 = vmatprep.subr.mxu1 %v1462_v16  ;;  %v1649_v20 = vld [vmem:[#allocation11 + $0x110] sm:$0xff] }
 0x203   : > { %4056 = vmatprep.subr.mxu0 %v1564_v21  ;;  %4022 = vmatpush3.msra.mxu1 %v1462_v16  ;;  %v1648_v16 = vld [vmem:[#allocation11 + $0x108] sm:$0xff] }
 0x204   : > { %4057 = vmatpush3.msra.mxu0 %v1564_v21  ;;  %4023 = vmatprep.subr.mxu1 %v1461_v22  ;;  %v1647_v21 = vld [vmem:[#allocation11 + $0x100] sm:$0xff] }
 0x205   : > { %4058 = vmatprep.subr.mxu0 %v1563_v23  ;;  %4024 = vmatpush3.msra.mxu1 %v1461_v22  ;;  %v1762_v22 = vld [vmem:[#allocation12 + $0x78] sm:$0xff] }
 0x206   : > { %4059 = vmatpush3.msra.mxu0 %v1563_v23  ;;  %4025 = vmatprep.subr.mxu1 %v1460_v24  ;;  %v1864_v23 = vld [vmem:[#allocation12 + $0xf8] sm:$0xff] }
 0x207   : > { %4060 = vmatprep.subr.mxu0 %v1562_v25  ;;  %4026 = vmatpush3.msra.mxu1 %v1460_v24  ;;  %v1761_v24 = vld [vmem:[#allocation12 + $0x70] sm:$0xff] }
 0x208   : > { %4061 = vmatpush3.msra.mxu0 %v1562_v25  ;;  %4027 = vmatprep.subr.mxu1 %v1459_v26  ;;  %v1863_v25 = vld [vmem:[#allocation12 + $0xf0] sm:$0xff] }
 0x209   : > { %4028 = vmatpush3.msra.mxu1 %v1459_v26  ;;  %4062 = vmatprep.subr.mxu0 %v1561_v27  ;;  %v1760_v26 = vld [vmem:[#allocation12 + $0x68] sm:$0xff] }
 0x20a   : > { %4029 = vmatprep.subr.mxu1 %v1458_v28  ;;  %4063 = vmatpush3.msra.mxu0 %v1561_v27  ;;  %v1862_v27 = vld [vmem:[#allocation12 + $0xe8] sm:$0xff] }
 0x20b   : > { %4030 = vmatpush3.msra.mxu1 %v1458_v28  ;;  %4064 = vmatprep.subr.mxu0 %v1560_v29  ;;  %v1759_v28 = vld [vmem:[#allocation12 + $0x60] sm:$0xff] }
 0x20c   : > { %4031 = vmatprep.subr.mxu1 %v1457_v30  ;;  %4065 = vmatpush3.msra.mxu0 %v1560_v29  ;;  %v1861_v29 = vld [vmem:[#allocation12 + $0xe0] sm:$0xff] }
 0x20d   : > { %4032 = vmatpush3.msra.mxu1 %v1457_v30  ;;  %4066 = vmatprep.subr.mxu0 %v1559_v31  ;;  %v1758_v30 = vld [vmem:[#allocation12 + $0x58] sm:$0xff] }
 0x20e   : > { %4033 = vmatprep.subr.mxu1 %v1456_v32  ;;  %4067 = vmatpush3.msra.mxu0 %v1559_v31  ;;  %v1860_v31 = vld [vmem:[#allocation12 + $0xd8] sm:$0xff] }
 0x20f   : > { %4034 = vmatpush3.msra.mxu1 %v1456_v32  ;;  %4068 = vmatprep.subr.mxu0 %v1558_v33  ;;  %v1757_v32 = vld [vmem:[#allocation12 + $0x50] sm:$0xff] }
 0x210   : > { %4035 = vmatprep.subr.mxu1 %v1455_v34  ;;  %4069 = vmatpush3.msra.mxu0 %v1558_v33  ;;  %v1859_v33 = vld [vmem:[#allocation12 + $0xd0] sm:$0xff] }
 0x211   : > { %4036 = vmatpush3.msra.mxu1 %v1455_v34  ;;  %4070 = vmatprep.subr.mxu0 %v1557_v35  ;;  %v1756_v34 = vld [vmem:[#allocation12 + $0x48] sm:$0xff] }
 0x212   : > { %4037 = vmatprep.subr.mxu1 %v1454_v36  ;;  %4071 = vmatpush3.msra.mxu0 %v1557_v35  ;;  %v1858_v35 = vld [vmem:[#allocation12 + $0xc8] sm:$0xff] }
 0x213   : > { %4038 = vmatpush3.msra.mxu1 %v1454_v36  ;;  %4072 = vmatprep.subr.mxu0 %v1556_v37  ;;  %v1755_v36 = vld [vmem:[#allocation12 + $0x40] sm:$0xff] }
 0x214   : > { %4039 = vmatprep.subr.mxu1 %v1453_v38  ;;  %4073 = vmatpush3.msra.mxu0 %v1556_v37  ;;  %v1857_v37 = vld [vmem:[#allocation12 + $0xc0] sm:$0xff] }
 0x215   : > { %4040 = vmatpush3.msra.mxu1 %v1453_v38  ;;  %4074 = vmatprep.subr.mxu0 %v1555_v39  ;;  %v1754_v38 = vld [vmem:[#allocation12 + $0x38] sm:$0xff] }
 0x216   : > { %4041 = vmatprep.subr.mxu1 %v1452_v40  ;;  %4075 = vmatpush3.msra.mxu0 %v1555_v39  ;;  %v1856_v39 = vld [vmem:[#allocation12 + $0xb8] sm:$0xff] }
 0x217   : > { %4042 = vmatpush3.msra.mxu1 %v1452_v40  ;;  %4076 = vmatprep.subr.mxu0 %v1554_v41  ;;  %v1753_v40 = vld [vmem:[#allocation12 + $0x30] sm:$0xff] }
 0x218   : > { %4043 = vmatprep.subr.mxu1 %v1451_v42  ;;  %4077 = vmatpush3.msra.mxu0 %v1554_v41  ;;  %v1855_v41 = vld [vmem:[#allocation12 + $0xb0] sm:$0xff] }
 0x219   : > { %4044 = vmatpush3.msra.mxu1 %v1451_v42  ;;  %4078 = vmatprep.subr.mxu0 %v1553_v43  ;;  %v1752_v42 = vld [vmem:[#allocation12 + $0x28] sm:$0xff] }
 0x21a   : > { %4079 = vmatpush3.msra.mxu0 %v1553_v43  ;;  %4083 = vmatprep.subr.mxu1 %v1662_v44  ;;  %v1854_v43 = vld [vmem:[#allocation12 + $0xa8] sm:$0xff] }
 0x21b   : > { %4118 = vmatprep.subr.mxu0 %v1762_v22 }
 0x298   : > { %v3907_v45 = vpop.f32.mrf.mxu1 }
 0x299   : > { %v3942_v47 = vpop.f32.mrf.mxu0  ;;  %v1153_v49 = vadd.f32 %v3907_v45, %v3305_v46  ;;  %v1853_v45 = vld [vmem:[#allocation12 + $0xa0] sm:$0xff] }
 0x29a   : > { %v1137_v48 = vpop.f32.mrf.mxu1 }
 0x29b   : > { %v1152_v50 = vadd.f32 %v3305_v46, %v1137_v48  ;;  %v1239_v51 = vpop.f32.mrf.mxu0  ;;  %v1249_v53 = vadd.f32 %v3942_v47, %v1153_v49  ;;  %v1750_v46 = vld [vmem:[#allocation12 + $0x18] sm:$0xff]  ;;  %v1749_v48 = vld [vmem:[#allocation12 + $0x10] sm:$0xff] }
 0x29c   : > { %v1852_v47 = vld [vmem:[#allocation12 + $0x98] sm:$0xff]  ;;  %v1851_v49 = vld [vmem:[#allocation12 + $0x90] sm:$0xff] }
 0x29d   : > { %v1248_v56 = vadd.f32 %v1239_v51, %v1152_v50  ;;  %v1748_v50 = vld [vmem:[#allocation12 + $0x8] sm:$0xff] }
 0x29e   : > { %v1850_v51 = vld [vmem:[#allocation12 + $0x88] sm:$0xff] }
 0x2b9   : > { %v3977_v54 = vpop.f32.mrf.mxu1 }
 0x2ba   : > { %v4012_v55 = vpop.f32.mrf.mxu0  ;;  %v1343_v57 = vadd.f32 %v3977_v54, %v1249_v53  ;;  %v1849_v53 = vld [vmem:[#allocation12 + $0x80] sm:$0xff]  ;;  %v1958_v54 = vld [vmem:[#allocation12 + $0x178] sm:$0xff] }
 0x2bb   : > { %v1439_v58 = vadd.f32 %v4012_v55, %v3306_v52  ;;  %v1333_v59 = vpop.f32.mrf.mxu1  ;;  %v5570_v55 = vld [vmem:[#allocation2] sm:$0xff] }
 0x2bc   : > { %v1433_v60 = vpop.f32.mrf.mxu0  ;;  %v1342_v62 = vadd.f32 %v1333_v59, %v1248_v56 }
 0x2bd   : > { %v1443_v61 = vadd.f32 %v1439_v58, %v1343_v57  ;;  %v1434_v63 = vadd.f32 %v3306_v52, %v1433_v60  ;;  %v1747_v52 = vld [vmem:[#allocation12] sm:$0xff]  ;;  %v3307_v57 = vld [vmem:[%s6131_s8] ss:$0 sm:$0xff] }
 0x2bf   : > { %v5562_v0 = vmax.f32 %v1443_v61, 0.0  ;;  %v1442_v1 = vadd.f32 %v1434_v63, %v1342_v62 }
 0x2c1   : > { %1447 = vst [vmem:[#allocation2 + $0x10] sm:$0xff] %v5562_v0  ;;  %v5565_v2 = vmax.f32 %v1442_v1, 0.0 }
 0x2c3   : > { %1446 = vst [vmem:[#allocation2 + $0x8] sm:$0xff] %v5565_v2 }
 0x2ca   : > { %v1449_v3 = vld [vmem:[#allocation2 + $0x4] sm:$0xff]  ;;  %v1450_v5 = vld [vmem:[#allocation2 + $0xc] sm:$0xff] }
 0x2cb   : > { %v1550_v4 = vld [vmem:[#allocation2 + $0x6] sm:$0xff]  ;;  %4045 = vmatprep.mubr.f32.mxu1 %v1449_v3  ;;  %v1551_v6 = vld [vmem:[#allocation2 + $0xe] sm:$0xff] }
 0x2cc   : > { %4080 = vmatprep.mubr.f32.mxu0 %v1550_v4  ;;  %4046 = vmatmul.mubr.f32.vlgmr.msra.gmra.mxu1 %v1450_v5 }
 0x2cd   : > { %4081 = vmatmul.mubr.f32.vlgmr.msra.gmra.mxu0 %v1551_v6  ;;  %4084 = vmatpush3.msra.mxu1 %v1662_v44  ;;  %v1751_v44 = vld [vmem:[#allocation12 + $0x20] sm:$0xff] }
 0x2ce   : > { %4115 = vmatprep.mubr.f32.mxu1 %v5565_v2  ;;  %4085 = vmatprep.subr.mxu1 %v1661_v7 }
 0x2cf   : > { %4086 = vmatpush3.msra.mxu1 %v1661_v7  ;;  %4119 = vmatpush3.msra.mxu0 %v1762_v22  ;;  %v1948_v22 = vld [vmem:[#allocation12 + $0x128] sm:$0xff] }
 0x2d0   : > { %4087 = vmatprep.subr.mxu1 %v1660_v8  ;;  %4120 = vmatprep.subr.mxu0 %v1761_v24 }
 0x2d1   : > { %4088 = vmatpush3.msra.mxu1 %v1660_v8  ;;  %4121 = vmatpush3.msra.mxu0 %v1761_v24  ;;  %v1946_v24 = vld [vmem:[#allocation12 + $0x118] sm:$0xff] }
 0x2d2   : > { %4089 = vmatprep.subr.mxu1 %v1659_v9  ;;  %4122 = vmatprep.subr.mxu0 %v1760_v26 }
 0x2d3   : > { %4090 = vmatpush3.msra.mxu1 %v1659_v9  ;;  %4123 = vmatpush3.msra.mxu0 %v1760_v26  ;;  %v1944_v26 = vld [vmem:[#allocation12 + $0x108] sm:$0xff] }
 0x2d4   : > { %4091 = vmatprep.subr.mxu1 %v1658_v10  ;;  %4124 = vmatprep.subr.mxu0 %v1759_v28 }
 0x2d5   : > { %4092 = vmatpush3.msra.mxu1 %v1658_v10  ;;  %4125 = vmatpush3.msra.mxu0 %v1759_v28  ;;  %v5577_v28 = vld [vmem:[#allocation14 + $0x178] sm:$0xff] }
 0x2d6   : > { %4093 = vmatprep.subr.mxu1 %v1657_v11  ;;  %4126 = vmatprep.subr.mxu0 %v1758_v30 }
 0x2d7   : > { %4094 = vmatpush3.msra.mxu1 %v1657_v11  ;;  %4127 = vmatpush3.msra.mxu0 %v1758_v30  ;;  %v5581_v30 = vld [vmem:[#allocation14 + $0x170] sm:$0xff] }
 0x2d8   : > { %4095 = vmatprep.subr.mxu1 %v1656_v12  ;;  %4128 = vmatprep.subr.mxu0 %v1757_v32 }
 0x2d9   : > { %4096 = vmatpush3.msra.mxu1 %v1656_v12  ;;  %4129 = vmatpush3.msra.mxu0 %v1757_v32  ;;  %v5589_v32 = vld [vmem:[#allocation14 + $0x168] sm:$0xff] }
 0x2da   : > { %4097 = vmatprep.subr.mxu1 %v1655_v13  ;;  %4130 = vmatprep.subr.mxu0 %v1756_v34 }
 0x2db   : > { %4098 = vmatpush3.msra.mxu1 %v1655_v13  ;;  %4131 = vmatpush3.msra.mxu0 %v1756_v34  ;;  %v1957_v13 = vld [vmem:[#allocation12 + $0x170] sm:$0xff]  ;;  %v5597_v34 = vld [vmem:[#allocation14 + $0x160] sm:$0xff] }
 0x2dc   : > { %4099 = vmatprep.subr.mxu1 %v1654_v14  ;;  %4132 = vmatprep.subr.mxu0 %v1755_v36 }
 0x2dd   : > { %4100 = vmatpush3.msra.mxu1 %v1654_v14  ;;  %4133 = vmatpush3.msra.mxu0 %v1755_v36  ;;  %v1956_v14 = vld [vmem:[#allocation12 + $0x168] sm:$0xff]  ;;  %v5605_v36 = vld [vmem:[#allocation14 + $0x158] sm:$0xff] }
 0x2de   : > { %4101 = vmatprep.subr.mxu1 %v1653_v17  ;;  %4134 = vmatprep.subr.mxu0 %v1754_v38 }
 0x2df   : > { %4102 = vmatpush3.msra.mxu1 %v1653_v17  ;;  %4135 = vmatpush3.msra.mxu0 %v1754_v38  ;;  %v1955_v17 = vld [vmem:[#allocation12 + $0x160] sm:$0xff]  ;;  %v5613_v38 = vld [vmem:[#allocation14 + $0x150] sm:$0xff] }
 0x2e0   : > { %4103 = vmatprep.subr.mxu1 %v1652_v18  ;;  %4136 = vmatprep.subr.mxu0 %v1753_v40 }
 0x2e1   : > { %4104 = vmatpush3.msra.mxu1 %v1652_v18  ;;  %4137 = vmatpush3.msra.mxu0 %v1753_v40  ;;  %v1954_v18 = vld [vmem:[#allocation12 + $0x158] sm:$0xff]  ;;  %v5621_v40 = vld [vmem:[#allocation14 + $0x148] sm:$0xff] }
 0x2e2   : > { %4105 = vmatprep.subr.mxu1 %v1651_v19  ;;  %4138 = vmatprep.subr.mxu0 %v1752_v42 }
 0x2e3   : > { %4106 = vmatpush3.msra.mxu1 %v1651_v19  ;;  %4139 = vmatpush3.msra.mxu0 %v1752_v42  ;;  %v1953_v19 = vld [vmem:[#allocation12 + $0x150] sm:$0xff]  ;;  %v5629_v42 = vld [vmem:[#allocation14 + $0x140] sm:$0xff] }
 0x2e4   : > { %4107 = vmatprep.subr.mxu1 %v1650_v15  ;;  %4140 = vmatprep.subr.mxu0 %v1751_v44 }
 0x2e5   : > { %4108 = vmatpush3.msra.mxu1 %v1650_v15  ;;  %4141 = vmatpush3.msra.mxu0 %v1751_v44  ;;  %v1952_v15 = vld [vmem:[#allocation12 + $0x148] sm:$0xff]  ;;  %v5637_v44 = vld [vmem:[#allocation14 + $0x138] sm:$0xff] }
 0x2e6   : > { %4109 = vmatprep.subr.mxu1 %v1649_v20  ;;  %4142 = vmatprep.subr.mxu0 %v1750_v46 }
 0x2e7   : > { %4110 = vmatpush3.msra.mxu1 %v1649_v20  ;;  %4143 = vmatpush3.msra.mxu0 %v1750_v46  ;;  %v1951_v20 = vld [vmem:[#allocation12 + $0x140] sm:$0xff]  ;;  %v5645_v46 = vld [vmem:[#allocation14 + $0x130] sm:$0xff] }
 0x2e8   : > { %4111 = vmatprep.subr.mxu1 %v1648_v16  ;;  %4144 = vmatprep.subr.mxu0 %v1749_v48 }
 0x2e9   : > { %4112 = vmatpush3.msra.mxu1 %v1648_v16  ;;  %4145 = vmatpush3.msra.mxu0 %v1749_v48  ;;  %v1950_v16 = vld [vmem:[#allocation12 + $0x138] sm:$0xff]  ;;  %v5653_v48 = vld [vmem:[#allocation14 + $0x128] sm:$0xff] }
 0x2ea   : > { %4113 = vmatprep.subr.mxu1 %v1647_v21  ;;  %4146 = vmatprep.subr.mxu0 %v1748_v50 }
 0x2eb   : > { %4114 = vmatpush3.msra.mxu1 %v1647_v21  ;;  %4147 = vmatpush3.msra.mxu0 %v1748_v50  ;;  %v1949_v21 = vld [vmem:[#allocation12 + $0x130] sm:$0xff]  ;;  %v5661_v50 = vld [vmem:[#allocation14 + $0x120] sm:$0xff] }
 0x2ec   : > { %4116 = vmatmul.mubr.f32.vlgmr.msra.gmra.mxu1 %v5562_v0  ;;  %4153 = vmatprep.subr.mxu1 %v1864_v23 }
 0x2ed   : > { %4154 = vmatpush3.msra.mxu1 %v1864_v23  ;;  %4148 = vmatprep.subr.mxu0 %v1747_v52  ;;  %v1947_v23 = vld [vmem:[#allocation12 + $0x120] sm:$0xff] }
 0x2ee   : > { %4155 = vmatprep.subr.mxu1 %v1863_v25  ;;  %4149 = vmatpush3.msra.mxu0 %v1747_v52  ;;  %v5673_v52 = vld [vmem:[#allocation14 + $0x118] sm:$0xff] }
 0x2ef   : > { %4156 = vmatpush3.msra.mxu1 %v1863_v25  ;;  %4188 = vmatprep.subr.mxu0 %v1958_v54  ;;  %v1945_v25 = vld [vmem:[#allocation12 + $0x110] sm:$0xff] }
 0x2f0   : > { %4157 = vmatprep.subr.mxu1 %v1862_v27 }
 0x2f1   : > { %4158 = vmatpush3.msra.mxu1 %v1862_v27  ;;  %v1943_v27 = vld [vmem:[#allocation12 + $0x100] sm:$0xff] }
 0x2f2   : > { %4159 = vmatprep.subr.mxu1 %v1861_v29 }
 0x2f3   : > { %4160 = vmatpush3.msra.mxu1 %v1861_v29  ;;  %v5579_v29 = vld [vmem:[#allocation14 + $0xf8] sm:$0xff] }
 0x2f4   : > { %4161 = vmatprep.subr.mxu1 %v1860_v31 }
 0x2f5   : > { %4162 = vmatpush3.msra.mxu1 %v1860_v31  ;;  %v5585_v31 = vld [vmem:[#allocation14 + $0xf0] sm:$0xff] }
 0x2f6   : > { %4163 = vmatprep.subr.mxu1 %v1859_v33 }
 0x2f7   : > { %4164 = vmatpush3.msra.mxu1 %v1859_v33  ;;  %v5591_v33 = vld [vmem:[#allocation14 + $0xe8] sm:$0xff] }
 0x2f8   : > { %4165 = vmatprep.subr.mxu1 %v1858_v35 }
 0x2f9   : > { %4166 = vmatpush3.msra.mxu1 %v1858_v35  ;;  %v5599_v35 = vld [vmem:[#allocation14 + $0xe0] sm:$0xff] }
 0x2fa   : > { %4167 = vmatprep.subr.mxu1 %v1857_v37 }
 0x2fb   : > { %4168 = vmatpush3.msra.mxu1 %v1857_v37  ;;  %v5607_v37 = vld [vmem:[#allocation14 + $0xd8] sm:$0xff] }
 0x2fc   : > { %4169 = vmatprep.subr.mxu1 %v1856_v39 }
 0x2fd   : > { %4170 = vmatpush3.msra.mxu1 %v1856_v39  ;;  %v5615_v39 = vld [vmem:[#allocation14 + $0xd0] sm:$0xff] }
 0x2fe   : > { %4171 = vmatprep.subr.mxu1 %v1855_v41 }
 0x2ff   : > { %4172 = vmatpush3.msra.mxu1 %v1855_v41  ;;  %v5623_v41 = vld [vmem:[#allocation14 + $0xc8] sm:$0xff] }
 0x300   : > { %4173 = vmatprep.subr.mxu1 %v1854_v43 }
 0x301   : > { %4174 = vmatpush3.msra.mxu1 %v1854_v43  ;;  %v5631_v43 = vld [vmem:[#allocation14 + $0xc0] sm:$0xff] }
 0x302   : > { %4175 = vmatprep.subr.mxu1 %v1853_v45 }
 0x303   : > { %4176 = vmatpush3.msra.mxu1 %v1853_v45  ;;  %v5639_v45 = vld [vmem:[#allocation14 + $0xb8] sm:$0xff] }
 0x304   : > { %4177 = vmatprep.subr.mxu1 %v1852_v47 }
 0x305   : > { %4178 = vmatpush3.msra.mxu1 %v1852_v47  ;;  %v5647_v47 = vld [vmem:[#allocation14 + $0xb0] sm:$0xff] }
 0x306   : > { %4179 = vmatprep.subr.mxu1 %v1851_v49 }
 0x307   : > { %4180 = vmatpush3.msra.mxu1 %v1851_v49  ;;  %v5655_v49 = vld [vmem:[#allocation14 + $0xa8] sm:$0xff] }
 0x308   : > { %4181 = vmatprep.subr.mxu1 %v1850_v51 }
 0x309   : > { %4182 = vmatpush3.msra.mxu1 %v1850_v51  ;;  %v5663_v51 = vld [vmem:[#allocation14 + $0xa0] sm:$0xff] }
 0x30a   : > { %4183 = vmatprep.subr.mxu1 %v1849_v53 }
 0x30b   : > { %4184 = vmatpush3.msra.mxu1 %v1849_v53  ;;  %v5675_v53 = vld [vmem:[#allocation14 + $0x98] sm:$0xff] }
 0x30c   : > { %4223 = vmatprep.subr.mxu1 %v5570_v55 }
 0x38c   : > { %v4047_v56 = vpop.f32.mrf.mxu1 }
 0x38d   : > { %v1549_v59 = vadd.f32 %v4047_v56, %v3307_v57  ;;  %v4082_v60 = vpop.f32.mrf.mxu0  ;;  %v5683_v56 = vld [vmem:[#allocation14 + $0x90] sm:$0xff] }
 0x38e   : > { %v1533_v58 = vpop.f32.mrf.mxu1 }
 0x38f   : > { %v1548_v61 = vadd.f32 %v3307_v57, %v1533_v58  ;;  %v1645_v62 = vadd.f32 %v4082_v60, %v1549_v59  ;;  %v1635_v63 = vpop.f32.mrf.mxu0  ;;  %v5689_v57 = vld [vmem:[#allocation14 + $0x108] sm:$0xff]  ;;  %v5697_v59 = vld [vmem:[#allocation14 + $0x100] sm:$0xff] }
 0x390   : > { %v5691_v58 = vld [vmem:[#allocation14 + $0x88] sm:$0xff]  ;;  %v5699_v60 = vld [vmem:[#allocation14 + $0x80] sm:$0xff] }
 0x391   : > { %v1644_v3 = vadd.f32 %v1635_v63, %v1548_v61  ;;  %v3308_v61 = vld [vmem:[%s6133_s10] ss:$0 sm:$0xff] }
 0x3ac   : > { %v4117_v1 = vpop.f32.mrf.mxu1 }
 0x3ad   : > { %v1739_v4 = vadd.f32 %v4117_v1, %v1645_v62 }
 0x3ae   : > { %v1729_v5 = vpop.f32.mrf.mxu1 }
 0x3af   : > { %v1741_v6 = vmax.f32 %v1739_v4, 0.0  ;;  %v1738_v7 = vadd.f32 %v1729_v5, %v1644_v3 }
 0x3b1   : > { %1743 = vst [vmem:[#allocation2 + $0x10] sm:$0xff] %v1741_v6  ;;  %v1740_v8 = vmax.f32 %v1738_v7, 0.0 }
 0x3b3   : > { %1742 = vst [vmem:[#allocation2 + $0x8] sm:$0xff] %v1740_v8 }
 0x3ba   : > { %v1745_v9 = vld [vmem:[#allocation2 + $0x4] sm:$0xff]  ;;  %v1746_v11 = vld [vmem:[#allocation2 + $0xc] sm:$0xff] }
 0x3bb   : > { %v1846_v10 = vld [vmem:[#allocation2 + $0x6] sm:$0xff]  ;;  %4150 = vmatprep.mubr.f32.mxu0 %v1745_v9  ;;  %v1847_v12 = vld [vmem:[#allocation2 + $0xe] sm:$0xff] }
 0x3bc   : > { %4185 = vmatprep.mubr.f32.mxu1 %v1846_v10  ;;  %4151 = vmatmul.mubr.f32.vlgmr.msra.gmra.mxu0 %v1746_v11  ;;  %v5717_v11 = vld [vmem:[#allocation14 + $0x78] sm:$0xff] }
 0x3bd   : > { %4186 = vmatmul.mubr.f32.vlgmr.msra.gmra.mxu1 %v1847_v12  ;;  %4189 = vmatpush3.msra.mxu0 %v1958_v54  ;;  %v5681_v54 = vld [vmem:[#allocation14 + $0x110] sm:$0xff] }
 0x3be   : > { %4220 = vmatprep.mubr.f32.mxu0 %v1740_v8  ;;  %4190 = vmatprep.subr.mxu0 %v1957_v13  ;;  %v5721_v12 = vld [vmem:[#allocation14 + $0x70] sm:$0xff] }
 0x3bf   : > { %4191 = vmatpush3.msra.mxu0 %v1957_v13  ;;  %4224 = vmatpush3.msra.mxu1 %v5577_v28  ;;  %v5733_v13 = vld [vmem:[#allocation14 + $0x60] sm:$0xff] }
 0x3c0   : > { %4192 = vmatprep.subr.mxu0 %v1956_v14  ;;  %4225 = vmatprep.subr.mxu1 %v5570_v55 }
 0x3c1   : > { %4193 = vmatpush3.msra.mxu0 %v1956_v14  ;;  %4226 = vmatpush3.msra.mxu1 %v5581_v30  ;;  %v5739_v14 = vld [vmem:[#allocation14 + $0x58] sm:$0xff] }
 0x3c2   : > { %4194 = vmatprep.subr.mxu0 %v1955_v17  ;;  %4227 = vmatprep.subr.mxu1 %v5570_v55 }
 0x3c3   : > { %4195 = vmatpush3.msra.mxu0 %v1955_v17  ;;  %4228 = vmatpush3.msra.mxu1 %v5589_v32  ;;  %v5745_v17 = vld [vmem:[#allocation14 + $0x50] sm:$0xff] }
 0x3c4   : > { %4196 = vmatprep.subr.mxu0 %v1954_v18  ;;  %4229 = vmatprep.subr.mxu1 %v5570_v55 }
 0x3c5   : > { %4197 = vmatpush3.msra.mxu0 %v1954_v18  ;;  %4230 = vmatpush3.msra.mxu1 %v5597_v34  ;;  %v5751_v18 = vld [vmem:[#allocation14 + $0x48] sm:$0xff] }
 0x3c6   : > { %4198 = vmatprep.subr.mxu0 %v1953_v19  ;;  %4231 = vmatprep.subr.mxu1 %v5570_v55 }
 0x3c7   : > { %4199 = vmatpush3.msra.mxu0 %v1953_v19  ;;  %4232 = vmatpush3.msra.mxu1 %v5605_v36  ;;  %v5757_v19 = vld [vmem:[#allocation14 + $0x40] sm:$0xff] }
 0x3c8   : > { %4200 = vmatprep.subr.mxu0 %v1952_v15  ;;  %4233 = vmatprep.subr.mxu1 %v5570_v55 }
 0x3c9   : > { %4201 = vmatpush3.msra.mxu0 %v1952_v15  ;;  %4234 = vmatpush3.msra.mxu1 %v5613_v38 }
 0x3ca   : > { %4202 = vmatprep.subr.mxu0 %v1951_v20  ;;  %4235 = vmatprep.subr.mxu1 %v5570_v55 }
 0x3cb   : > { %4203 = vmatpush3.msra.mxu0 %v1951_v20  ;;  %4236 = vmatpush3.msra.mxu1 %v5621_v40  ;;  %v5763_v20 = vld [vmem:[#allocation14 + $0x38] sm:$0xff] }
 0x3cc   : > { %4204 = vmatprep.subr.mxu0 %v1950_v16  ;;  %4237 = vmatprep.subr.mxu1 %v5570_v55 }
 0x3cd   : > { %4205 = vmatpush3.msra.mxu0 %v1950_v16  ;;  %4238 = vmatpush3.msra.mxu1 %v5629_v42 }
 0x3ce   : > { %4206 = vmatprep.subr.mxu0 %v1949_v21  ;;  %4239 = vmatprep.subr.mxu1 %v5570_v55 }
 0x3cf   : > { %4207 = vmatpush3.msra.mxu0 %v1949_v21  ;;  %4240 = vmatpush3.msra.mxu1 %v5637_v44 }
 0x3d0   : > { %4208 = vmatprep.subr.mxu0 %v1948_v22  ;;  %4241 = vmatprep.subr.mxu1 %v5570_v55 }
 0x3d1   : > { %4209 = vmatpush3.msra.mxu0 %v1948_v22  ;;  %4242 = vmatpush3.msra.mxu1 %v5645_v46  ;;  %v5769_v22 = vld [vmem:[#allocation14 + $0x30] sm:$0xff] }
 0x3d2   : > { %4210 = vmatprep.subr.mxu0 %v1947_v23  ;;  %4243 = vmatprep.subr.mxu1 %v5570_v55 }
 0x3d3   : > { %4211 = vmatpush3.msra.mxu0 %v1947_v23  ;;  %4244 = vmatpush3.msra.mxu1 %v5653_v48 }
 0x3d4   : > { %4212 = vmatprep.subr.mxu0 %v1946_v24  ;;  %4245 = vmatprep.subr.mxu1 %v5570_v55 }
 0x3d5   : > { %4213 = vmatpush3.msra.mxu0 %v1946_v24  ;;  %4246 = vmatpush3.msra.mxu1 %v5661_v50  ;;  %v5775_v24 = vld [vmem:[#allocation14 + $0x28] sm:$0xff] }
 0x3d6   : > { %4214 = vmatprep.subr.mxu0 %v1945_v25  ;;  %4247 = vmatprep.subr.mxu1 %v5570_v55 }
 0x3d7   : > { %4215 = vmatpush3.msra.mxu0 %v1945_v25  ;;  %4248 = vmatpush3.msra.mxu1 %v5673_v52 }
 0x3d8   : > { %4216 = vmatprep.subr.mxu0 %v1944_v26  ;;  %4249 = vmatprep.subr.mxu1 %v5570_v55 }
 0x3d9   : > { %4217 = vmatpush3.msra.mxu0 %v1944_v26  ;;  %4250 = vmatpush3.msra.mxu1 %v5681_v54  ;;  %v5781_v26 = vld [vmem:[#allocation14 + $0x20] sm:$0xff] }
 0x3da   : > { %4218 = vmatprep.subr.mxu0 %v1943_v27  ;;  %4251 = vmatprep.subr.mxu1 %v5570_v55 }
 0x3db   : > { %4219 = vmatpush3.msra.mxu0 %v1943_v27  ;;  %4252 = vmatpush3.msra.mxu1 %v5689_v57  ;;  %v5787_v27 = vld [vmem:[#allocation14 + $0x18] sm:$0xff] }
 0x3dc   : > { %4221 = vmatmul.mubr.f32.vlgmr.msra.gmra.mxu0 %v1741_v6  ;;  %4258 = vmatprep.subr.mxu0 %v5570_v55 }
 0x3dd   : > { %4259 = vmatpush3.msra.mxu0 %v5579_v29  ;;  %4253 = vmatprep.subr.mxu1 %v5570_v55 }
 0x3de   : > { %4260 = vmatprep.subr.mxu0 %v5570_v55  ;;  %4254 = vmatpush3.msra.mxu1 %v5697_v59 }
 0x3df   : > { %4261 = vmatpush3.msra.mxu0 %v5585_v31  ;;  %4255 = vmatprep.mubr.msk.f32.mxu1 %vm5182_vm0, %v5570_v55 }
 0x3e0   : > { %4262 = vmatprep.subr.mxu0 %v5570_v55  ;;  %4290 = vmatprep.mubr.msk.f32.mxu0 %vm5182_vm0, %v5570_v55 }
 0x3e1   : > { %4263 = vmatpush3.msra.mxu0 %v5591_v33  ;;  %4293 = vmatprep.subr.mxu1 %v5570_v55 }
 0x3e2   : > { %4264 = vmatprep.subr.mxu0 %v5570_v55 }
 0x3e3   : > { %4265 = vmatpush3.msra.mxu0 %v5599_v35 }
 0x3e4   : > { %4266 = vmatprep.subr.mxu0 %v5570_v55 }
 0x3e5   : > { %4267 = vmatpush3.msra.mxu0 %v5607_v37 }
 0x3e6   : > { %4268 = vmatprep.subr.mxu0 %v5570_v55 }
 0x3e7   : > { %4269 = vmatpush3.msra.mxu0 %v5615_v39 }
 0x3e8   : > { %4270 = vmatprep.subr.mxu0 %v5570_v55 }
 0x3e9   : > { %4271 = vmatpush3.msra.mxu0 %v5623_v41 }
 0x3ea   : > { %4272 = vmatprep.subr.mxu0 %v5570_v55 }
 0x3eb   : > { %4273 = vmatpush3.msra.mxu0 %v5631_v43 }
 0x3ec   : > { %4274 = vmatprep.subr.mxu0 %v5570_v55 }
 0x3ed   : > { %4275 = vmatpush3.msra.mxu0 %v5639_v45 }
 0x3ee   : > { %4276 = vmatprep.subr.mxu0 %v5570_v55 }
 0x3ef   : > { %4277 = vmatpush3.msra.mxu0 %v5647_v47 }
 0x3f0   : > { %4278 = vmatprep.subr.mxu0 %v5570_v55 }
 0x3f1   : > { %4279 = vmatpush3.msra.mxu0 %v5655_v49 }
 0x3f2   : > { %4280 = vmatprep.subr.mxu0 %v5570_v55 }
 0x3f3   : > { %4281 = vmatpush3.msra.mxu0 %v5663_v51 }
 0x3f4   : > { %4282 = vmatprep.subr.mxu0 %v5570_v55 }
 0x3f5   : > { %4283 = vmatpush3.msra.mxu0 %v5675_v53 }
 0x3f6   : > { %4284 = vmatprep.subr.mxu0 %v5570_v55 }
 0x3f7   : > { %4285 = vmatpush3.msra.mxu0 %v5683_v56 }
 0x3f8   : > { %4286 = vmatprep.subr.mxu0 %v5570_v55 }
 0x3f9   : > { %4287 = vmatpush3.msra.mxu0 %v5691_v58 }
 0x3fa   : > { %4288 = vmatprep.subr.mxu0 %v5570_v55 }
 0x3fb   : > { %4289 = vmatpush3.msra.mxu0 %v5699_v60 }
 0x3fc   : > { %4328 = vmatprep.subr.mxu0 %v5570_v55 }
 0x47c   : > { %v4152_v62 = vpop.f32.mrf.mxu0 }
 0x47d   : > { %v1845_v63 = vadd.f32 %v4152_v62, %v3308_v61  ;;  %v4187_v1 = vpop.f32.mrf.mxu1  ;;  %v5796_v62 = vld [vmem:[#allocation14 + $0x10] sm:$0xff] }
 0x47e   : > { %v1829_v3 = vpop.f32.mrf.mxu0 }
 0x47f   : > { %v1941_v4 = vadd.f32 %v4187_v1, %v1845_v63  ;;  %v1844_v15 = vadd.f32 %v3308_v61, %v1829_v3  ;;  %v1931_v16 = vpop.f32.mrf.mxu1  ;;  %v5809_v1 = vld [vmem:[#allocation14] sm:$0xff] }
 0x481   : > { %v1940_v23 = vadd.f32 %v1931_v16, %v1844_v15  ;;  %v2864_v15 = vld [vmem:[#allocation15 + $0x78] sm:$0xff]  ;;  %v2862_v16 = vld [vmem:[#allocation15 + $0x68] sm:$0xff] }
 0x49c   : > { %v4222_v5 = vpop.f32.mrf.mxu0 }
 0x49d   : > { %v2035_v6 = vadd.f32 %v4222_v5, %v1941_v4  ;;  %v6007_v5 = vld [vmem:[#allocation2] sm:$0xff] }
 0x49e   : > { %v2025_v21 = vpop.f32.mrf.mxu0 }
 0x49f   : > { %v2037_v7 = vadd.f32 %v2035_v6, %v5562_v0  ;;  %v5727_v0 = vld [vmem:[#allocation14 + $0x68] sm:$0xff]  ;;  %v2034_v25 = vadd.f32 %v2025_v21, %v1940_v23  ;;  %v2861_v21 = vld [vmem:[#allocation15 + $0x60] sm:$0xff]  ;;  %v2859_v23 = vld [vmem:[#allocation15 + $0x50] sm:$0xff] }
 0x4a1   : > { %v2039_v8 = vmax.f32 %v2037_v7, 0.0  ;;  %v5790_v61 = vadd.f32 %v2034_v25, %v5565_v2  ;;  %v5802_v2 = vld [vmem:[#allocation14 + $0x8] sm:$0xff]  ;;  %v2857_v25 = vld [vmem:[#allocation15 + $0x40] sm:$0xff] }
 0x4a3   : > { %v5713_v9 = vrot.slane %v2039_v8, 7  ;;  %v5715_v10 = vrot.slane %v2039_v8, 3  ;;  %v2038_v63 = vmax.f32 %v5790_v61, 0.0  ;;  %v2854_v61 = vld [vmem:[#allocation15 + $0x28] sm:$0xff] }
 0x4a5   : > { %4256 = vmatmul.mubr.f32.vlgmr.msra.gmra.mxu1 %v5713_v9  ;;  %4291 = vmatmul.mubr.f32.vlgmr.msra.gmra.mxu0 %v5715_v10  ;;  %v5817_v3 = vrot.slane %v2038_v63, 7  ;;  %v5891_v4 = vrot.slane %v2038_v63, 3  ;;  %v2851_v63 = vld [vmem:[#allocation15 + $0x10] sm:$0xff] }
 0x4a6   : > { %4294 = vmatpush3.msra.mxu1 %v5717_v11  ;;  %4329 = vmatpush3.msra.mxu0 %v5577_v28 }
 0x4a7   : > { %4295 = vmatprep.subr.mxu1 %v5570_v55  ;;  %4330 = vmatprep.subr.mxu0 %v5570_v55 }
 0x4a8   : > { %4296 = vmatpush3.msra.mxu1 %v5721_v12  ;;  %4331 = vmatpush3.msra.mxu0 %v5581_v30 }
 0x4a9   : > { %4297 = vmatprep.subr.mxu1 %v5570_v55  ;;  %4332 = vmatprep.subr.mxu0 %v5570_v55 }
 0x4aa   : > { %4298 = vmatpush3.msra.mxu1 %v5727_v0  ;;  %4333 = vmatpush3.msra.mxu0 %v5589_v32 }
 0x4ab   : > { %4299 = vmatprep.subr.mxu1 %v5570_v55  ;;  %4334 = vmatprep.subr.mxu0 %v5570_v55 }
 0x4ac   : > { %4300 = vmatpush3.msra.mxu1 %v5733_v13  ;;  %4335 = vmatpush3.msra.mxu0 %v5597_v34 }
 0x4ad   : > { %4301 = vmatprep.subr.mxu1 %v5570_v55  ;;  %4336 = vmatprep.subr.mxu0 %v5570_v55 }
 0x4ae   : > { %4302 = vmatpush3.msra.mxu1 %v5739_v14  ;;  %4337 = vmatpush3.msra.mxu0 %v5605_v36 }
 0x4af   : > { %4303 = vmatprep.subr.mxu1 %v5570_v55  ;;  %4338 = vmatprep.subr.mxu0 %v5570_v55 }
 0x4b0   : > { %4304 = vmatpush3.msra.mxu1 %v5745_v17  ;;  %4339 = vmatpush3.msra.mxu0 %v5613_v38 }
 0x4b1   : > { %4305 = vmatprep.subr.mxu1 %v5570_v55  ;;  %4340 = vmatprep.subr.mxu0 %v5570_v55 }
 0x4b2   : > { %4306 = vmatpush3.msra.mxu1 %v5751_v18  ;;  %4341 = vmatpush3.msra.mxu0 %v5621_v40 }
 0x4b3   : > { %4307 = vmatprep.subr.mxu1 %v5570_v55  ;;  %4342 = vmatprep.subr.mxu0 %v5570_v55 }
 0x4b4   : > { %4308 = vmatpush3.msra.mxu1 %v5757_v19  ;;  %4343 = vmatpush3.msra.mxu0 %v5629_v42 }
 0x4b5   : > { %4309 = vmatprep.subr.mxu1 %v5570_v55  ;;  %4344 = vmatprep.subr.mxu0 %v5570_v55 }
 0x4b6   : > { %4310 = vmatpush3.msra.mxu1 %v5763_v20  ;;  %4345 = vmatpush3.msra.mxu0 %v5637_v44 }
 0x4b7   : > { %4311 = vmatprep.subr.mxu1 %v5570_v55  ;;  %4346 = vmatprep.subr.mxu0 %v5570_v55 }
 0x4b8   : > { %4312 = vmatpush3.msra.mxu1 %v5769_v22  ;;  %4347 = vmatpush3.msra.mxu0 %v5645_v46 }
 0x4b9   : > { %4313 = vmatprep.subr.mxu1 %v5570_v55  ;;  %4348 = vmatprep.subr.mxu0 %v5570_v55 }
 0x4ba   : > { %4314 = vmatpush3.msra.mxu1 %v5775_v24  ;;  %4349 = vmatpush3.msra.mxu0 %v5653_v48 }
 0x4bb   : > { %4315 = vmatprep.subr.mxu1 %v5570_v55  ;;  %4350 = vmatprep.subr.mxu0 %v5570_v55 }
 0x4bc   : > { %4316 = vmatpush3.msra.mxu1 %v5781_v26  ;;  %4351 = vmatpush3.msra.mxu0 %v5661_v50 }
 0x4bd   : > { %4317 = vmatprep.subr.mxu1 %v5570_v55  ;;  %4352 = vmatprep.subr.mxu0 %v5570_v55 }
 0x4be   : > { %4318 = vmatpush3.msra.mxu1 %v5787_v27  ;;  %4353 = vmatpush3.msra.mxu0 %v5673_v52 }
 0x4bf   : > { %4319 = vmatprep.subr.mxu1 %v5570_v55  ;;  %4354 = vmatprep.subr.mxu0 %v5570_v55 }
 0x4c0   : > { %4320 = vmatpush3.msra.mxu1 %v5796_v62  ;;  %4355 = vmatpush3.msra.mxu0 %v5681_v54 }
 0x4c1   : > { %4321 = vmatprep.subr.mxu1 %v5570_v55  ;;  %4356 = vmatprep.subr.mxu0 %v5570_v55 }
 0x4c2   : > { %4322 = vmatpush3.msra.mxu1 %v5802_v2  ;;  %4357 = vmatpush3.msra.mxu0 %v5689_v57 }
 0x4c3   : > { %4323 = vmatprep.subr.mxu1 %v5570_v55  ;;  %4358 = vmatprep.subr.mxu0 %v5570_v55 }
 0x4c4   : > { %4324 = vmatpush3.msra.mxu1 %v5809_v1  ;;  %4325 = vmatprep.mubr.msk.f32.mxu1 %vm5182_vm0, %v5570_v55 }
 0x4c5   : > { %4359 = vmatpush3.msra.mxu0 %v5697_v59  ;;  %4360 = vmatprep.mubr.msk.f32.mxu0 %vm5182_vm0, %v5570_v55 }
 0x4c6   : > { %4326 = vmatmul.mubr.f32.vlgmr.msra.gmra.mxu1 %v5817_v3  ;;  %4361 = vmatmul.mubr.f32.vlgmr.msra.gmra.mxu0 %v5715_v10 }
 0x4c7   : > { %4363 = vmatprep.subr.mxu1 %v5570_v55  ;;  %4398 = vmatprep.subr.mxu0 %v5570_v55 }
 0x4c8   : > { %4364 = vmatpush3.msra.mxu1 %v5579_v29  ;;  %4399 = vmatpush3.msra.mxu0 %v5717_v11  ;;  %v6014_v11 = vld [vmem:[%s6135_s12] sm:$0x1] }
 0x4c9   : > { %4365 = vmatprep.subr.mxu1 %v5570_v55  ;;  %4400 = vmatprep.subr.mxu0 %v5570_v55 }
 0x4ca   : > { %4366 = vmatpush3.msra.mxu1 %v5585_v31  ;;  %4401 = vmatpush3.msra.mxu0 %v5721_v12 }
 0x4cb   : > { %4367 = vmatprep.subr.mxu1 %v5570_v55  ;;  %4402 = vmatprep.subr.mxu0 %v5570_v55 }
 0x4cc   : > { %4368 = vmatpush3.msra.mxu1 %v5591_v33  ;;  %4403 = vmatpush3.msra.mxu0 %v5727_v0 }
 0x4cd   : > { %4369 = vmatprep.subr.mxu1 %v5570_v55  ;;  %4404 = vmatprep.subr.mxu0 %v5570_v55 }
 0x4ce   : > { %4370 = vmatpush3.msra.mxu1 %v5599_v35  ;;  %4405 = vmatpush3.msra.mxu0 %v5733_v13 }
 0x4cf   : > { %4371 = vmatprep.subr.mxu1 %v5570_v55  ;;  %4406 = vmatprep.subr.mxu0 %v5570_v55 }
 0x4d0   : > { %4372 = vmatpush3.msra.mxu1 %v5607_v37  ;;  %4407 = vmatpush3.msra.mxu0 %v5739_v14 }
 0x4d1   : > { %4373 = vmatprep.subr.mxu1 %v5570_v55  ;;  %4408 = vmatprep.subr.mxu0 %v5570_v55 }
 0x4d2   : > { %4374 = vmatpush3.msra.mxu1 %v5615_v39  ;;  %4409 = vmatpush3.msra.mxu0 %v5745_v17 }
 0x4d3   : > { %4375 = vmatprep.subr.mxu1 %v5570_v55  ;;  %4410 = vmatprep.subr.mxu0 %v5570_v55 }
 0x4d4   : > { %4376 = vmatpush3.msra.mxu1 %v5623_v41  ;;  %4411 = vmatpush3.msra.mxu0 %v5751_v18 }
 0x4d5   : > { %4377 = vmatprep.subr.mxu1 %v5570_v55  ;;  %4412 = vmatprep.subr.mxu0 %v5570_v55 }
 0x4d6   : > { %4378 = vmatpush3.msra.mxu1 %v5631_v43  ;;  %4413 = vmatpush3.msra.mxu0 %v5757_v19 }
 0x4d7   : > { %4379 = vmatprep.subr.mxu1 %v5570_v55  ;;  %4414 = vmatprep.subr.mxu0 %v5570_v55 }
 0x4d8   : > { %4380 = vmatpush3.msra.mxu1 %v5639_v45  ;;  %4415 = vmatpush3.msra.mxu0 %v5763_v20  ;;  %v2863_v20 = vld [vmem:[#allocation15 + $0x70] sm:$0xff] }
 0x4d9   : > { %4381 = vmatprep.subr.mxu1 %v5570_v55  ;;  %4416 = vmatprep.subr.mxu0 %v5570_v55 }
 0x4da   : > { %4382 = vmatpush3.msra.mxu1 %v5647_v47  ;;  %4417 = vmatpush3.msra.mxu0 %v5769_v22  ;;  %v2860_v22 = vld [vmem:[#allocation15 + $0x58] sm:$0xff] }
 0x4db   : > { %4383 = vmatprep.subr.mxu1 %v5570_v55  ;;  %4418 = vmatprep.subr.mxu0 %v5570_v55 }
 0x4dc   : > { %4384 = vmatpush3.msra.mxu1 %v5655_v49  ;;  %4419 = vmatpush3.msra.mxu0 %v5775_v24  ;;  %v2858_v24 = vld [vmem:[#allocation15 + $0x48] sm:$0xff] }
 0x4dd   : > { %4385 = vmatprep.subr.mxu1 %v5570_v55  ;;  %4420 = vmatprep.subr.mxu0 %v5570_v55 }
 0x4de   : > { %4386 = vmatpush3.msra.mxu1 %v5663_v51  ;;  %4421 = vmatpush3.msra.mxu0 %v5781_v26  ;;  %v2856_v26 = vld [vmem:[#allocation15 + $0x38] sm:$0xff] }
 0x4df   : > { %4387 = vmatprep.subr.mxu1 %v5570_v55  ;;  %4422 = vmatprep.subr.mxu0 %v5570_v55 }
 0x4e0   : > { %4388 = vmatpush3.msra.mxu1 %v5675_v53  ;;  %4423 = vmatpush3.msra.mxu0 %v5787_v27  ;;  %v2855_v27 = vld [vmem:[#allocation15 + $0x30] sm:$0xff] }
 0x4e1   : > { %4389 = vmatprep.subr.mxu1 %v5570_v55  ;;  %4424 = vmatprep.subr.mxu0 %v5570_v55 }
 0x4e2   : > { %4390 = vmatpush3.msra.mxu1 %v5683_v56  ;;  %4425 = vmatpush3.msra.mxu0 %v5796_v62  ;;  %v2853_v62 = vld [vmem:[#allocation15 + $0x20] sm:$0xff] }
 0x4e3   : > { %4391 = vmatprep.subr.mxu1 %v5570_v55  ;;  %4426 = vmatprep.subr.mxu0 %v5570_v55 }
 0x4e4   : > { %4392 = vmatpush3.msra.mxu1 %v5691_v58  ;;  %4427 = vmatpush3.msra.mxu0 %v5802_v2  ;;  %v2852_v2 = vld [vmem:[#allocation15 + $0x18] sm:$0xff] }
 0x4e5   : > { %4393 = vmatprep.subr.mxu1 %v5570_v55  ;;  %4428 = vmatprep.subr.mxu0 %v5570_v55 }
 0x4e6   : > { %4394 = vmatpush3.msra.mxu1 %v5699_v60  ;;  %4395 = vmatprep.mubr.msk.f32.mxu1 %vm5182_vm0, %v5570_v55 }
 0x4e7   : > { %4429 = vmatpush3.msra.mxu0 %v5809_v1  ;;  %4430 = vmatprep.mubr.msk.f32.mxu0 %vm5182_vm0, %v5570_v55  ;;  %v2850_v1 = vld [vmem:[#allocation15 + $0x8] sm:$0xff] }
 0x4e8   : > { %4396 = vmatmul.mubr.f32.vlgmr.msra.gmra.mxu1 %v5817_v3  ;;  %4431 = vmatmul.mubr.f32.vlgmr.msra.gmra.mxu0 %v5891_v4 }
 0x4e9   : > { %4433 = vmatprep.subr.mxu1 %v5570_v55  ;;  %4468 = vmatprep.subr.mxu0 %v5570_v55 }
 0x4ea   : > { %4434 = vmatpush3.msra.mxu1 %v5577_v28  ;;  %4469 = vmatpush3.msra.mxu0 %v5579_v29  ;;  %v2689_v28 = vld [vmem:[#allocation15 + $0x178] sm:$0xff]  ;;  %v2688_v29 = vld [vmem:[#allocation15 + $0x170] sm:$0xff] }
 0x4eb   : > { %4435 = vmatprep.subr.mxu1 %v5570_v55  ;;  %4470 = vmatprep.subr.mxu0 %v5570_v55 }
 0x4ec   : > { %4436 = vmatpush3.msra.mxu1 %v5581_v30  ;;  %4471 = vmatpush3.msra.mxu0 %v5585_v31  ;;  %v2777_v30 = vld [vmem:[#allocation15 + $0xf8] sm:$0xff]  ;;  %v2776_v31 = vld [vmem:[#allocation15 + $0xf0] sm:$0xff] }
 0x4ed   : > { %4437 = vmatprep.subr.mxu1 %v5570_v55  ;;  %4472 = vmatprep.subr.mxu0 %v5570_v55 }
 0x4ee   : > { %4438 = vmatpush3.msra.mxu1 %v5589_v32  ;;  %4473 = vmatpush3.msra.mxu0 %v5591_v33  ;;  %v2687_v32 = vld [vmem:[#allocation15 + $0x168] sm:$0xff] }
 0x4ef   : > { %4439 = vmatprep.subr.mxu1 %v5570_v55  ;;  %4474 = vmatprep.subr.mxu0 %v5570_v55  ;;  %v2775_v33 = vld [vmem:[#allocation15 + $0xe8] sm:$0xff] }
 0x4f0   : > { %4440 = vmatpush3.msra.mxu1 %v5597_v34  ;;  %4475 = vmatpush3.msra.mxu0 %v5599_v35  ;;  %v2686_v34 = vld [vmem:[#allocation15 + $0x160] sm:$0xff] }
 0x4f1   : > { %4441 = vmatprep.subr.mxu1 %v5570_v55  ;;  %4476 = vmatprep.subr.mxu0 %v5570_v55  ;;  %v2774_v35 = vld [vmem:[#allocation15 + $0xe0] sm:$0xff] }
 0x4f2   : > { %4442 = vmatpush3.msra.mxu1 %v5605_v36  ;;  %4477 = vmatpush3.msra.mxu0 %v5607_v37  ;;  %v2685_v36 = vld [vmem:[#allocation15 + $0x158] sm:$0xff] }
 0x4f3   : > { %4443 = vmatprep.subr.mxu1 %v5570_v55  ;;  %4478 = vmatprep.subr.mxu0 %v5570_v55  ;;  %v2773_v37 = vld [vmem:[#allocation15 + $0xd8] sm:$0xff] }
 0x4f4   : > { %4444 = vmatpush3.msra.mxu1 %v5613_v38  ;;  %4479 = vmatpush3.msra.mxu0 %v5615_v39  ;;  %v2684_v38 = vld [vmem:[#allocation15 + $0x150] sm:$0xff] }
 0x4f5   : > { %4445 = vmatprep.subr.mxu1 %v5570_v55  ;;  %4480 = vmatprep.subr.mxu0 %v5570_v55  ;;  %v2772_v39 = vld [vmem:[#allocation15 + $0xd0] sm:$0xff] }
 0x4f6   : > { %4446 = vmatpush3.msra.mxu1 %v5621_v40  ;;  %4481 = vmatpush3.msra.mxu0 %v5623_v41  ;;  %v2683_v40 = vld [vmem:[#allocation15 + $0x148] sm:$0xff] }
 0x4f7   : > { %4447 = vmatprep.subr.mxu1 %v5570_v55  ;;  %4482 = vmatprep.subr.mxu0 %v5570_v55  ;;  %v2771_v41 = vld [vmem:[#allocation15 + $0xc8] sm:$0xff] }
 0x4f8   : > { %4448 = vmatpush3.msra.mxu1 %v5629_v42  ;;  %4483 = vmatpush3.msra.mxu0 %v5631_v43  ;;  %v2682_v42 = vld [vmem:[#allocation15 + $0x140] sm:$0xff] }
 0x4f9   : > { %4449 = vmatprep.subr.mxu1 %v5570_v55  ;;  %4484 = vmatprep.subr.mxu0 %v5570_v55  ;;  %v2770_v43 = vld [vmem:[#allocation15 + $0xc0] sm:$0xff] }
 0x4fa   : > { %4450 = vmatpush3.msra.mxu1 %v5637_v44  ;;  %4485 = vmatpush3.msra.mxu0 %v5639_v45  ;;  %v2681_v44 = vld [vmem:[#allocation15 + $0x138] sm:$0xff] }
 0x4fb   : > { %4451 = vmatprep.subr.mxu1 %v5570_v55  ;;  %4486 = vmatprep.subr.mxu0 %v5570_v55  ;;  %v2769_v45 = vld [vmem:[#allocation15 + $0xb8] sm:$0xff] }
 0x4fc   : > { %4452 = vmatpush3.msra.mxu1 %v5645_v46  ;;  %4487 = vmatpush3.msra.mxu0 %v5647_v47  ;;  %v2680_v46 = vld [vmem:[#allocation15 + $0x130] sm:$0xff] }
 0x4fd   : > { %4453 = vmatprep.subr.mxu1 %v5570_v55  ;;  %4488 = vmatprep.subr.mxu0 %v5570_v55  ;;  %v2768_v47 = vld [vmem:[#allocation15 + $0xb0] sm:$0xff] }
 0x4fe   : > { %4454 = vmatpush3.msra.mxu1 %v5653_v48  ;;  %4489 = vmatpush3.msra.mxu0 %v5655_v49  ;;  %v2679_v48 = vld [vmem:[#allocation15 + $0x128] sm:$0xff] }
 0x4ff   : > { %4455 = vmatprep.subr.mxu1 %v5570_v55  ;;  %4490 = vmatprep.subr.mxu0 %v5570_v55  ;;  %v2767_v49 = vld [vmem:[#allocation15 + $0xa8] sm:$0xff] }
 0x500   : > { %4456 = vmatpush3.msra.mxu1 %v5661_v50  ;;  %4491 = vmatpush3.msra.mxu0 %v5663_v51  ;;  %v2678_v50 = vld [vmem:[#allocation15 + $0x120] sm:$0xff] }
 0x501   : > { %4457 = vmatprep.subr.mxu1 %v5570_v55  ;;  %4492 = vmatprep.subr.mxu0 %v5570_v55  ;;  %v2766_v51 = vld [vmem:[#allocation15 + $0xa0] sm:$0xff] }
 0x502   : > { %4458 = vmatpush3.msra.mxu1 %v5673_v52  ;;  %4493 = vmatpush3.msra.mxu0 %v5675_v53  ;;  %v2677_v52 = vld [vmem:[#allocation15 + $0x118] sm:$0xff] }
 0x503   : > { %4459 = vmatprep.subr.mxu1 %v5570_v55  ;;  %4494 = vmatprep.subr.mxu0 %v5570_v55  ;;  %v2765_v53 = vld [vmem:[#allocation15 + $0x98] sm:$0xff] }
 0x504   : > { %4460 = vmatpush3.msra.mxu1 %v5681_v54  ;;  %4495 = vmatpush3.msra.mxu0 %v5683_v56  ;;  %v2676_v54 = vld [vmem:[#allocation15 + $0x110] sm:$0xff]  ;;  %v2675_v56 = vld [vmem:[#allocation15 + $0x108] sm:$0xff] }
 0x505   : > { %4461 = vmatprep.subr.mxu1 %v5570_v55  ;;  %4496 = vmatprep.subr.mxu0 %v5570_v55 }
 0x506   : > { %4462 = vmatpush3.msra.mxu1 %v5689_v57  ;;  %4497 = vmatpush3.msra.mxu0 %v5691_v58  ;;  %v2674_v57 = vld [vmem:[#allocation15 + $0x100] sm:$0xff]  ;;  %v2764_v58 = vld [vmem:[#allocation15 + $0x90] sm:$0xff] }
 0x507   : > { %4463 = vmatprep.subr.mxu1 %v5570_v55  ;;  %4498 = vmatprep.subr.mxu0 %v5570_v55 }
 0x508   : > { %4464 = vmatpush3.msra.mxu1 %v5697_v59  ;;  %4465 = vmatprep.mubr.msk.f32.mxu1 %vm5182_vm0, %v5570_v55  ;;  %v2763_v59 = vld [vmem:[#allocation15 + $0x88] sm:$0xff] }
 0x509   : > { %4499 = vmatpush3.msra.mxu0 %v5699_v60  ;;  %4500 = vmatprep.mubr.msk.f32.mxu0 %vm5182_vm0, %v5570_v55  ;;  %v2762_v60 = vld [vmem:[#allocation15 + $0x80] sm:$0xff] }
 0x50a   : > { %4466 = vmatmul.mubr.f32.vlgmr.msra.gmra.mxu1 %v5817_v3  ;;  %4501 = vmatmul.mubr.f32.vlgmr.msra.gmra.mxu0 %v5891_v4  ;;  %v2849_v4 = vld [vmem:[#allocation15] sm:$0xff] }
 0x50b   : > { %4503 = vmatprep.subr.mxu1 %v5570_v55  ;;  %4535 = vmatprep.mubr.msk.f32.mxu1 %vm5182_vm0, %v5570_v55 }
 0x50c   : > { %4504 = vmatpush3.msra.mxu1 %v2689_v28  ;;  %4538 = vmatprep.subr.mxu0 %v5570_v55 }
 0x50d   : > { %4505 = vmatprep.subr.mxu1 %v5570_v55  ;;  %4539 = vmatpush3.msra.mxu0 %v2777_v30 }
 0x50e   : > { %4506 = vmatpush3.msra.mxu1 %v2688_v29  ;;  %4540 = vmatprep.subr.mxu0 %v5570_v55 }
 0x50f   : > { %4507 = vmatprep.subr.mxu1 %v5570_v55  ;;  %4541 = vmatpush3.msra.mxu0 %v2776_v31 }
 0x510   : > { %4508 = vmatpush3.msra.mxu1 %v2687_v32  ;;  %4542 = vmatprep.subr.mxu0 %v5570_v55 }
 0x511   : > { %4509 = vmatprep.subr.mxu1 %v5570_v55  ;;  %4543 = vmatpush3.msra.mxu0 %v2775_v33 }
 0x512   : > { %4510 = vmatpush3.msra.mxu1 %v2686_v34  ;;  %4544 = vmatprep.subr.mxu0 %v5570_v55 }
 0x513   : > { %4511 = vmatprep.subr.mxu1 %v5570_v55  ;;  %4545 = vmatpush3.msra.mxu0 %v2774_v35  ;;  %v2951_v35 = vld [vmem:[#allocation17 + $0x78] sm:$0xff] }
 0x514   : > { %4512 = vmatpush3.msra.mxu1 %v2685_v36  ;;  %4546 = vmatprep.subr.mxu0 %v5570_v55  ;;  %v2950_v36 = vld [vmem:[#allocation17 + $0x70] sm:$0xff] }
 0x515   : > { %4513 = vmatprep.subr.mxu1 %v5570_v55  ;;  %4547 = vmatpush3.msra.mxu0 %v2773_v37  ;;  %v2949_v37 = vld [vmem:[#allocation17 + $0x68] sm:$0xff] }
 0x516   : > { %4514 = vmatpush3.msra.mxu1 %v2684_v38  ;;  %4548 = vmatprep.subr.mxu0 %v5570_v55  ;;  %v2948_v38 = vld [vmem:[#allocation17 + $0x60] sm:$0xff] }
 0x517   : > { %4515 = vmatprep.subr.mxu1 %v5570_v55  ;;  %4549 = vmatpush3.msra.mxu0 %v2772_v39  ;;  %v2947_v39 = vld [vmem:[#allocation17 + $0x58] sm:$0xff] }
 0x518   : > { %4516 = vmatpush3.msra.mxu1 %v2683_v40  ;;  %4550 = vmatprep.subr.mxu0 %v5570_v55  ;;  %v2946_v40 = vld [vmem:[#allocation17 + $0x50] sm:$0xff] }
 0x519   : > { %4517 = vmatprep.subr.mxu1 %v5570_v55  ;;  %4551 = vmatpush3.msra.mxu0 %v2771_v41  ;;  %v2945_v41 = vld [vmem:[#allocation17 + $0x48] sm:$0xff] }
 0x51a   : > { %4518 = vmatpush3.msra.mxu1 %v2682_v42  ;;  %4552 = vmatprep.subr.mxu0 %v5570_v55  ;;  %v2944_v42 = vld [vmem:[#allocation17 + $0x40] sm:$0xff] }
 0x51b   : > { %4519 = vmatprep.subr.mxu1 %v5570_v55  ;;  %4553 = vmatpush3.msra.mxu0 %v2770_v43  ;;  %v2943_v43 = vld [vmem:[#allocation17 + $0x38] sm:$0xff] }
 0x51c   : > { %4520 = vmatpush3.msra.mxu1 %v2681_v44  ;;  %4554 = vmatprep.subr.mxu0 %v5570_v55  ;;  %v2942_v44 = vld [vmem:[#allocation17 + $0x30] sm:$0xff] }
 0x51d   : > { %4521 = vmatprep.subr.mxu1 %v5570_v55  ;;  %4555 = vmatpush3.msra.mxu0 %v2769_v45  ;;  %v2941_v45 = vld [vmem:[#allocation17 + $0x28] sm:$0xff] }
 0x51e   : > { %4522 = vmatpush3.msra.mxu1 %v2680_v46  ;;  %4556 = vmatprep.subr.mxu0 %v5570_v55  ;;  %v2940_v46 = vld [vmem:[#allocation17 + $0x20] sm:$0xff] }
 0x51f   : > { %4523 = vmatprep.subr.mxu1 %v5570_v55  ;;  %4557 = vmatpush3.msra.mxu0 %v2768_v47  ;;  %v2939_v47 = vld [vmem:[#allocation17 + $0x18] sm:$0xff] }
 0x520   : > { %4524 = vmatpush3.msra.mxu1 %v2679_v48  ;;  %4558 = vmatprep.subr.mxu0 %v5570_v55  ;;  %v2938_v48 = vld [vmem:[#allocation17 + $0x10] sm:$0xff] }
 0x521   : > { %4525 = vmatprep.subr.mxu1 %v5570_v55  ;;  %4559 = vmatpush3.msra.mxu0 %v2767_v49  ;;  %v2937_v49 = vld [vmem:[#allocation17 + $0x8] sm:$0xff] }
 0x522   : > { %4526 = vmatpush3.msra.mxu1 %v2678_v50  ;;  %4560 = vmatprep.subr.mxu0 %v5570_v55 }
 0x523   : > { %4527 = vmatprep.subr.mxu1 %v5570_v55  ;;  %4561 = vmatpush3.msra.mxu0 %v2766_v51 }
 0x524   : > { %4528 = vmatpush3.msra.mxu1 %v2677_v52  ;;  %4562 = vmatprep.subr.mxu0 %v5570_v55 }
 0x525   : > { %4529 = vmatprep.subr.mxu1 %v5570_v55  ;;  %4563 = vmatpush3.msra.mxu0 %v2765_v53  ;;  %v2936_v53 = vld [vmem:[#allocation17] sm:$0xff] }
 0x526   : > { %4530 = vmatpush3.msra.mxu1 %v2676_v54  ;;  %4564 = vmatprep.subr.mxu0 %v5570_v55 }
 0x527   : > { %4531 = vmatprep.subr.mxu1 %v5570_v55  ;;  %4570 = vmatprep.mubr.msk.f32.mxu0 %vm5182_vm0, %v5570_v55 }
 0x528   : > { %4532 = vmatpush3.msra.mxu1 %v2675_v56  ;;  %4565 = vmatpush3.msra.mxu0 %v2764_v58 }
 0x529   : > { %4533 = vmatprep.subr.mxu1 %v5570_v55  ;;  %4566 = vmatprep.subr.mxu0 %v5570_v55 }
 0x52a   : > { %4534 = vmatpush3.msra.mxu1 %v2674_v57  ;;  %4567 = vmatpush3.msra.mxu0 %v2763_v59  ;;  %v3040_v59 = vld [vmem:[#allocation18 + $0x78] sm:$0xff] }
 0x52b   : > { %4573 = vmatprep.subr.mxu1 %v5570_v55  ;;  %4568 = vmatprep.subr.mxu0 %v6007_v5 }
 0x52c   : > { %4569 = vmatpush3.msra.mxu0 %v2762_v60  ;;  %v3039_v60 = vld [vmem:[#allocation18 + $0x70] sm:$0xff] }
 0x52d   : > { %4608 = vmatprep.subr.mxu0 %v6007_v5 }
 0x565   : > { %v2127_v6 = vpop.f32.mrf.mxu1  ;;  %v2217_v7 = vpop.f32.mrf.mxu0 }
 0x566   : > { %v2131_v55 = vadd.f32 %v2127_v6, %v6014_v11  ;;  %v3038_v6 = vld [vmem:[#allocation18 + $0x68] sm:$0xff] }
 0x567   : > { %v4257_v8 = vpop.f32.mrf.mxu1  ;;  %v4292_v10 = vpop.f32.mrf.mxu0 }
 0x568   : > { %v2221_v12 = vadd.f32 %v2217_v7, %v2131_v55  ;;  %v3037_v7 = vld [vmem:[#allocation18 + $0x60] sm:$0xff]  ;;  %v3036_v8 = vld [vmem:[#allocation18 + $0x58] sm:$0xff]  ;;  %v3034_v10 = vld [vmem:[#allocation18 + $0x48] sm:$0xff] }
 0x569   : > { %v3032_v55 = vld [vmem:[#allocation18 + $0x38] sm:$0xff] }
 0x586   : > { %v2307_v0 = vpop.f32.mrf.mxu1  ;;  %v2379_v13 = vpop.f32.mrf.mxu0 }
 0x587   : > { %v2311_v14 = vadd.f32 %v2307_v0, %v2221_v12  ;;  %v2383_v3 = vadd.f32 %v2379_v13, %v6014_v11  ;;  %v3031_v12 = vld [vmem:[#allocation18 + $0x30] sm:$0xff]  ;;  %v3030_v0 = vld [vmem:[#allocation18 + $0x28] sm:$0xff]  ;;  %v3029_v13 = vld [vmem:[#allocation18 + $0x20] sm:$0xff] }
 0x588   : > { %v4327_v17 = vpop.f32.mrf.mxu1  ;;  %v4362_v18 = vpop.f32.mrf.mxu0 }
 0x589   : > { %v2312_v19 = vmax.f32 %v2311_v14, 0.0  ;;  %v3028_v14 = vld [vmem:[#allocation18 + $0x18] sm:$0xff]  ;;  %v3027_v17 = vld [vmem:[#allocation18 + $0x10] sm:$0xff]  ;;  %v3026_v18 = vld [vmem:[#allocation18 + $0x8] sm:$0xff] }
 0x58b   : > { %4536 = vmatmul.mubr.f32.vlgmr.msra.gmra.mxu1 %v2312_v19  ;;  %v3025_v19 = vld [vmem:[#allocation18] sm:$0xff] }
 0x58c   : > { %4574 = vmatpush3.msra.mxu1 %v2864_v15  ;;  %4605 = vmatprep.mubr.msk.f32.mxu1 %vm5182_vm0, %v6007_v5 }
 0x58d   : > { %4575 = vmatprep.subr.mxu1 %v6007_v5 }
 0x58e   : > { %4576 = vmatpush3.msra.mxu1 %v2863_v20 }
 0x58f   : > { %4577 = vmatprep.subr.mxu1 %v6007_v5 }
 0x590   : > { %4578 = vmatpush3.msra.mxu1 %v2862_v16 }
 0x591   : > { %4579 = vmatprep.subr.mxu1 %v6007_v5 }
 0x592   : > { %4580 = vmatpush3.msra.mxu1 %v2861_v21 }
 0x593   : > { %4581 = vmatprep.subr.mxu1 %v6007_v5 }
 0x594   : > { %4582 = vmatpush3.msra.mxu1 %v2860_v22  ;;  %v2672_v22 = vld [vmem:[%s6137_s14] sm:$0x1] }
 0x595   : > { %4583 = vmatprep.subr.mxu1 %v6007_v5 }
 0x596   : > { %4584 = vmatpush3.msra.mxu1 %v2859_v23  ;;  %v2952_v23 = vld [vmem:[%s6197_s1] sm:$0x1]  ;;  %s5089_s1 = scalar_lea.vmem %s5088_s2, 32 }
 0x597   : > { %4585 = vmatprep.subr.mxu1 %v6007_v5  ;;  %p5091_p0 = scmp.lt.s32.totalorder %s5089_s1, %s5083_s11 }
 0x598   : > { %4586 = vmatpush3.msra.mxu1 %v2858_v24 }
 0x599   : > { %4587 = vmatprep.subr.mxu1 %v6007_v5  ;;  %p5092_p6 = por %p5091_p0, %p5090_p4 }
 0x59a   : > { %4588 = vmatpush3.msra.mxu1 %v2857_v25 }
 0x59b   : > { %4589 = vmatprep.subr.mxu1 %v6007_v5  ;;  %p5093_p5 = pnand %p5092_p6, %p5086_p3 }
 0x59c   : > { %4590 = vmatpush3.msra.mxu1 %v2856_v26 }
 0x59d   : > { %4591 = vmatprep.subr.mxu1 %v6007_v5 }
 0x59e   : > { %4592 = vmatpush3.msra.mxu1 %v2855_v27 }
 0x59f   : > { %4593 = vmatprep.subr.mxu1 %v6007_v5 }
 0x5a0   : > { %4594 = vmatpush3.msra.mxu1 %v2854_v61 }
 0x5a1   : > { %4595 = vmatprep.subr.mxu1 %v6007_v5 }
 0x5a2   : > { %4596 = vmatpush3.msra.mxu1 %v2853_v62 }
 0x5a3   : > { %4597 = vmatprep.subr.mxu1 %v6007_v5 }
 0x5a4   : > { %4598 = vmatpush3.msra.mxu1 %v2852_v2 }
 0x5a5   : > { %4599 = vmatprep.subr.mxu1 %v6007_v5 }
 0x5a6   : > { %4600 = vmatpush3.msra.mxu1 %v2851_v63 }
 0x5a7   : > { %4601 = vmatprep.subr.mxu1 %v6007_v5 }
 0x5a8   : > { %v2450_v28 = vpop.f32.mrf.mxu1  ;;  %v2523_v29 = vpop.f32.mrf.mxu0  ;;  %4602 = vmatpush3.msra.mxu1 %v2850_v1 }
 0x5a9   : > { %v2454_v30 = vadd.f32 %v2450_v28, %v2383_v3  ;;  %4603 = vmatprep.subr.mxu1 %v6007_v5  ;;  %v3041_v3 = vld [vmem:[%s6198_s18] sm:$0x1] }
 0x5aa   : > { %v4397_v31 = vpop.f32.mrf.mxu1  ;;  %v4432_v32 = vpop.f32.mrf.mxu0  ;;  %4604 = vmatpush3.msra.mxu1 %v2849_v4 }
 0x5ab   : > { %v2527_v33 = vadd.f32 %v2523_v29, %v2454_v30  ;;  %4643 = vmatprep.subr.mxu1 %v6007_v5 }
 0x5ad   : > { %v2528_v34 = vmax.f32 %v2527_v33, 0.0 }
 0x5af   : > { %4571 = vmatmul.mubr.f32.vlgmr.msra.gmra.mxu0 %v2528_v34 }
 0x5b0   : > { %4609 = vmatpush3.msra.mxu0 %v2951_v35  ;;  %4640 = vmatprep.mubr.msk.f32.mxu0 %vm5182_vm0, %v6007_v5 }
 0x5b1   : > { %4610 = vmatprep.subr.mxu0 %v6007_v5 }
 0x5b2   : > { %4611 = vmatpush3.msra.mxu0 %v2950_v36 }
 0x5b3   : > { %4612 = vmatprep.subr.mxu0 %v6007_v5 }
 0x5b4   : > { %4613 = vmatpush3.msra.mxu0 %v2949_v37 }
 0x5b5   : > { %4614 = vmatprep.subr.mxu0 %v6007_v5 }
 0x5b6   : > { %4615 = vmatpush3.msra.mxu0 %v2948_v38 }
 0x5b7   : > { %4616 = vmatprep.subr.mxu0 %v6007_v5 }
 0x5b8   : > { %4617 = vmatpush3.msra.mxu0 %v2947_v39 }
 0x5b9   : > { %4618 = vmatprep.subr.mxu0 %v6007_v5 }
 0x5ba   : > { %4619 = vmatpush3.msra.mxu0 %v2946_v40 }
 0x5bb   : > { %4620 = vmatprep.subr.mxu0 %v6007_v5 }
 0x5bc   : > { %4621 = vmatpush3.msra.mxu0 %v2945_v41 }
 0x5bd   : > { %4622 = vmatprep.subr.mxu0 %v6007_v5 }
 0x5be   : > { %4623 = vmatpush3.msra.mxu0 %v2944_v42 }
 0x5bf   : > { %4624 = vmatprep.subr.mxu0 %v6007_v5 }
 0x5c0   : > { %4625 = vmatpush3.msra.mxu0 %v2943_v43 }
 0x5c1   : > { %4626 = vmatprep.subr.mxu0 %v6007_v5 }
 0x5c2   : > { %4627 = vmatpush3.msra.mxu0 %v2942_v44 }
 0x5c3   : > { %4628 = vmatprep.subr.mxu0 %v6007_v5 }
 0x5c4   : > { %4629 = vmatpush3.msra.mxu0 %v2941_v45 }
 0x5c5   : > { %4630 = vmatprep.subr.mxu0 %v6007_v5 }
 0x5c6   : > { %4631 = vmatpush3.msra.mxu0 %v2940_v46 }
 0x5c7   : > { %4632 = vmatprep.subr.mxu0 %v6007_v5 }
 0x5c8   : > { %4633 = vmatpush3.msra.mxu0 %v2939_v47 }
 0x5c9   : > { %4634 = vmatprep.subr.mxu0 %v6007_v5 }
 0x5ca   : > { %v2595_v50 = vpop.f32.mrf.mxu1  ;;  %v2666_v51 = vpop.f32.mrf.mxu0  ;;  %4635 = vmatpush3.msra.mxu0 %v2938_v48 }
 0x5cb   : > { %v2599_v52 = vadd.f32 %v2595_v50, %v6014_v11  ;;  %4636 = vmatprep.subr.mxu0 %v6007_v5  ;;  %v3033_v11 = vld [vmem:[#allocation18 + $0x40] sm:$0xff] }
 0x5cc   : > { %v4467_v54 = vpop.f32.mrf.mxu1  ;;  %v4502_v56 = vpop.f32.mrf.mxu0  ;;  %4637 = vmatpush3.msra.mxu0 %v2937_v49 }
 0x5cd   : > { %v2670_v57 = vadd.f32 %v2666_v51, %v2599_v52  ;;  %4638 = vmatprep.subr.mxu0 %v6007_v5 }
 0x5ce   : > { %4639 = vmatpush3.msra.mxu0 %v2936_v53 }
 0x5cf   : > { %v2671_v58 = vmax.f32 %v2670_v57, 0.0  ;;  %4641 = vmatmul.mubr.f32.vlgmr.msra.gmra.mxu0 %v5713_v9  ;;  %v3035_v9 = vld [vmem:[#allocation18 + $0x50] sm:$0xff] }
 0x5d1   : > { %4606 = vmatmul.mubr.f32.vlgmr.msra.gmra.mxu1 %v2671_v58 }
 0x5d2   : > { %4675 = vmatprep.mubr.msk.f32.mxu1 %vm5182_vm0, %v6007_v5  ;;  %4644 = vmatpush3.msra.mxu1 %v3040_v59 }
 0x5d3   : > { %4645 = vmatprep.subr.mxu1 %v6007_v5 }
 0x5d4   : > { %4646 = vmatpush3.msra.mxu1 %v3039_v60 }
 0x5d5   : > { %4647 = vmatprep.subr.mxu1 %v6007_v5 }
 0x5d6   : > { %4648 = vmatpush3.msra.mxu1 %v3038_v6 }
 0x5d7   : > { %4649 = vmatprep.subr.mxu1 %v6007_v5 }
 0x5d8   : > { %4650 = vmatpush3.msra.mxu1 %v3037_v7 }
 0x5d9   : > { %4651 = vmatprep.subr.mxu1 %v6007_v5 }
 0x5da   : > { %4652 = vmatpush3.msra.mxu1 %v3036_v8 }
 0x5db   : > { %4653 = vmatprep.subr.mxu1 %v6007_v5 }
 0x5dc   : > { %4654 = vmatpush3.msra.mxu1 %v3035_v9 }
 0x5dd   : > { %4655 = vmatprep.subr.mxu1 %v6007_v5 }
 0x5de   : > { %4656 = vmatpush3.msra.mxu1 %v3034_v10 }
 0x5df   : > { %4657 = vmatprep.subr.mxu1 %v6007_v5 }
 0x5e0   : > { %4658 = vmatpush3.msra.mxu1 %v3033_v11 }
 0x5e1   : > { %4659 = vmatprep.subr.mxu1 %v6007_v5 }
 0x5e2   : > { %4660 = vmatpush3.msra.mxu1 %v3032_v55 }
 0x5e3   : > { %4661 = vmatprep.subr.mxu1 %v6007_v5 }
 0x5e4   : > { %4662 = vmatpush3.msra.mxu1 %v3031_v12 }
 0x5e5   : > { %4663 = vmatprep.subr.mxu1 %v6007_v5 }
 0x5e6   : > { %4664 = vmatpush3.msra.mxu1 %v3030_v0 }
 0x5e7   : > { %4665 = vmatprep.subr.mxu1 %v6007_v5 }
 0x5e8   : > { %4666 = vmatpush3.msra.mxu1 %v3029_v13 }
 0x5e9   : > { %4667 = vmatprep.subr.mxu1 %v6007_v5 }
 0x5ea   : > { %4668 = vmatpush3.msra.mxu1 %v3028_v14 }
 0x5eb   : > { %4669 = vmatprep.subr.mxu1 %v6007_v5 }
 0x5ec   : > { %4670 = vmatpush3.msra.mxu1 %v3027_v17 }
 0x5ed   : > { %4671 = vmatprep.subr.mxu1 %v6007_v5 }
 0x5ee   : > { %4672 = vmatpush3.msra.mxu1 %v3026_v18 }
 0x5ef   : > { %4673 = vmatprep.subr.mxu1 %v6007_v5 }
 0x5f0   : > { %4674 = vmatpush3.msra.mxu1 %v3025_v19 }
 0x64b   : > { %v2756_v15 = vpop.f32.mrf.mxu1 }
 0x64c   : > { %v2760_v24 = vadd.f32 %v2756_v15, %v2672_v22 }
 0x64d   : > { %v4537_v20 = vpop.f32.mrf.mxu1 }
 0x66f   : > { %v2844_v16 = vpop.f32.mrf.mxu0 }
 0x670   : > { %v2848_v26 = vadd.f32 %v2844_v16, %v2760_v24 }
 0x671   : > { %v4572_v21 = vpop.f32.mrf.mxu0 }
 0x68f   : > { %v3019_v25 = vpop.f32.mrf.mxu0 }
 0x690   : > { %v3020_v5 = vadd.f32 %v3019_v25, %v2952_v23 }
 0x691   : > { %v2931_v27 = vpop.f32.mrf.mxu1  ;;  %v4642_v61 = vpop.f32.mrf.mxu0 }
 0x692   : > { %v2935_v62 = vadd.f32 %v2931_v27, %v2848_v26 }
 0x693   : > { %v4607_v2 = vpop.f32.mrf.mxu1 }
 0x694   : > { %v3023_v63 = vadd.f32 %v3020_v5, %v2935_v62 }
 0x696   : > { %v3024_v1 = vmax.f32 %v3023_v63, 0.0 }
 0x698   : > { %4676 = vmatmul.mubr.f32.vlgmr.msra.gmra.mxu1 %v3024_v1 }
 0x758   : > { %v3108_v4 = vpop.f32.mrf.mxu1 }
 0x759   : > { %v3109_v28 = vadd.f32 %v3108_v4, %v3041_v3 }
 0x75a   : > { %v4677_v29 = vpop.f32.mrf.mxu1 }
 0x75b   : > { %3112 = vst [vmem:[%s750_s9] sm:$0x1] %v3109_v28 }
 0x75c   : > { %5096 = shalt.err (!%p5093_p5)
}
 0x75d   : > { %s5097_s19 = scalar_lea.hbm %s6086_s24, 16  ;;  %s5101_s18 = scalar_lea.hbm %s6199_s25, 32 }
 0x75e   : > { %p5098_p7 = scmp.ne.s32.totalorder %s6086_s24, %s5097_s19  ;;  %p5102_p12 = scmp.lt.s32.totalorder %s6086_s24, %s6199_s25 }
 0x75f   : > { %p5103_p2 = scmp.lt.s32.totalorder %s5101_s18, %s5097_s19 }
 0x760   : > { %p5099_p10 = pnand %p5098_p7, %p6200_p9 }
 0x761   : > { %p5104_p13 = por %p5103_p2, %p5102_p12 }
 0x762   : > { %p5100_p11 = pneg %p5099_p10 }
 0x764   : > { %p5105_p8 = pnand %p5104_p13, %p5100_p11 }
 0x766   : > { %5108 = shalt.err (!%p5105_p8)
}
 0x767   : > { %4716 = dma.vmem_to_hbm [thread:$0]  (%p6200_p9), %s3127_s13, 16, %s6086_s24, %s3114_s7  }
 0x768 PF: > { %s3138_s29 = sand.u32 1, %s5155_s0   ;;  %p6201_p1 = scmp.ne.s32.totalorder %s6179_s22, 0 }
 0x769   : > { %p6202_p3 = scmp.ge.s32.totalorder %s5167_s21, 2  ;;  %s3139_s17 = scalar_lea.sflag [#allocation5], %s3138_s29 }
 0x76b   : > { %p4751_p4 = pnand %p6202_p3, %p6201_p1 }
 0x76d   : > { %p4752_p0 = pneg %p4751_p4 }
 0x76f   : > { %5150 = dma.done.wait (%p4752_p0), %s3139_s17, 16  }
 0x770   : > { %5152 = vsyncadd (%p4752_p0), %s3139_s17, 4294967280  ;;  %p37_p6 = scmp.ge.s32.totalorder %s5435_s28, 4   ;;  %s6203_s0 = smov %s5159_s30 }
 0x771   : > { %s6204_s30 = smov %s5163_s20  ;;  %s6205_s20 = smov %s5447_s27 }
 0x772   : > { %s6206_s21 = smov %s5435_s28  ;;  %39 = sbr.rel (!%p37_p6) target bundleno = 25 (0x19), region = 189 }
 0x777   :  { %3143 = vsyncpa [#allocation4], 1 }
 0x778   :  { %3145 = vsyncpa [#allocation4 + $0x1], 1 }
 0x779   :  { %3146 = vsyncpa [#allocation7], 1 }
 0x77a   :  { %3147 = vsyncpa [#allocation10], 1 }
 0x77b   :  { %3148 = vsyncpa [#allocation13], 1 }
 0x77c   :  { %3149 = vsyncpa [#allocation16], 1 }
 0x77d   :  { %3150 = vsyncpa [#allocation19], 1 }
 0x77e   :  { %3151 = vsyncpa [#allocation5], 1 }
 0x77f   :  { %3153 = vsyncpa [#allocation5 + $0x1], 1 }

</bundles_post_ra>
